<compile_context>
chip_gen: v7x
topology: tpu7x:2x2x1
jax: 0.10.0
libtpu: 0.0.40
codegen_flags: <defaults>
</compile_context>

<pallas_src>
import functools

import jax
import jax.numpy as jnp
from jax.experimental import pallas as pl
from jax.experimental.pallas import tpu as pltpu


ENC_DIMS = [(3, 32), (32, 64), (64, 128), (128, 256)]
DEC_DIMS = [(256, 128), (128, 64), (64, 32), (32, 3)]
KSIZE = 3


def _round_up(x, m):
    return (x + m - 1) // m * m


# ---------------------------------------------------------------------------
# Pallas kernel: fused  act(A @ W + b)  for one (tile_m, tile_n) output block.
# A and W are bf16 (MXU), accumulation / bias / activation are f32.
# ---------------------------------------------------------------------------
def _matmul_bias_act_kernel(a_ref, w_ref, b_ref, o_ref, *, act):
    acc = jnp.dot(a_ref[...], w_ref[...], preferred_element_type=jnp.float32)
    acc = acc + b_ref[...]                      # (1, tile_n) broadcasts rows
    if act == "relu":
        acc = jnp.maximum(acc, 0.0)
    elif act == "sigmoid":
        acc = jax.nn.sigmoid(acc)
    o_ref[...] = acc.astype(o_ref.dtype)


def _choose_tiles(M, Np):
    """Pick (tile_m, Mp, tile_n).  Full K is always used (gk == 1)."""
    if M >= 1024:
        tile_m = 512
    elif M >= 256:
        tile_m = 256
    else:
        tile_m = _round_up(M, 8)
    Mp = _round_up(M, tile_m)
    tile_n = 256 if Np >= 512 else Np
    # v7x megacore: ensure >= 2 output blocks on the parallel axes whenever
    # there is real work to split, otherwise one TensorCore idles.
    if (Mp // tile_m) * (Np // tile_n) == 1:
        if Np >= 256:
            tile_n = 128
        elif Mp >= 16 and Mp % 16 == 0 and M > 8:
            tile_m = Mp // 2
    return tile_m, Mp, tile_n


def matmul_bias_act(a, w_p, b_p, n_out, act, out_dtype):
    """a: (M, K) bf16 patches; w_p: (K, Np) bf16 lane-padded; b_p: (1, Np) f32.
    Returns act(a @ w + b)[:, :n_out] with dtype out_dtype."""
    M, K = a.shape
    Kw, Np = w_p.shape
    assert K == Kw, (K, Kw)
    assert Np % 128 == 0, Np
    # Full-K tiles: for this network K <= 2304, so a bf16 A tile + W tile is
    # well under a few MiB even double-buffered (fits v7x's 64 MiB VMEM).
    assert K <= 4096, K

    tile_m, Mp, tile_n = _choose_tiles(M, Np)
    if Mp != M:
        a = jnp.pad(a, ((0, Mp - M), (0, 0)))
    gm, gn = Mp // tile_m, Np // tile_n

    out = pl.pallas_call(
        functools.partial(_matmul_bias_act_kernel, act=act),
        out_shape=jax.ShapeDtypeStruct((Mp, Np), out_dtype),
        grid=(gm, gn),
        in_specs=[
            pl.BlockSpec((tile_m, K), lambda i, j: (i, 0)),
            pl.BlockSpec((K, tile_n), lambda i, j: (0, j)),
            pl.BlockSpec((1, tile_n), lambda i, j: (0, j)),
        ],
        out_specs=pl.BlockSpec((tile_m, tile_n), lambda i, j: (i, j)),
        compiler_params=pltpu.CompilerParams(
            dimension_semantics=("parallel", "parallel"),
            vmem_limit_bytes=48 * 1024 * 1024,   # within v7x's 64 MiB physical
        ),
    )(a, w_p, b_p)

    if Mp != M or Np != n_out:
        out = out[:M, :n_out]
    return out


# ---------------------------------------------------------------------------
# Plain-JAX glue: NHWC im2col (bf16), conv / conv-transpose wrappers
# ---------------------------------------------------------------------------
def _im2col_nhwc(x, kh, kw, stride, pads):
    """x: (N, H, W, C) -> (N*Ho*Wo, kh*kw*C) patch matrix (K order kh,kw,C)."""
    n, h, w, c = x.shape
    pt, pb, plo, pr = pads
    xp = jnp.pad(x, ((0, 0), (pt, pb), (plo, pr), (0, 0)))
    ho = (h + pt + pb - kh) // stride + 1
    wo = (w + plo + pr - kw) // stride + 1
    taps = []
    for i in range(kh):
        for j in range(kw):
            taps.append(
                xp[:, i:i + stride * ho:stride, j:j + stride * wo:stride, :])
    cols = jnp.stack(taps, axis=3)               # (N, Ho, Wo, kh*kw, C)
    return cols.reshape(n * ho * wo, kh * kw * c), ho, wo


def conv2d_nhwc(x, w_p, b_p, cout, ksize, stride, padding, act, out_dtype):
    n = x.shape[0]
    a, ho, wo = _im2col_nhwc(x, ksize, ksize, stride, (padding,) * 4)
    y = matmul_bias_act(a, w_p, b_p, cout, act, out_dtype)
    return y.reshape(n, ho, wo, cout)            # NHWC, no transpose


def conv_transpose2d_s2_nhwc(x, w_p, b_p, cout, act, out_dtype):
    """ConvTranspose2d(k=3, s=2, p=1, output_padding=1) via the 4-parity
    decomposition: no zero-dilated input, a single 2x2-patch im2col shared by
    all 4 output parities, and one fused matmul against the combined weight."""
    n, h, w, cin = x.shape
    xp = jnp.pad(x, ((0, 0), (0, 1), (0, 1), (0, 0)))   # high-side zero pad
    taps = [xp[:, dy:dy + h, dx:dx + w, :] for dy in (0, 1) for dx in (0, 1)]
    a = jnp.stack(taps, axis=3).reshape(n * h * w, 4 * cin)   # K = (dy,dx,Cin)
    y = matmul_bias_act(a, w_p, b_p, 4 * cout, act, out_dtype)
    y = y.reshape(n, h, w, 2, 2, cout)                   # (.., py, px, Cout)
    y = y.transpose(0, 1, 3, 2, 4, 5).reshape(n, 2 * h, 2 * w, cout)
    return y


# ---------------------------------------------------------------------------
# Parameters: deterministic init + one-time matmul-ready packing
# ---------------------------------------------------------------------------
def init_params(key):
    params = {"enc": [], "dec": []}
    for cin, cout in ENC_DIMS:
        key, k1, k2 = jax.random.split(key, 3)
        bound = 1.0 / (cin * KSIZE * KSIZE) ** 0.5
        w = jax.random.uniform(k1, (cout, cin, KSIZE, KSIZE), jnp.float32,
                               -bound, bound)
        b = jax.random.uniform(k2, (cout,), jnp.float32, -bound, bound)
        params["enc"].append((w, b))
    for cin, cout in DEC_DIMS:
        key, k1, k2 = jax.random.split(key, 3)
        bound = 1.0 / (cin * KSIZE * KSIZE) ** 0.5
        w = jax.random.uniform(k1, (cin, cout, KSIZE, KSIZE), jnp.float32,
                               -bound, bound)
        b = jax.random.uniform(k2, (cout,), jnp.float32, -bound, bound)
        params["dec"].append((w, b))
    return params


def _pack_weight(w_mat, b):
    """(K, N) f32 matrix + (N,) bias -> bf16 (K, Np) + f32 (1, Np), Np%128==0."""
    K, N = w_mat.shape
    Np = _round_up(N, 128)
    w_p = jnp.zeros((K, Np), jnp.bfloat16).at[:, :N].set(
        w_mat.astype(jnp.bfloat16))
    b_p = jnp.zeros((1, Np), jnp.float32).at[0, :N].set(b)
    return w_p, b_p


def _pack_conv_weight(w, b):
    cout, cin, kh, kw = w.shape
    w_mat = w.transpose(2, 3, 1, 0).reshape(kh * kw * cin, cout)
    return _pack_weight(w_mat, b)


def _pack_deconv_weight(w, b):
    """PyTorch ConvTranspose2d weight (Cin, Cout, 3, 3), stride 2, pad 1,
    output_padding 1 -> combined parity weight (4*Cin, 4*Cout):
      out[2m+py, 2n+px, co] = sum_{dy,dx,ci} x[m+dy, n+dx, ci] *
                              w[ci, co, py+1-2dy, px+1-2dx]   (valid taps only)
    K order = (dy, dx, Cin); N order = (py, px, Cout)."""
    cin, cout, kh, kw = w.shape
    wm = jnp.zeros((2, 2, cin, 2, 2, cout), jnp.float32)
    for py in range(2):
        for px in range(2):
            for dy in range(2):
                for dx in range(2):
                    ky = py + 1 - 2 * dy
                    kx = px + 1 - 2 * dx
                    if 0 <= ky < kh and 0 <= kx < kw:
                        wm = wm.at[dy, dx, :, py, px, :].set(w[:, :, ky, kx])
    w_mat = wm.reshape(4 * cin, 4 * cout)
    b_rep = jnp.tile(b, 4)                       # bias replicated per parity
    return _pack_weight(w_mat, b_rep)


def prepare_params(params):
    """One-time packing of PyTorch-layout weights into matmul-ready, bf16,
    lane-padded matrices (parity-expanded for the ConvTranspose layers)."""
    prep = {"enc": [], "dec": []}
    for (w, b) in params["enc"]:
        prep["enc"].append(_pack_conv_weight(w, b))
    for (w, b) in params["dec"]:
        prep["dec"].append(_pack_deconv_weight(w, b))
    return prep


# ---------------------------------------------------------------------------
# Forward pass (public interface: NCHW, matching PyTorch)
# ---------------------------------------------------------------------------
def anomaly_autoencoder_forward(prep, x_nchw):
    h = jnp.transpose(x_nchw, (0, 2, 3, 1)).astype(jnp.bfloat16)   # NHWC bf16
    # encoder: 4 x (Conv2d(k=3, s=2, p=1) + ReLU)
    for (w_p, b_p), (_, cout) in zip(prep["enc"], ENC_DIMS):
        h = conv2d_nhwc(h, w_p, b_p, cout, KSIZE, stride=2, padding=1,
                        act="relu", out_dtype=jnp.bfloat16)
    # decoder: 3 x (ConvTranspose2d + ReLU) + (ConvTranspose2d + Sigmoid)
    last = len(DEC_DIMS) - 1
    for idx, ((w_p, b_p), (_, cout)) in enumerate(zip(prep["dec"], DEC_DIMS)):
        act = "sigmoid" if idx == last else "relu"
        odt = jnp.float32 if idx == last else jnp.bfloat16
        h = conv_transpose2d_s2_nhwc(h, w_p, b_p, cout, act, odt)
    return jnp.transpose(h, (0, 3, 1, 2))        # back to NCHW


# ---------------------------------------------------------------------------
# Pure-JAX f32 reference (for correctness validation only)
# ---------------------------------------------------------------------------
def _reference_forward(params, x):
    h = x
    for (w, b) in params["enc"]:
        h = jax.lax.conv_general_dilated(
            h, w, window_strides=(2, 2), padding=[(1, 1), (1, 1)],
            dimension_numbers=("NCHW", "OIHW", "NCHW"))
        h = jax.nn.relu(h + b[None, :, None, None])
    last = len(params["dec"]) - 1
    for idx, (w, b) in enumerate(params["dec"]):
        w_eq = jnp.flip(w, axis=(2, 3)).transpose(1, 0, 2, 3)   # (Cout,Cin,k,k)
        h = jax.lax.conv_general_dilated(
            h, w_eq, window_strides=(1, 1), padding=[(1, 2), (1, 2)],
            lhs_dilation=(2, 2),
            dimension_numbers=("NCHW", "OIHW", "NCHW"))
        h = h + b[None, :, None, None]
        h = jax.nn.sigmoid(h) if idx == last else jax.nn.relu(h)
    return h


if __name__ == "__main__":
    key = jax.random.PRNGKey(0)
    kx, kp = jax.random.split(key)
    x = jax.random.uniform(kx, (2, 3, 16, 16), dtype=jnp.float32)   # NCHW
    params = init_params(kp)
    prep = prepare_params(params)                # one-time weight packing

    fwd = jax.jit(anomaly_autoencoder_forward)
    y = fwd(prep, x)
    jax.block_until_ready(y)

    assert y.shape == (2, 3, 16, 16), y.shape
    assert bool(jnp.all(jnp.isfinite(y)))

    # Validate against the f32 reference (bf16 MXU inputs -> loose tolerance).
    y_ref = _reference_forward(params, x)
    err = float(jnp.max(jnp.abs(y - y_ref)))
    assert err < 5e-2, f"max abs err vs reference: {err}"
    print("KERNEL_OK")
</pallas_src>

<mosaic_0001>
module attributes {stable_mosaic.version = 11 : i64} {
  func.func @_matmul_bias_act_kernel(%arg0: i32, %arg1: i32, %arg2: memref<64x27xbf16, #tpu.memory_space<vmem>>, %arg3: memref<27x128xbf16, #tpu.memory_space<vmem>>, %arg4: memref<1x128xf32, #tpu.memory_space<vmem>>, %arg5: memref<64x128xbf16, #tpu.memory_space<vmem>>) attributes {dimension_semantics = [#tpu.dimension_semantics<parallel>, #tpu.dimension_semantics<parallel>], iteration_bounds = array<i64: 2, 1>, scalar_prefetch = 0 : i64, scratch_operands = 0 : i64, tpu.core_type = #tpu.core_type<tc>, window_params = [{transform_indices = @transform_0, window_bounds = array<i64: 64, 27>}, {transform_indices = @transform_1, window_bounds = array<i64: 27, 128>}, {transform_indices = @transform_2, window_bounds = array<i64: 1, 128>}, {transform_indices = @transform_3, window_bounds = array<i64: 64, 128>}]} {
    %c0 = arith.constant 0 : index
    %c0_0 = arith.constant 0 : index
    %0 = vector.load %arg2[%c0, %c0_0] : memref<64x27xbf16, #tpu.memory_space<vmem>>, vector<64x27xbf16>
    %c0_1 = arith.constant 0 : index
    %c0_2 = arith.constant 0 : index
    %1 = vector.load %arg3[%c0_1, %c0_2] : memref<27x128xbf16, #tpu.memory_space<vmem>>, vector<27x128xbf16>
    %cst = arith.constant dense<0.000000e+00> : vector<64x128xf32>
    %2 = tpu.matmul %0, %1, %cst {dimension_numbers = #tpu.dot_dimension_numbers<[1], [0], [0], [1], [0, 0, 1, 1], [], []>} : vector<64x27xbf16>, vector<27x128xbf16>, vector<64x128xf32> -> vector<64x128xf32>
    %c0_3 = arith.constant 0 : index
    %c0_4 = arith.constant 0 : index
    %3 = vector.load %arg4[%c0_3, %c0_4] : memref<1x128xf32, #tpu.memory_space<vmem>>, vector<1x128xf32>
    %4 = vector.broadcast %3 : vector<1x128xf32> to vector<64x128xf32>
    %5 = arith.addf %2, %4 : vector<64x128xf32>
    %cst_5 = arith.constant 0.000000e+00 : f32
    %6 = vector.broadcast %cst_5 : f32 to vector<64x128xf32>
    %7 = arith.maximumf %5, %6 : vector<64x128xf32>
    %8 = arith.truncf %7 : vector<64x128xf32> to vector<64x128xbf16>
    %c0_6 = arith.constant 0 : index
    %c0_7 = arith.constant 0 : index
    %9 = vector.load %arg5[%c0_6, %c0_7] : memref<64x128xbf16, #tpu.memory_space<vmem>>, vector<64x128xbf16>
    tpu.vector_store %arg5[%c0_6, %c0_7], %8 {strides = array<i32>} : memref<64x128xbf16, #tpu.memory_space<vmem>>, vector<64x128xbf16>,
    return
  }
  func.func @transform_0(%arg0: i32, %arg1: i32) -> (i32, i32) {
    %c0_i32 = arith.constant 0 : i32
    %c0_i32_0 = arith.constant 0 : i32
    return %arg0, %c0_i32 : i32, i32
  }
  func.func @transform_1(%arg0: i32, %arg1: i32) -> (i32, i32) {
    %c0_i32 = arith.constant 0 : i32
    %c0_i32_0 = arith.constant 0 : i32
    return %c0_i32, %arg1 : i32, i32
  }
  func.func @transform_2(%arg0: i32, %arg1: i32) -> (i32, i32) {
    %c0_i32 = arith.constant 0 : i32
    %c0_i32_0 = arith.constant 0 : i32
    return %c0_i32, %arg1 : i32, i32
  }
  func.func @transform_3(%arg0: i32, %arg1: i32) -> (i32, i32) {
    %c0_i32 = arith.constant 0 : i32
    return %arg0, %arg1 : i32, i32
  }
}

module attributes {stable_mosaic.version = 11 : i64} {
  func.func @_matmul_bias_act_kernel(%arg0: i32, %arg1: i32, %arg2: memref<16x288xbf16, #tpu.memory_space<vmem>>, %arg3: memref<288x128xbf16, #tpu.memory_space<vmem>>, %arg4: memref<1x128xf32, #tpu.memory_space<vmem>>, %arg5: memref<16x128xbf16, #tpu.memory_space<vmem>>) attributes {dimension_semantics = [#tpu.dimension_semantics<parallel>, #tpu.dimension_semantics<parallel>], iteration_bounds = array<i64: 2, 1>, scalar_prefetch = 0 : i64, scratch_operands = 0 : i64, tpu.core_type = #tpu.core_type<tc>, window_params = [{transform_indices = @transform_0, window_bounds = array<i64: 16, 288>}, {transform_indices = @transform_1, window_bounds = array<i64: 288, 128>}, {transform_indices = @transform_2, window_bounds = array<i64: 1, 128>}, {transform_indices = @transform_3, window_bounds = array<i64: 16, 128>}]} {
    %c0 = arith.constant 0 : index
    %c0_0 = arith.constant 0 : index
    %0 = vector.load %arg2[%c0, %c0_0] : memref<16x288xbf16, #tpu.memory_space<vmem>>, vector<16x288xbf16>
    %c0_1 = arith.constant 0 : index
    %c0_2 = arith.constant 0 : index
    %1 = vector.load %arg3[%c0_1, %c0_2] : memref<288x128xbf16, #tpu.memory_space<vmem>>, vector<288x128xbf16>
    %cst = arith.constant dense<0.000000e+00> : vector<16x128xf32>
    %2 = tpu.matmul %0, %1, %cst {dimension_numbers = #tpu.dot_dimension_numbers<[1], [0], [0], [1], [0, 0, 1, 1], [], []>} : vector<16x288xbf16>, vector<288x128xbf16>, vector<16x128xf32> -> vector<16x128xf32>
    %c0_3 = arith.constant 0 : index
    %c0_4 = arith.constant 0 : index
    %3 = vector.load %arg4[%c0_3, %c0_4] : memref<1x128xf32, #tpu.memory_space<vmem>>, vector<1x128xf32>
    %4 = vector.broadcast %3 : vector<1x128xf32> to vector<16x128xf32>
    %5 = arith.addf %2, %4 : vector<16x128xf32>
    %cst_5 = arith.constant 0.000000e+00 : f32
    %6 = vector.broadcast %cst_5 : f32 to vector<16x128xf32>
    %7 = arith.maximumf %5, %6 : vector<16x128xf32>
    %8 = arith.truncf %7 : vector<16x128xf32> to vector<16x128xbf16>
    %c0_6 = arith.constant 0 : index
    %c0_7 = arith.constant 0 : index
    %9 = vector.load %arg5[%c0_6, %c0_7] : memref<16x128xbf16, #tpu.memory_space<vmem>>, vector<16x128xbf16>
    tpu.vector_store %arg5[%c0_6, %c0_7], %8 {strides = array<i32>} : memref<16x128xbf16, #tpu.memory_space<vmem>>, vector<16x128xbf16>,
    return
  }
  func.func @transform_0(%arg0: i32, %arg1: i32) -> (i32, i32) {
    %c0_i32 = arith.constant 0 : i32
    %c0_i32_0 = arith.constant 0 : i32
    return %arg0, %c0_i32 : i32, i32
  }
  func.func @transform_1(%arg0: i32, %arg1: i32) -> (i32, i32) {
    %c0_i32 = arith.constant 0 : i32
    %c0_i32_0 = arith.constant 0 : i32
    return %c0_i32, %arg1 : i32, i32
  }
  func.func @transform_2(%arg0: i32, %arg1: i32) -> (i32, i32) {
    %c0_i32 = arith.constant 0 : i32
    %c0_i32_0 = arith.constant 0 : i32
    return %c0_i32, %arg1 : i32, i32
  }
  func.func @transform_3(%arg0: i32, %arg1: i32) -> (i32, i32) {
    %c0_i32 = arith.constant 0 : i32
    return %arg0, %arg1 : i32, i32
  }
}

module attributes {stable_mosaic.version = 11 : i64} {
  func.func @_matmul_bias_act_kernel(%arg0: i32, %arg1: i32, %arg2: memref<8x576xbf16, #tpu.memory_space<vmem>>, %arg3: memref<576x128xbf16, #tpu.memory_space<vmem>>, %arg4: memref<1x128xf32, #tpu.memory_space<vmem>>, %arg5: memref<8x128xbf16, #tpu.memory_space<vmem>>) attributes {dimension_semantics = [#tpu.dimension_semantics<parallel>, #tpu.dimension_semantics<parallel>], iteration_bounds = array<i64: 1, 1>, scalar_prefetch = 0 : i64, scratch_operands = 0 : i64, tpu.core_type = #tpu.core_type<tc>, window_params = [{transform_indices = @transform_0, window_bounds = array<i64: 8, 576>}, {transform_indices = @transform_1, window_bounds = array<i64: 576, 128>}, {transform_indices = @transform_2, window_bounds = array<i64: 1, 128>}, {transform_indices = @transform_3, window_bounds = array<i64: 8, 128>}]} {
    %c0 = arith.constant 0 : index
    %c0_0 = arith.constant 0 : index
    %0 = vector.load %arg2[%c0, %c0_0] : memref<8x576xbf16, #tpu.memory_space<vmem>>, vector<8x576xbf16>
    %c0_1 = arith.constant 0 : index
    %c0_2 = arith.constant 0 : index
    %1 = vector.load %arg3[%c0_1, %c0_2] : memref<576x128xbf16, #tpu.memory_space<vmem>>, vector<576x128xbf16>
    %cst = arith.constant dense<0.000000e+00> : vector<8x128xf32>
    %2 = tpu.matmul %0, %1, %cst {dimension_numbers = #tpu.dot_dimension_numbers<[1], [0], [0], [1], [0, 0, 1, 1], [], []>} : vector<8x576xbf16>, vector<576x128xbf16>, vector<8x128xf32> -> vector<8x128xf32>
    %c0_3 = arith.constant 0 : index
    %c0_4 = arith.constant 0 : index
    %3 = vector.load %arg4[%c0_3, %c0_4] : memref<1x128xf32, #tpu.memory_space<vmem>>, vector<1x128xf32>
    %4 = vector.broadcast %3 : vector<1x128xf32> to vector<8x128xf32>
    %5 = arith.addf %2, %4 : vector<8x128xf32>
    %cst_5 = arith.constant 0.000000e+00 : f32
    %6 = vector.broadcast %cst_5 : f32 to vector<8x128xf32>
    %7 = arith.maximumf %5, %6 : vector<8x128xf32>
    %8 = arith.truncf %7 : vector<8x128xf32> to vector<8x128xbf16>
    %c0_6 = arith.constant 0 : index
    %c0_7 = arith.constant 0 : index
    %9 = vector.load %arg5[%c0_6, %c0_7] : memref<8x128xbf16, #tpu.memory_space<vmem>>, vector<8x128xbf16>
    tpu.vector_store %arg5[%c0_6, %c0_7], %8 {strides = array<i32>} : memref<8x128xbf16, #tpu.memory_space<vmem>>, vector<8x128xbf16>,
    return
  }
  func.func @transform_0(%arg0: i32, %arg1: i32) -> (i32, i32) {
    %c0_i32 = arith.constant 0 : i32
    %c0_i32_0 = arith.constant 0 : i32
    return %arg0, %c0_i32 : i32, i32
  }
  func.func @transform_1(%arg0: i32, %arg1: i32) -> (i32, i32) {
    %c0_i32 = arith.constant 0 : i32
    %c0_i32_0 = arith.constant 0 : i32
    return %c0_i32, %arg1 : i32, i32
  }
  func.func @transform_2(%arg0: i32, %arg1: i32) -> (i32, i32) {
    %c0_i32 = arith.constant 0 : i32
    %c0_i32_0 = arith.constant 0 : i32
    return %c0_i32, %arg1 : i32, i32
  }
  func.func @transform_3(%arg0: i32, %arg1: i32) -> (i32, i32) {
    %c0_i32 = arith.constant 0 : i32
    return %arg0, %arg1 : i32, i32
  }
}

module attributes {stable_mosaic.version = 11 : i64} {
  func.func @_matmul_bias_act_kernel(%arg0: i32, %arg1: i32, %arg2: memref<8x1024xbf16, #tpu.memory_space<vmem>>, %arg3: memref<1024x256xbf16, #tpu.memory_space<vmem>>, %arg4: memref<1x256xf32, #tpu.memory_space<vmem>>, %arg5: memref<8x256xbf16, #tpu.memory_space<vmem>>) attributes {dimension_semantics = [#tpu.dimension_semantics<parallel>, #tpu.dimension_semantics<parallel>], iteration_bounds = array<i64: 1, 2>, scalar_prefetch = 0 : i64, scratch_operands = 0 : i64, tpu.core_type = #tpu.core_type<tc>, window_params = [{transform_indices = @transform_0, window_bounds = array<i64: 8, 1024>}, {transform_indices = @transform_1, window_bounds = array<i64: 1024, 256>}, {transform_indices = @transform_2, window_bounds = array<i64: 1, 256>}, {transform_indices = @transform_3, window_bounds = array<i64: 8, 256>}]} {
    %c0 = arith.constant 0 : index
    %c0_0 = arith.constant 0 : index
    %0 = vector.load %arg2[%c0, %c0_0] : memref<8x1024xbf16, #tpu.memory_space<vmem>>, vector<8x1024xbf16>
    %c0_1 = arith.constant 0 : index
    %c0_2 = arith.constant 0 : index
    %1 = vector.load %arg3[%c0_1, %c0_2] : memref<1024x256xbf16, #tpu.memory_space<vmem>>, vector<1024x256xbf16>
    %cst = arith.constant dense<0.000000e+00> : vector<8x256xf32>
    %2 = tpu.matmul %0, %1, %cst {dimension_numbers = #tpu.dot_dimension_numbers<[1], [0], [0], [1], [0, 0, 1, 1], [], []>} : vector<8x1024xbf16>, vector<1024x256xbf16>, vector<8x256xf32> -> vector<8x256xf32>
    %c0_3 = arith.constant 0 : index
    %c0_4 = arith.constant 0 : index
    %3 = vector.load %arg4[%c0_3, %c0_4] : memref<1x256xf32, #tpu.memory_space<vmem>>, vector<1x256xf32>
    %4 = vector.broadcast %3 : vector<1x256xf32> to vector<8x256xf32>
    %5 = arith.addf %2, %4 : vector<8x256xf32>
    %cst_5 = arith.constant 0.000000e+00 : f32
    %6 = vector.broadcast %cst_5 : f32 to vector<8x256xf32>
    %7 = arith.maximumf %5, %6 : vector<8x256xf32>
    %8 = arith.truncf %7 : vector<8x256xf32> to vector<8x256xbf16>
    %c0_6 = arith.constant 0 : index
    %c0_7 = arith.constant 0 : index
    %9 = vector.load %arg5[%c0_6, %c0_7] : memref<8x256xbf16, #tpu.memory_space<vmem>>, vector<8x256xbf16>
    tpu.vector_store %arg5[%c0_6, %c0_7], %8 {strides = array<i32>} : memref<8x256xbf16, #tpu.memory_space<vmem>>, vector<8x256xbf16>,
    return
  }
  func.func @transform_0(%arg0: i32, %arg1: i32) -> (i32, i32) {
    %c0_i32 = arith.constant 0 : i32
    %c0_i32_0 = arith.constant 0 : i32
    return %arg0, %c0_i32 : i32, i32
  }
  func.func @transform_1(%arg0: i32, %arg1: i32) -> (i32, i32) {
    %c0_i32 = arith.constant 0 : i32
    %c0_i32_0 = arith.constant 0 : i32
    return %c0_i32, %arg1 : i32, i32
  }
  func.func @transform_2(%arg0: i32, %arg1: i32) -> (i32, i32) {
    %c0_i32 = arith.constant 0 : i32
    %c0_i32_0 = arith.constant 0 : i32
    return %c0_i32, %arg1 : i32, i32
  }
  func.func @transform_3(%arg0: i32, %arg1: i32) -> (i32, i32) {
    %c0_i32 = arith.constant 0 : i32
    return %arg0, %arg1 : i32, i32
  }
}

module attributes {stable_mosaic.version = 11 : i64} {
  func.func @_matmul_bias_act_kernel(%arg0: i32, %arg1: i32, %arg2: memref<8x1152xbf16, #tpu.memory_space<vmem>>, %arg3: memref<1152x128xbf16, #tpu.memory_space<vmem>>, %arg4: memref<1x128xf32, #tpu.memory_space<vmem>>, %arg5: memref<8x128xbf16, #tpu.memory_space<vmem>>) attributes {dimension_semantics = [#tpu.dimension_semantics<parallel>, #tpu.dimension_semantics<parallel>], iteration_bounds = array<i64: 1, 2>, scalar_prefetch = 0 : i64, scratch_operands = 0 : i64, tpu.core_type = #tpu.core_type<tc>, window_params = [{transform_indices = @transform_0, window_bounds = array<i64: 8, 1152>}, {transform_indices = @transform_1, window_bounds = array<i64: 1152, 128>}, {transform_indices = @transform_2, window_bounds = array<i64: 1, 128>}, {transform_indices = @transform_3, window_bounds = array<i64: 8, 128>}]} {
    %c0 = arith.constant 0 : index
    %c0_0 = arith.constant 0 : index
    %0 = vector.load %arg2[%c0, %c0_0] : memref<8x1152xbf16, #tpu.memory_space<vmem>>, vector<8x1152xbf16>
    %c0_1 = arith.constant 0 : index
    %c0_2 = arith.constant 0 : index
    %1 = vector.load %arg3[%c0_1, %c0_2] : memref<1152x128xbf16, #tpu.memory_space<vmem>>, vector<1152x128xbf16>
    %cst = arith.constant dense<0.000000e+00> : vector<8x128xf32>
    %2 = tpu.matmul %0, %1, %cst {dimension_numbers = #tpu.dot_dimension_numbers<[1], [0], [0], [1], [0, 0, 1, 1], [], []>} : vector<8x1152xbf16>, vector<1152x128xbf16>, vector<8x128xf32> -> vector<8x128xf32>
    %c0_3 = arith.constant 0 : index
    %c0_4 = arith.constant 0 : index
    %3 = vector.load %arg4[%c0_3, %c0_4] : memref<1x128xf32, #tpu.memory_space<vmem>>, vector<1x128xf32>
    %4 = vector.broadcast %3 : vector<1x128xf32> to vector<8x128xf32>
    %5 = arith.addf %2, %4 : vector<8x128xf32>
    %cst_5 = arith.constant 0.000000e+00 : f32
    %6 = vector.broadcast %cst_5 : f32 to vector<8x128xf32>
    %7 = arith.maximumf %5, %6 : vector<8x128xf32>
    %8 = arith.truncf %7 : vector<8x128xf32> to vector<8x128xbf16>
    %c0_6 = arith.constant 0 : index
    %c0_7 = arith.constant 0 : index
    %9 = vector.load %arg5[%c0_6, %c0_7] : memref<8x128xbf16, #tpu.memory_space<vmem>>, vector<8x128xbf16>
    tpu.vector_store %arg5[%c0_6, %c0_7], %8 {strides = array<i32>} : memref<8x128xbf16, #tpu.memory_space<vmem>>, vector<8x128xbf16>,
    return
  }
  func.func @transform_0(%arg0: i32, %arg1: i32) -> (i32, i32) {
    %c0_i32 = arith.constant 0 : i32
    %c0_i32_0 = arith.constant 0 : i32
    return %arg0, %c0_i32 : i32, i32
  }
  func.func @transform_1(%arg0: i32, %arg1: i32) -> (i32, i32) {
    %c0_i32 = arith.constant 0 : i32
    %c0_i32_0 = arith.constant 0 : i32
    return %c0_i32, %arg1 : i32, i32
  }
  func.func @transform_2(%arg0: i32, %arg1: i32) -> (i32, i32) {
    %c0_i32 = arith.constant 0 : i32
    %c0_i32_0 = arith.constant 0 : i32
    return %c0_i32, %arg1 : i32, i32
  }
  func.func @transform_3(%arg0: i32, %arg1: i32) -> (i32, i32) {
    %c0_i32 = arith.constant 0 : i32
    return %arg0, %arg1 : i32, i32
  }
}

module attributes {stable_mosaic.version = 11 : i64} {
  func.func @_matmul_bias_act_kernel(%arg0: i32, %arg1: i32, %arg2: memref<8x512xbf16, #tpu.memory_space<vmem>>, %arg3: memref<512x128xbf16, #tpu.memory_space<vmem>>, %arg4: memref<1x128xf32, #tpu.memory_space<vmem>>, %arg5: memref<8x128xbf16, #tpu.memory_space<vmem>>) attributes {dimension_semantics = [#tpu.dimension_semantics<parallel>, #tpu.dimension_semantics<parallel>], iteration_bounds = array<i64: 1, 2>, scalar_prefetch = 0 : i64, scratch_operands = 0 : i64, tpu.core_type = #tpu.core_type<tc>, window_params = [{transform_indices = @transform_0, window_bounds = array<i64: 8, 512>}, {transform_indices = @transform_1, window_bounds = array<i64: 512, 128>}, {transform_indices = @transform_2, window_bounds = array<i64: 1, 128>}, {transform_indices = @transform_3, window_bounds = array<i64: 8, 128>}]} {
    %c0 = arith.constant 0 : index
    %c0_0 = arith.constant 0 : index
    %0 = vector.load %arg2[%c0, %c0_0] : memref<8x512xbf16, #tpu.memory_space<vmem>>, vector<8x512xbf16>
    %c0_1 = arith.constant 0 : index
    %c0_2 = arith.constant 0 : index
    %1 = vector.load %arg3[%c0_1, %c0_2] : memref<512x128xbf16, #tpu.memory_space<vmem>>, vector<512x128xbf16>
    %cst = arith.constant dense<0.000000e+00> : vector<8x128xf32>
    %2 = tpu.matmul %0, %1, %cst {dimension_numbers = #tpu.dot_dimension_numbers<[1], [0], [0], [1], [0, 0, 1, 1], [], []>} : vector<8x512xbf16>, vector<512x128xbf16>, vector<8x128xf32> -> vector<8x128xf32>
    %c0_3 = arith.constant 0 : index
    %c0_4 = arith.constant 0 : index
    %3 = vector.load %arg4[%c0_3, %c0_4] : memref<1x128xf32, #tpu.memory_space<vmem>>, vector<1x128xf32>
    %4 = vector.broadcast %3 : vector<1x128xf32> to vector<8x128xf32>
    %5 = arith.addf %2, %4 : vector<8x128xf32>
    %cst_5 = arith.constant 0.000000e+00 : f32
    %6 = vector.broadcast %cst_5 : f32 to vector<8x128xf32>
    %7 = arith.maximumf %5, %6 : vector<8x128xf32>
    %8 = arith.truncf %7 : vector<8x128xf32> to vector<8x128xbf16>
    %c0_6 = arith.constant 0 : index
    %c0_7 = arith.constant 0 : index
    %9 = vector.load %arg5[%c0_6, %c0_7] : memref<8x128xbf16, #tpu.memory_space<vmem>>, vector<8x128xbf16>
    tpu.vector_store %arg5[%c0_6, %c0_7], %8 {strides = array<i32>} : memref<8x128xbf16, #tpu.memory_space<vmem>>, vector<8x128xbf16>,
    return
  }
  func.func @transform_0(%arg0: i32, %arg1: i32) -> (i32, i32) {
    %c0_i32 = arith.constant 0 : i32
    %c0_i32_0 = arith.constant 0 : i32
    return %arg0, %c0_i32 : i32, i32
  }
  func.func @transform_1(%arg0: i32, %arg1: i32) -> (i32, i32) {
    %c0_i32 = arith.constant 0 : i32
    %c0_i32_0 = arith.constant 0 : i32
    return %c0_i32, %arg1 : i32, i32
  }
  func.func @transform_2(%arg0: i32, %arg1: i32) -> (i32, i32) {
    %c0_i32 = arith.constant 0 : i32
    %c0_i32_0 = arith.constant 0 : i32
    return %c0_i32, %arg1 : i32, i32
  }
  func.func @transform_3(%arg0: i32, %arg1: i32) -> (i32, i32) {
    %c0_i32 = arith.constant 0 : i32
    return %arg0, %arg1 : i32, i32
  }
}

module attributes {stable_mosaic.version = 11 : i64} {
  func.func @_matmul_bias_act_kernel(%arg0: i32, %arg1: i32, %arg2: memref<16x256xbf16, #tpu.memory_space<vmem>>, %arg3: memref<256x128xbf16, #tpu.memory_space<vmem>>, %arg4: memref<1x128xf32, #tpu.memory_space<vmem>>, %arg5: memref<16x128xbf16, #tpu.memory_space<vmem>>) attributes {dimension_semantics = [#tpu.dimension_semantics<parallel>, #tpu.dimension_semantics<parallel>], iteration_bounds = array<i64: 2, 1>, scalar_prefetch = 0 : i64, scratch_operands = 0 : i64, tpu.core_type = #tpu.core_type<tc>, window_params = [{transform_indices = @transform_0, window_bounds = array<i64: 16, 256>}, {transform_indices = @transform_1, window_bounds = array<i64: 256, 128>}, {transform_indices = @transform_2, window_bounds = array<i64: 1, 128>}, {transform_indices = @transform_3, window_bounds = array<i64: 16, 128>}]} {
    %c0 = arith.constant 0 : index
    %c0_0 = arith.constant 0 : index
    %0 = vector.load %arg2[%c0, %c0_0] : memref<16x256xbf16, #tpu.memory_space<vmem>>, vector<16x256xbf16>
    %c0_1 = arith.constant 0 : index
    %c0_2 = arith.constant 0 : index
    %1 = vector.load %arg3[%c0_1, %c0_2] : memref<256x128xbf16, #tpu.memory_space<vmem>>, vector<256x128xbf16>
    %cst = arith.constant dense<0.000000e+00> : vector<16x128xf32>
    %2 = tpu.matmul %0, %1, %cst {dimension_numbers = #tpu.dot_dimension_numbers<[1], [0], [0], [1], [0, 0, 1, 1], [], []>} : vector<16x256xbf16>, vector<256x128xbf16>, vector<16x128xf32> -> vector<16x128xf32>
    %c0_3 = arith.constant 0 : index
    %c0_4 = arith.constant 0 : index
    %3 = vector.load %arg4[%c0_3, %c0_4] : memref<1x128xf32, #tpu.memory_space<vmem>>, vector<1x128xf32>
    %4 = vector.broadcast %3 : vector<1x128xf32> to vector<16x128xf32>
    %5 = arith.addf %2, %4 : vector<16x128xf32>
    %cst_5 = arith.constant 0.000000e+00 : f32
    %6 = vector.broadcast %cst_5 : f32 to vector<16x128xf32>
    %7 = arith.maximumf %5, %6 : vector<16x128xf32>
    %8 = arith.truncf %7 : vector<16x128xf32> to vector<16x128xbf16>
    %c0_6 = arith.constant 0 : index
    %c0_7 = arith.constant 0 : index
    %9 = vector.load %arg5[%c0_6, %c0_7] : memref<16x128xbf16, #tpu.memory_space<vmem>>, vector<16x128xbf16>
    tpu.vector_store %arg5[%c0_6, %c0_7], %8 {strides = array<i32>} : memref<16x128xbf16, #tpu.memory_space<vmem>>, vector<16x128xbf16>,
    return
  }
  func.func @transform_0(%arg0: i32, %arg1: i32) -> (i32, i32) {
    %c0_i32 = arith.constant 0 : i32
    %c0_i32_0 = arith.constant 0 : i32
    return %arg0, %c0_i32 : i32, i32
  }
  func.func @transform_1(%arg0: i32, %arg1: i32) -> (i32, i32) {
    %c0_i32 = arith.constant 0 : i32
    %c0_i32_0 = arith.constant 0 : i32
    return %c0_i32, %arg1 : i32, i32
  }
  func.func @transform_2(%arg0: i32, %arg1: i32) -> (i32, i32) {
    %c0_i32 = arith.constant 0 : i32
    %c0_i32_0 = arith.constant 0 : i32
    return %c0_i32, %arg1 : i32, i32
  }
  func.func @transform_3(%arg0: i32, %arg1: i32) -> (i32, i32) {
    %c0_i32 = arith.constant 0 : i32
    return %arg0, %arg1 : i32, i32
  }
}

module attributes {stable_mosaic.version = 11 : i64} {
  func.func @_matmul_bias_act_kernel(%arg0: i32, %arg1: i32, %arg2: memref<64x128xbf16, #tpu.memory_space<vmem>>, %arg3: memref<128x128xbf16, #tpu.memory_space<vmem>>, %arg4: memref<1x128xf32, #tpu.memory_space<vmem>>, %arg5: memref<64x128xf32, #tpu.memory_space<vmem>>) attributes {dimension_semantics = [#tpu.dimension_semantics<parallel>, #tpu.dimension_semantics<parallel>], iteration_bounds = array<i64: 2, 1>, scalar_prefetch = 0 : i64, scratch_operands = 0 : i64, tpu.core_type = #tpu.core_type<tc>, window_params = [{transform_indices = @transform_0, window_bounds = array<i64: 64, 128>}, {transform_indices = @transform_1, window_bounds = array<i64: 128, 128>}, {transform_indices = @transform_2, window_bounds = array<i64: 1, 128>}, {transform_indices = @transform_3, window_bounds = array<i64: 64, 128>}]} {
    %c0 = arith.constant 0 : index
    %c0_0 = arith.constant 0 : index
    %0 = vector.load %arg2[%c0, %c0_0] : memref<64x128xbf16, #tpu.memory_space<vmem>>, vector<64x128xbf16>
    %c0_1 = arith.constant 0 : index
    %c0_2 = arith.constant 0 : index
    %1 = vector.load %arg3[%c0_1, %c0_2] : memref<128x128xbf16, #tpu.memory_space<vmem>>, vector<128x128xbf16>
    %cst = arith.constant dense<0.000000e+00> : vector<64x128xf32>
    %2 = tpu.matmul %0, %1, %cst {dimension_numbers = #tpu.dot_dimension_numbers<[1], [0], [0], [1], [0, 0, 1, 1], [], []>} : vector<64x128xbf16>, vector<128x128xbf16>, vector<64x128xf32> -> vector<64x128xf32>
    %c0_3 = arith.constant 0 : index
    %c0_4 = arith.constant 0 : index
    %3 = vector.load %arg4[%c0_3, %c0_4] : memref<1x128xf32, #tpu.memory_space<vmem>>, vector<1x128xf32>
    %4 = vector.broadcast %3 : vector<1x128xf32> to vector<64x128xf32>
    %5 = arith.addf %2, %4 : vector<64x128xf32>
    %6 = arith.negf %5 : vector<64x128xf32>
    %7 = math.exp %6 : vector<64x128xf32>
    %cst_5 = arith.constant 1.000000e+00 : f32
    %8 = vector.broadcast %cst_5 : f32 to vector<64x128xf32>
    %9 = arith.addf %8, %7 : vector<64x128xf32>
    %10 = arith.divf %8, %9 : vector<64x128xf32>
    %c0_6 = arith.constant 0 : index
    %c0_7 = arith.constant 0 : index
    %11 = vector.load %arg5[%c0_6, %c0_7] : memref<64x128xf32, #tpu.memory_space<vmem>>, vector<64x128xf32>
    tpu.vector_store %arg5[%c0_6, %c0_7], %10 {strides = array<i32>} : memref<64x128xf32, #tpu.memory_space<vmem>>, vector<64x128xf32>,
    return
  }
  func.func @transform_0(%arg0: i32, %arg1: i32) -> (i32, i32) {
    %c0_i32 = arith.constant 0 : i32
    %c0_i32_0 = arith.constant 0 : i32
    return %arg0, %c0_i32 : i32, i32
  }
  func.func @transform_1(%arg0: i32, %arg1: i32) -> (i32, i32) {
    %c0_i32 = arith.constant 0 : i32
    %c0_i32_0 = arith.constant 0 : i32
    return %c0_i32, %arg1 : i32, i32
  }
  func.func @transform_2(%arg0: i32, %arg1: i32) -> (i32, i32) {
    %c0_i32 = arith.constant 0 : i32
    %c0_i32_0 = arith.constant 0 : i32
    return %c0_i32, %arg1 : i32, i32
  }
  func.func @transform_3(%arg0: i32, %arg1: i32) -> (i32, i32) {
    %c0_i32 = arith.constant 0 : i32
    return %arg0, %arg1 : i32, i32
  }
}

</mosaic_0001>

<bundles_post_ra>
// kernel: anomaly_autoencoder_forward.8
= control target key start
LH: loop header
LB: loop body
LE: loop exit
PB: predicated region body
PF: predicated region fallthrough
CT: control target
= control target key end

     0   :  { %s672_s12 = smov 0   ;;  %s674_s13 = smov 0   ;;  %s721_s0 = inlined_call_operand.vmem [shape: bf16[128,27], index: 0, kind: input, shape index: {}]   ;;  %s722_s1 = inlined_call_operand.vmem [shape: bf16[27,128], index: 1, kind: input, shape index: {}]   ;;  %s723_s2 = inlined_call_operand.vmem [shape: f32[1,128], index: 2, kind: input, shape index: {}]   ;;  %s724_s3 = inlined_call_operand.vmem [shape: bf16[128,128], index: 3, kind: output, shape index: {}]  }
   0x1   :  { %s676_s14 = smov 0  }
   0x2 LB: > { %s25_s15 = sadd.s32 1, %s645_s13  ;;  %p517_p0 = scmp.ge.s32.totalorder %s649_s14, 1  ;;  %s649_s14 = sphi %s676_s14, %s13_s14   ;;  %s645_s13 = sphi %s674_s13, %s726_s13   ;;  %s641_s12 = sphi %s672_s12, %s725_s12  }
   0x3   : > { %p27_p1 = scmp.ge.s32.totalorder %s25_s15, 2  ;;  %p169_p2 = scmp.lt.s32.totalorder %s649_s14, 3 }
   0x5   : > { %s728_s15 = smov (%p27_p1, %s25_s15), 0  ;;  %p170_p3 = pnand %p517_p0, %p169_p2 }
   0x6   : > { %v621_v0 = vld [vmem:[%s722_s1] sm:$0xff] (!%p170_p3)   ;;  %vm289_vm0 = vcmask (!%p170_p3), 1044480   ;;  %v622_v1 = vld [vmem:[%s722_s1 + $0x8] sm:$0x3f] (!%p170_p3)   ;;  %vm290_vm1 = vcmask (!%p170_p3), 1045504   ;;  %s518_s20 = sshll.u32 (!%p170_p3), %s641_s12, 3 }
   0x7   : > { %173 = sbr.rel (%p170_p3) target bundleno = 241 (0xf1), region = 32  ;;  %580 = vmatprep.subr.bf16.mxu0 (!%p170_p3), %v621_v0  ;;  %592 = vmatprep.subr.bf16.mxu1 (!%p170_p3), %v621_v0  ;;  %v651_v2 = vmov (!%p170_p3), 65535   ;;  %p204_p4 = scmp.lt.s32.totalorder (!%p170_p3), %s518_s20, 15  ;;  %vm276_vm2 = vcmask (!%p170_p3), 220160   ;;  %v522_v10 = vld [vmem:[%s723_s2] ss:$0 sm:$0xff] (!%p170_p3) }
   0x8   : > { %581 = vmatpush3.bf16.msra.mxu0 (!%p170_p3), %v621_v0  ;;  %594 = vmatpush3.bf16.msra.mxu1 (!%p170_p3), %v621_v0  ;;  %v291_v3 = vsel (!%p170_p3), %vm289_vm0, 4294967295, %v651_v2 }
   0x9   : > { %v292_v4 = vsel (!%p170_p3), %vm290_vm1, %v291_v3, 0 }
   0xa   : > { %v294_v5 = vand.u32 (!%p170_p3), %v622_v1, %v292_v4 }
   0xc   : > { %582 = vmatprep.subr.bf16.mxu0 (!%p170_p3), %v294_v5  ;;  %593 = vmatprep.subr.bf16.mxu1 (!%p170_p3), %v294_v5 }
   0xd   : > { %583 = vmatpush3.bf16.msra.mxu0 (!%p170_p3), %v294_v5  ;;  %595 = vmatpush3.bf16.msra.mxu1 (!%p170_p3), %v294_v5 }
   0xe   : > { %s730_s20 = smov (!%p204_p4, %s518_s20), 15 }
   0xf   : > { %s519_s21 = sshll.u32 %s730_s20, 2 }
  0x10   : > { %s207_s24 = scalar_lea.vmem %s721_s0, %s519_s21  ;;  %s223_s29 = scalar_lea.vmem %s724_s3, %s519_s21 }
  0x11   : > { %v623_v6 = vld [vmem:[%s207_s24] sm:$0xff]   ;;  %v624_v7 = vld [vmem:[%s207_s24 + $0x10] sm:$0xff]   ;;  %v625_v8 = vld [vmem:[%s207_s24 + $0x8] sm:$0xff]  }
  0x12   : > { %584 = vmatprep.mubr.msk.bf16.mxu0 %vm276_vm2, %v623_v6  ;;  %588 = vmatprep.mubr.msk.bf16.mxu1 %vm276_vm2, %v624_v7  ;;  %v626_v9 = vld [vmem:[%s207_s24 + $0x18] sm:$0xff]  }
  0x13   : > { %585 = vmatmul.mubr.msk.bf16.vlgmr.msra.gmra.mrb[0].mxu0 %vm276_vm2, %v625_v8  ;;  %589 = vmatmul.mubr.msk.bf16.vlgmr.msra.gmra.mrb[0].mxu1 %vm276_vm2, %v626_v9 }
  0xe6   : > { %v586_v11 = vpop.f32.mrb[0].mxu0  ;;  %v590_v13 = vpop.f32.mrb[0].mxu1 }
  0xe7   : > { %v339_v12 = vadd.f32 %v586_v11, %v522_v10  ;;  %v330_v14 = vpop.f32.mrb[1].mxu0  ;;  %v355_v15 = vadd.f32 %v590_v13, %v522_v10  ;;  %v346_v17 = vpop.f32.mrb[1].mxu1 }
  0xe8   : > { %v331_v16 = vadd.f32 %v522_v10, %v330_v14  ;;  %v587_v18 = vpop.f32.mrb[2].mxu0  ;;  %v347_v19 = vadd.f32 %v522_v10, %v346_v17  ;;  %v591_v21 = vpop.f32.mrb[2].mxu1 }
  0xe9   : > { %v342_v20 = vadd.f32 %v587_v18, %v522_v10  ;;  %v333_v22 = vpop.f32.mrb[3].mxu0  ;;  %v358_v23 = vadd.f32 %v591_v21, %v522_v10  ;;  %v349_v25 = vpop.f32.mrb[3].mxu1  ;;  %v363_v26 = vmax.f32 %v339_v12, 0.0  ;;  %v367_v29 = vmax.f32 %v355_v15, 0.0 }
  0xea   : > { %v334_v24 = vadd.f32 %v522_v10, %v333_v22  ;;  %v350_v28 = vadd.f32 %v522_v10, %v349_v25  ;;  %v361_v30 = vmax.f32 %v331_v16, 0.0  ;;  %v365_v33 = vmax.f32 %v347_v19, 0.0 }
  0xeb   : > { %v364_v27 = vmax.f32 %v342_v20, 0.0  ;;  %v368_v31 = vmax.f32 %v358_v23, 0.0 }
  0xec   : > { %v362_v32 = vmax.f32 %v334_v24, 0.0  ;;  %v366_v35 = vmax.f32 %v350_v28, 0.0 }
  0xed   : > { %v559_v34 = vpack.c.bf16 %v364_v27, %v363_v26  ;;  %v569_v36 = vpack.c.bf16 %v368_v31, %v367_v29 }
  0xee   : > { %v554_v37 = vpack.c.bf16 %v362_v32, %v361_v30  ;;  %v564_v38 = vpack.c.bf16 %v366_v35, %v365_v33 }
  0xef   : > { %571 = vst [vmem:[%s223_s29 + $0x8] sm:$0xff] %v559_v34   ;;  %573 = vst [vmem:[%s223_s29 + $0x18] sm:$0xff] %v569_v36  }
  0xf0   : > { %555 = vst [vmem:[%s223_s29] sm:$0xff] %v554_v37   ;;  %572 = vst [vmem:[%s223_s29 + $0x10] sm:$0xff] %v564_v38  }
  0xf1 PF: > { %s13_s14 = sadd.s32 1, %s649_s14   ;;  %s725_s12 = smov %s645_s13 }
  0xf2   : > { %p10_p5 = scmp.ge.s32.totalorder %s13_s14, 4   ;;  %s726_s13 = smov %s728_s15 }
  0xf4   :  { %12 = sbr.rel (!%p10_p5) target bundleno = 2 (0x2), region = 68 }

// kernel: anomaly_autoencoder_forward.9
= control target key start
LH: loop header
LB: loop body
LE: loop exit
PB: predicated region body
PF: predicated region fallthrough
CT: control target
= control target key end

     0   :  { %s772_s12 = smov 0   ;;  %s774_s13 = smov 0   ;;  %s866_s0 = inlined_call_operand.vmem [shape: bf16[32,288], index: 0, kind: input, shape index: {}]   ;;  %s867_s1 = inlined_call_operand.vmem [shape: bf16[288,128], index: 1, kind: input, shape index: {}]   ;;  %s868_s2 = inlined_call_operand.vmem [shape: f32[1,128], index: 2, kind: input, shape index: {}]   ;;  %s869_s3 = inlined_call_operand.vmem [shape: bf16[32,128], index: 3, kind: output, shape index: {}]  }
   0x1   :  { %s776_s14 = smov 0  }
   0x2 LB: > { %s25_s15 = sadd.s32 1, %s744_s13  ;;  %p605_p0 = scmp.ge.s32.totalorder %s748_s14, 1  ;;  %s748_s14 = sphi %s776_s14, %s13_s14   ;;  %s744_s13 = sphi %s774_s13, %s871_s13   ;;  %s740_s12 = sphi %s772_s12, %s870_s12  }
   0x3   : > { %p27_p1 = scmp.ge.s32.totalorder %s25_s15, 2  ;;  %p170_p2 = scmp.lt.s32.totalorder %s748_s14, 3 }
   0x5   : > { %s873_s15 = smov (%p27_p1, %s25_s15), 0  ;;  %p171_p3 = pnand %p605_p0, %p170_p2 }
   0x6   : > { %v704_v0 = vld [vmem:[%s867_s1 + $0x40] sm:$0xff] (!%p171_p3)   ;;  %v750_v2 = vmov (!%p171_p3), 0.0   ;;  %s606_s20 = sshll.u32 (!%p171_p3), %s740_s12, 1  ;;  %v706_v3 = vld [vmem:[%s867_s1 + $0x48] sm:$0xff] (!%p171_p3)   ;;  %v708_v5 = vld [vmem:[%s867_s1 + $0x50] sm:$0xff] (!%p171_p3)   ;;  %vm751_vm0 = vmmov (!%p171_p3), 0  }
   0x7   : > { %174 = sbr.rel (%p171_p3) target bundleno = 265 (0x109), region = 32  ;;  %v705_v1 = vld [vmem:[%s867_s1] sm:$0xff] (!%p171_p3)   ;;  %669 = vmatprep.subr.bf16.mxu1 (!%p171_p3), %v750_v2  ;;  %644 = vmatprep.subr.bf16.mxu0 (!%p171_p3), %v704_v0  ;;  %p206_p4 = scmp.lt.s32.totalorder (!%p171_p3), %s606_s20, 3  ;;  %v707_v4 = vld [vmem:[%s867_s1 + $0x8] sm:$0xff] (!%p171_p3)   ;;  %v709_v6 = vld [vmem:[%s867_s1 + $0x10] sm:$0xff] (!%p171_p3)   ;;  %vm399_vm1 = vcmask (!%p171_p3), 261120  }
   0x8   : > { %645 = vmatpush3.bf16.msra.mxu0 (!%p171_p3), %v705_v1  ;;  %673 = vmatprep.mubr.msk.bf16.mxu1 (!%p171_p3), %vm751_vm0, %v750_v2  ;;  %v710_v7 = vld [vmem:[%s867_s1 + $0x58] sm:$0xff] (!%p171_p3)   ;;  %v712_v9 = vld [vmem:[%s867_s1 + $0x60] sm:$0xff] (!%p171_p3)   ;;  %v714_v12 = vld [vmem:[%s867_s1 + $0x68] sm:$0xff] (!%p171_p3)  }
   0x9   : > { %646 = vmatprep.subr.bf16.mxu0 (!%p171_p3), %v706_v3  ;;  %v711_v8 = vld [vmem:[%s867_s1 + $0x18] sm:$0xff] (!%p171_p3)   ;;  %v718_v10 = vld [vmem:[%s867_s1 + $0x80] sm:$0xff] (!%p171_p3)   ;;  %v715_v13 = vld [vmem:[%s867_s1 + $0x28] sm:$0xff] (!%p171_p3)  }
   0xa   : > { %v713_v11 = vld [vmem:[%s867_s1 + $0x20] sm:$0xff] (!%p171_p3)   ;;  %670 = vmatpush3.bf16.msra.mxu1 (!%p171_p3), %v718_v10  ;;  %v724_v15 = vld [vmem:[%s867_s1 + $0x88] sm:$0xff] (!%p171_p3)   ;;  %v716_v16 = vld [vmem:[%s867_s1 + $0x70] sm:$0xff] (!%p171_p3)  }
   0xb   : > { %671 = vmatprep.subr.bf16.mxu1 (!%p171_p3), %v750_v2  ;;  %v717_v18 = vld [vmem:[%s867_s1 + $0x30] sm:$0xff] (!%p171_p3)   ;;  %v719_v19 = vld [vmem:[%s867_s1 + $0x78] sm:$0xff] (!%p171_p3)   ;;  %v610_v28 = vld [vmem:[%s868_s2] ss:$0 sm:$0xff] (!%p171_p3) }
   0xc   : > { %647 = vmatpush3.bf16.msra.mxu0 (!%p171_p3), %v707_v4  ;;  %v720_v20 = vld [vmem:[%s867_s1 + $0x38] sm:$0xff] (!%p171_p3)  }
   0xd   : > { %648 = vmatprep.subr.bf16.mxu0 (!%p171_p3), %v708_v5 }
   0xe   : > { %s875_s20 = smov (!%p206_p4, %s606_s20), 3  ;;  %672 = vmatpush3.bf16.msra.mxu1 %v724_v15 }
   0xf   : > { %s677_s6 = smul.u32 12, %s875_s20  ;;  %s609_s9 = sshll.u32 %s875_s20, 2 }
  0x10   : > { %649 = vmatpush3.bf16.msra.mxu0 %v709_v6  ;;  %s226_s12 = scalar_lea.vmem %s869_s3, %s609_s9 }
  0x11   : > { %650 = vmatprep.subr.bf16.mxu0 %v710_v7  ;;  %s210_s18 = scalar_lea.vmem %s866_s0, %s677_s6 }
  0x12   : > { %v723_v14 = vld [vmem:[%s210_s18 + $0x4] ss:$12 sps:$4 sm:$0xff]   ;;  %v725_v17 = vld [vmem:[%s210_s18 + $0x8] ss:$12 sps:$4 sm:$0xff]   ;;  %v721_v21 = vld [vmem:[%s210_s18] ss:$12 sps:$4 sm:$0xff]  }
  0x13   : > { %435 = vmatprep.mubr.bf16.mxu0 %v723_v14  ;;  %674 = vmatmul.mubr.msk.bf16.vlgmr.msra.gmra.mrb[0].mxu1 %vm399_vm1, %v725_v17 }
  0x14   : > { %651 = vmatpush3.bf16.msra.mxu0 %v711_v8 }
  0x15   : > { %652 = vmatprep.subr.bf16.mxu0 %v712_v9 }
  0x18   : > { %653 = vmatpush3.bf16.msra.mxu0 %v713_v11 }
  0x19   : > { %654 = vmatprep.subr.bf16.mxu0 %v714_v12 }
  0x1c   : > { %655 = vmatpush3.bf16.msra.mxu0 %v715_v13 }
  0x1d   : > { %656 = vmatprep.subr.bf16.mxu0 %v716_v16 }
  0x20   : > { %657 = vmatpush3.bf16.msra.mxu0 %v717_v18 }
  0x21   : > { %658 = vmatprep.subr.bf16.mxu0 %v719_v19 }
  0x24   : > { %659 = vmatpush3.bf16.msra.mxu0 %v720_v20 }
  0x27   : > { %436 = vmatmul.mubr.bf16.vlgmr.msra.gmra.mrb[0].mxu0 %v721_v21 }
  0xe6   : > { %v478_v22 = vpop.f32.mrb[0].mxu1 }
  0xe7   : > { %v675_v23 = vpop.f32.mrb[1].mxu1 }
  0xe8   : > { %v481_v24 = vpop.f32.mrb[2].mxu1 }
  0xe9   : > { %v676_v25 = vpop.f32.mrb[3].mxu1 }
  0xfa   : > { %v660_v26 = vpop.f32.mrb[0].mxu0 }
  0xfb   : > { %v661_v27 = vpop.f32.mrb[1].mxu0 }
  0xfc   : > { %v662_v29 = vadd.f32 %v661_v27, %v660_v26  ;;  %v663_v30 = vpop.f32.mrb[2].mxu0 }
  0xfd   : > { %v664_v31 = vpop.f32.mrb[3].mxu0 }
  0xfe   : > { %v438_v32 = vadd.f32 %v662_v29, %v610_v28  ;;  %v665_v33 = vadd.f32 %v664_v31, %v663_v30 }
 0x100   : > { %v479_v34 = vadd.f32 %v478_v22, %v438_v32  ;;  %v441_v35 = vadd.f32 %v665_v33, %v610_v28 }
 0x102   : > { %v482_v36 = vadd.f32 %v481_v24, %v441_v35  ;;  %v485_v37 = vmax.f32 %v479_v34, 0.0 }
 0x104   : > { %v486_v38 = vmax.f32 %v482_v36, 0.0 }
 0x106   : > { %v642_v39 = vpack.c.bf16 %v486_v38, %v485_v37 }
 0x108   : > { %643 = vst [vmem:[%s226_s12] sm:$0xff] %v642_v39  }
 0x109 PF: > { %s13_s14 = sadd.s32 1, %s748_s14   ;;  %s870_s12 = smov %s744_s13 }
 0x10a   : > { %p10_p5 = scmp.ge.s32.totalorder %s13_s14, 4   ;;  %s871_s13 = smov %s873_s15 }
 0x10c   :  { %12 = sbr.rel (!%p10_p5) target bundleno = 2 (0x2), region = 68 }

// kernel: anomaly_autoencoder_forward.10
= control target key start
LH: loop header
LB: loop body
LE: loop exit
PB: predicated region body
PF: predicated region fallthrough
CT: control target
= control target key end

     0   :  { %v608_v35 = vmov 0.0   ;;  %vm609_vm0 = vmmov 0   ;;  %vm330_vm1 = vcmask 523264   ;;  %s753_s1 = inlined_call_operand.vmem [shape: bf16[576,128], index: 1, kind: input, shape index: {}]   ;;  %s754_s0 = inlined_call_operand.vmem [shape: bf16[8,576], index: 0, kind: input, shape index: {}]   ;;  %s755_s2 = inlined_call_operand.vmem [shape: f32[1,128], index: 2, kind: input, shape index: {}]   ;;  %s756_s3 = inlined_call_operand.vmem [shape: bf16[8,128], index: 3, kind: output, shape index: {}]  }
   0x1   :  { %v567_v0 = vld [vmem:[%s753_s1 + $0x40] sm:$0xff]   ;;  %v571_v4 = vld [vmem:[%s753_s1 + $0x48] sm:$0xff]   ;;  %v575_v8 = vld [vmem:[%s753_s1 + $0x50] sm:$0xff]  }
   0x2   :  { %v568_v1 = vld [vmem:[%s753_s1] sm:$0xff]   ;;  %504 = vmatprep.subr.bf16.mxu0 %v567_v0  ;;  %v572_v5 = vld [vmem:[%s753_s1 + $0x8] sm:$0xff]   ;;  %v576_v9 = vld [vmem:[%s753_s1 + $0x10] sm:$0xff]  }
   0x3   :  { %v569_v2 = vld [vmem:[%s753_s1 + $0xc0] sm:$0xff]   ;;  %505 = vmatpush3.bf16.msra.mxu0 %v568_v1  ;;  %v573_v6 = vld [vmem:[%s753_s1 + $0xc8] sm:$0xff]   ;;  %v577_v10 = vld [vmem:[%s753_s1 + $0xd0] sm:$0xff]  }
   0x4   :  { %v570_v3 = vld [vmem:[%s753_s1 + $0x80] sm:$0xff]   ;;  %526 = vmatprep.subr.bf16.mxu1 %v569_v2  ;;  %506 = vmatprep.subr.bf16.mxu0 %v571_v4  ;;  %v574_v7 = vld [vmem:[%s753_s1 + $0x88] sm:$0xff]   ;;  %v578_v11 = vld [vmem:[%s753_s1 + $0x90] sm:$0xff]  }
   0x5   :  { %527 = vmatpush3.bf16.msra.mxu1 %v570_v3  ;;  %v579_v12 = vld [vmem:[%s753_s1 + $0x58] sm:$0xff]   ;;  %v583_v16 = vld [vmem:[%s753_s1 + $0x60] sm:$0xff]   ;;  %v587_v20 = vld [vmem:[%s753_s1 + $0x68] sm:$0xff]  }
   0x6   :  { %528 = vmatprep.subr.bf16.mxu1 %v573_v6  ;;  %v580_v13 = vld [vmem:[%s753_s1 + $0x18] sm:$0xff]   ;;  %v584_v17 = vld [vmem:[%s753_s1 + $0x20] sm:$0xff]   ;;  %v588_v21 = vld [vmem:[%s753_s1 + $0x28] sm:$0xff]  }
   0x7   :  { %507 = vmatpush3.bf16.msra.mxu0 %v572_v5  ;;  %v581_v14 = vld [vmem:[%s753_s1 + $0xd8] sm:$0xff]   ;;  %v585_v18 = vld [vmem:[%s753_s1 + $0xe0] sm:$0xff]   ;;  %v589_v22 = vld [vmem:[%s753_s1 + $0xe8] sm:$0xff]  }
   0x8   :  { %508 = vmatprep.subr.bf16.mxu0 %v575_v8  ;;  %v582_v15 = vld [vmem:[%s753_s1 + $0x98] sm:$0xff]   ;;  %v586_v19 = vld [vmem:[%s753_s1 + $0xa0] sm:$0xff]   ;;  %v590_v23 = vld [vmem:[%s753_s1 + $0xa8] sm:$0xff]  }
   0x9   :  { %529 = vmatpush3.bf16.msra.mxu1 %v574_v7  ;;  %v591_v24 = vld [vmem:[%s753_s1 + $0x70] sm:$0xff]   ;;  %v595_v28 = vld [vmem:[%s753_s1 + $0x78] sm:$0xff]   ;;  %v15_v31 = vld [vmem:[%s754_s0] sm:$0xff] }
   0xa   :  { %530 = vmatprep.subr.bf16.mxu1 %v577_v10  ;;  %v592_v25 = vld [vmem:[%s753_s1 + $0x30] sm:$0xff]   ;;  %v596_v29 = vld [vmem:[%s753_s1 + $0x38] sm:$0xff]   ;;  %v462_v32 = vcombine.low %v15_v31, %v15_v31  ;;  %v463_v33 = vcombine.high %v15_v31, %v15_v31  ;;  %v16_v36 = vld [vmem:[%s754_s0 + $0x8] sm:$0xff] }
   0xb   :  { %509 = vmatpush3.bf16.msra.mxu0 %v576_v9  ;;  %v593_v26 = vld [vmem:[%s753_s1 + $0xf0] sm:$0xff]   ;;  %v597_v30 = vld [vmem:[%s753_s1 + $0xf8] sm:$0xff]   ;;  %v464_v37 = vcombine.low %v16_v36, %v16_v36  ;;  %v465_v38 = vcombine.high %v16_v36, %v16_v36  ;;  %v604_v39 = vld [vmem:[%s753_s1 + $0x100] sm:$0xff]  }
   0xc   :  { %510 = vmatprep.subr.bf16.mxu0 %v579_v12  ;;  %v594_v27 = vld [vmem:[%s753_s1 + $0xb0] sm:$0xff]   ;;  %v601_v34 = vld [vmem:[%s753_s1 + $0xb8] sm:$0xff]   ;;  %366 = vmatprep.mubr.bf16.mxu0 %v463_v33  ;;  %v605_v40 = vld [vmem:[%s753_s1 + $0x108] sm:$0xff]  }
   0xd   :  { %531 = vmatpush3.bf16.msra.mxu1 %v578_v11  ;;  %406 = vmatprep.mubr.bf16.mxu1 %v465_v38  ;;  %v606_v41 = vld [vmem:[%s753_s1 + $0x110] sm:$0xff]   ;;  %v607_v42 = vld [vmem:[%s753_s1 + $0x118] sm:$0xff]   ;;  %v461_v45 = vld [vmem:[%s755_s2] ss:$0 sm:$0xff] }
   0xe   :  { %532 = vmatprep.subr.bf16.mxu1 %v581_v14  ;;  %v600_v43 = vld [vmem:[%s754_s0 + $0x10] ss:$0 sps:$4 sm:$0xff]  }
   0xf   :  { %511 = vmatpush3.bf16.msra.mxu0 %v580_v13 }
  0x10   :  { %512 = vmatprep.subr.bf16.mxu0 %v583_v16 }
  0x11   :  { %533 = vmatpush3.bf16.msra.mxu1 %v582_v15 }
  0x12   :  { %534 = vmatprep.subr.bf16.mxu1 %v585_v18 }
  0x13   :  { %513 = vmatpush3.bf16.msra.mxu0 %v584_v17 }
  0x14   :  { %514 = vmatprep.subr.bf16.mxu0 %v587_v20 }
  0x15   :  { %535 = vmatpush3.bf16.msra.mxu1 %v586_v19 }
  0x16   :  { %536 = vmatprep.subr.bf16.mxu1 %v589_v22 }
  0x17   :  { %515 = vmatpush3.bf16.msra.mxu0 %v588_v21 }
  0x18   :  { %516 = vmatprep.subr.bf16.mxu0 %v591_v24 }
  0x19   :  { %537 = vmatpush3.bf16.msra.mxu1 %v590_v23 }
  0x1a   :  { %538 = vmatprep.subr.bf16.mxu1 %v593_v26 }
  0x1b   :  { %517 = vmatpush3.bf16.msra.mxu0 %v592_v25 }
  0x1c   :  { %518 = vmatprep.subr.bf16.mxu0 %v595_v28 }
  0x1d   :  { %539 = vmatpush3.bf16.msra.mxu1 %v594_v27 }
  0x1e   :  { %540 = vmatprep.subr.bf16.mxu1 %v597_v30 }
  0x1f   :  { %519 = vmatpush3.bf16.msra.mxu0 %v596_v29 }
  0x20   :  { %553 = vmatprep.subr.bf16.mxu0 %v608_v35 }
  0x21   :  { %541 = vmatpush3.bf16.msra.mxu1 %v601_v34 }
  0x22   :  { %367 = vmatmul.mubr.bf16.vlgmr.msra.gmra.mrb[0].mxu0 %v462_v32 }
  0x23   :  { %554 = vmatpush3.bf16.msra.mxu0 %v604_v39  ;;  %561 = vmatprep.mubr.msk.bf16.mxu0 %vm609_vm0, %v608_v35 }
  0x24   :  { %407 = vmatmul.mubr.bf16.vlgmr.msra.gmra.mrb[0].mxu1 %v464_v37  ;;  %555 = vmatprep.subr.bf16.mxu0 %v608_v35 }
  0x27   :  { %556 = vmatpush3.bf16.msra.mxu0 %v605_v40 }
  0x28   :  { %557 = vmatprep.subr.bf16.mxu0 %v608_v35 }
  0x2b   :  { %558 = vmatpush3.bf16.msra.mxu0 %v606_v41 }
  0x2c   :  { %559 = vmatprep.subr.bf16.mxu0 %v608_v35 }
  0x2f   :  { %560 = vmatpush3.bf16.msra.mxu0 %v607_v42 }
  0x32   :  { %562 = vmatmul.mubr.msk.bf16.vlgmr.msra.gmra.mrb[4].mxu0 %vm330_vm1, %v600_v43 }
  0xf5   :  { %v520_v44 = vpop.f32.mrb[0].mxu0 }
  0xf6   :  { %v521_v46 = vpop.f32.mrb[1].mxu0 }
  0xf7   :  { %v522_v47 = vadd.f32 %v521_v46, %v520_v44  ;;  %v523_v48 = vpop.f32.mrb[2].mxu0  ;;  %v542_v49 = vpop.f32.mrb[0].mxu1 }
  0xf8   :  { %v524_v50 = vpop.f32.mrb[3].mxu0  ;;  %v543_v51 = vpop.f32.mrb[1].mxu1 }
  0xf9   :  { %v369_v52 = vadd.f32 %v522_v47, %v461_v45  ;;  %v544_v53 = vadd.f32 %v543_v51, %v542_v49  ;;  %v545_v54 = vpop.f32.mrb[2].mxu1 }
  0xfa   :  { %v546_v55 = vpop.f32.mrb[3].mxu1 }
  0xfb   :  { %v409_v56 = vadd.f32 %v544_v53, %v369_v52 }
 0x105   :  { %v448_v57 = vpop.f32.mrb[4].mxu0 }
 0x106   :  { %v449_v58 = vadd.f32 %v448_v57, %v409_v56  ;;  %v563_v59 = vpop.f32.mrb[5].mxu0 }
 0x107   :  { %v451_v60 = vpop.f32.mrb[6].mxu0 }
 0x108   :  { %v454_v61 = vmax.f32 %v449_v58, 0.0  ;;  %v564_v62 = vpop.f32.mrb[7].mxu0 }
 0x10a   :  { %v455_v63 = vpack.c.bf16 %v454_v61, %v454_v61 }
 0x10c   :  { %456 = vst [vmem:[%s756_s3] sm:$0xf] %v455_v63 }

// kernel: anomaly_autoencoder_forward.12
= control target key start
LH: loop header
LB: loop body
LE: loop exit
PB: predicated region body
PF: predicated region fallthrough
CT: control target
= control target key end

     0   :  { %s2341_s12 = smov 0   ;;  %s2343_s13 = smov 0   ;;  %s2835_s0 = inlined_call_operand.vmem [shape: bf16[8,1024], index: 0, kind: input, shape index: {}]   ;;  %s2836_s1 = inlined_call_operand.vmem [shape: bf16[1024,512], index: 1, kind: input, shape index: {}]   ;;  %s2837_s2 = inlined_call_operand.vmem [shape: f32[1,512], index: 2, kind: input, shape index: {}]   ;;  %s2838_s3 = inlined_call_operand.vmem [shape: bf16[8,512], index: 3, kind: output, shape index: {}]  }
   0x1   :  { %s2345_s14 = smov 0   ;;  %s2347_s15 = smov 0  }
   0x2   :  { %s2349_s16 = smov 0  }
   0x3 LB: > { %s22_s17 = sadd.s32 1, %s2315_s15  ;;  %p65_p1 = scmp.ne.s32.totalorder %s2307_s13, %s2303_s12  ;;  %s2319_s16 = sphi %s2349_s16, %s13_s16   ;;  %s2315_s15 = sphi %s2347_s15, %s2842_s15   ;;  %s2311_s14 = sphi %s2345_s14, %s2841_s14   ;;  %s2307_s13 = sphi %s2343_s13, %s2840_s13   ;;  %s2303_s12 = sphi %s2341_s12, %s2839_s12  }
   0x4   : > { %p23_p0 = scmp.ge.s32.totalorder %s22_s17, 2  ;;  %p66_p2 = scmp.eq.s32.totalorder %s2319_s16, 0 }
   0x5   : > { %s58_s19 = sadd.s32 1, %s2307_s13  ;;  %p1879_p5 = scmp.ge.s32.totalorder %s2319_s16, 2 }
   0x6   : > { %s2844_s17 = smov (%p23_p0, %s22_s17), 0  ;;  %p67_p3 = por %p66_p2, %p65_p1 }
   0x7   : > { %s55_s18 = ssub.s32 %s2315_s15, %s2844_s17  ;;  %153 = sbr.rel (%p1879_p5) target bundleno = 82 (0x52), region = 20 }
   0x8   : > { %p56_p4 = scmp.eq.s32.totalorder %s55_s18, 0 }
   0xa   : > { %s2376_s20 = scalar_select %p56_p4, %s2307_s13, %s58_s19  }
   0xe   : > { %156 = sbr.rel (!%p67_p3) target bundleno = 82 (0x52), region = 24  ;;  %s158_s21 = sand.u32 (%p67_p3), 1, %s2307_s13  }
   0xf   : > { %s2027_s22 = sshll.u32 (%p67_p3), %s2315_s15, 3  ;;  %s1880_s23 = sshll.u32 (%p67_p3), %s158_s21, 10 }
  0x10   : > { %s2384_s26 = scalar_lea.vmem (%p67_p3), %s2836_s1, %s2027_s22  ;;  %s2389_s27 = scalar_lea.vmem (%p67_p3), [#allocation2], %s1880_s23 }
  0x11   : > { %v445_v0 = vld [vmem:[%s2384_s26] sm:$0xff] (%p67_p3)  ;;  %v447_v1 = vld [vmem:[%s2384_s26 + $0x10] sm:$0xff] (%p67_p3) }
  0x12   : > { %v449_v2 = vld [vmem:[%s2384_s26 + $0x20] sm:$0xff] (%p67_p3)  ;;  %446 = vst [vmem:[%s2389_s27] sm:$0xff] (%p67_p3), %v445_v0  ;;  %448 = vst [vmem:[%s2389_s27 + $0x8] sm:$0xff] (%p67_p3), %v447_v1  ;;  %v451_v3 = vld [vmem:[%s2384_s26 + $0x30] sm:$0xff] (%p67_p3) }
  0x13   : > { %450 = vst [vmem:[%s2389_s27 + $0x10] sm:$0xff] (%p67_p3), %v449_v2  ;;  %v453_v4 = vld [vmem:[%s2384_s26 + $0x40] sm:$0xff] (%p67_p3)  ;;  %v455_v5 = vld [vmem:[%s2384_s26 + $0x50] sm:$0xff] (%p67_p3)  ;;  %452 = vst [vmem:[%s2389_s27 + $0x18] sm:$0xff] (%p67_p3), %v451_v3 }
  0x14   : > { %454 = vst [vmem:[%s2389_s27 + $0x20] sm:$0xff] (%p67_p3), %v453_v4  ;;  %456 = vst [vmem:[%s2389_s27 + $0x28] sm:$0xff] (%p67_p3), %v455_v5  ;;  %v457_v6 = vld [vmem:[%s2384_s26 + $0x60] sm:$0xff] (%p67_p3)  ;;  %v459_v7 = vld [vmem:[%s2384_s26 + $0x70] sm:$0xff] (%p67_p3) }
  0x15   : > { %v461_v8 = vld [vmem:[%s2384_s26 + $0x80] sm:$0xff]  ;;  %458 = vst [vmem:[%s2389_s27 + $0x30] sm:$0xff] %v457_v6  ;;  %460 = vst [vmem:[%s2389_s27 + $0x38] sm:$0xff] %v459_v7  ;;  %v463_v9 = vld [vmem:[%s2384_s26 + $0x90] sm:$0xff] }
  0x16   : > { %462 = vst [vmem:[%s2389_s27 + $0x40] sm:$0xff] %v461_v8  ;;  %v465_v10 = vld [vmem:[%s2384_s26 + $0xa0] sm:$0xff]  ;;  %v467_v11 = vld [vmem:[%s2384_s26 + $0xb0] sm:$0xff]  ;;  %464 = vst [vmem:[%s2389_s27 + $0x48] sm:$0xff] %v463_v9 }
  0x17   : > { %466 = vst [vmem:[%s2389_s27 + $0x50] sm:$0xff] %v465_v10  ;;  %468 = vst [vmem:[%s2389_s27 + $0x58] sm:$0xff] %v467_v11  ;;  %v469_v12 = vld [vmem:[%s2384_s26 + $0xc0] sm:$0xff]  ;;  %v471_v13 = vld [vmem:[%s2384_s26 + $0xd0] sm:$0xff] }
  0x18   : > { %v473_v14 = vld [vmem:[%s2384_s26 + $0xe0] sm:$0xff]  ;;  %470 = vst [vmem:[%s2389_s27 + $0x60] sm:$0xff] %v469_v12  ;;  %472 = vst [vmem:[%s2389_s27 + $0x68] sm:$0xff] %v471_v13  ;;  %v475_v15 = vld [vmem:[%s2384_s26 + $0xf0] sm:$0xff] }
  0x19   : > { %474 = vst [vmem:[%s2389_s27 + $0x70] sm:$0xff] %v473_v14  ;;  %v477_v16 = vld [vmem:[%s2384_s26 + $0x100] sm:$0xff]  ;;  %v479_v17 = vld [vmem:[%s2384_s26 + $0x110] sm:$0xff]  ;;  %476 = vst [vmem:[%s2389_s27 + $0x78] sm:$0xff] %v475_v15 }
  0x1a   : > { %478 = vst [vmem:[%s2389_s27 + $0x80] sm:$0xff] %v477_v16  ;;  %480 = vst [vmem:[%s2389_s27 + $0x88] sm:$0xff] %v479_v17  ;;  %v481_v18 = vld [vmem:[%s2384_s26 + $0x120] sm:$0xff]  ;;  %v483_v19 = vld [vmem:[%s2384_s26 + $0x130] sm:$0xff] }
  0x1b   : > { %v485_v20 = vld [vmem:[%s2384_s26 + $0x140] sm:$0xff]  ;;  %482 = vst [vmem:[%s2389_s27 + $0x90] sm:$0xff] %v481_v18  ;;  %484 = vst [vmem:[%s2389_s27 + $0x98] sm:$0xff] %v483_v19  ;;  %v487_v21 = vld [vmem:[%s2384_s26 + $0x150] sm:$0xff] }
  0x1c   : > { %486 = vst [vmem:[%s2389_s27 + $0xa0] sm:$0xff] %v485_v20  ;;  %v489_v22 = vld [vmem:[%s2384_s26 + $0x160] sm:$0xff]  ;;  %v491_v23 = vld [vmem:[%s2384_s26 + $0x170] sm:$0xff]  ;;  %488 = vst [vmem:[%s2389_s27 + $0xa8] sm:$0xff] %v487_v21 }
  0x1d   : > { %490 = vst [vmem:[%s2389_s27 + $0xb0] sm:$0xff] %v489_v22  ;;  %492 = vst [vmem:[%s2389_s27 + $0xb8] sm:$0xff] %v491_v23  ;;  %v493_v24 = vld [vmem:[%s2384_s26 + $0x180] sm:$0xff]  ;;  %v495_v25 = vld [vmem:[%s2384_s26 + $0x190] sm:$0xff] }
  0x1e   : > { %v497_v26 = vld [vmem:[%s2384_s26 + $0x1a0] sm:$0xff]  ;;  %494 = vst [vmem:[%s2389_s27 + $0xc0] sm:$0xff] %v493_v24  ;;  %496 = vst [vmem:[%s2389_s27 + $0xc8] sm:$0xff] %v495_v25  ;;  %v499_v27 = vld [vmem:[%s2384_s26 + $0x1b0] sm:$0xff] }
  0x1f   : > { %498 = vst [vmem:[%s2389_s27 + $0xd0] sm:$0xff] %v497_v26  ;;  %v501_v28 = vld [vmem:[%s2384_s26 + $0x1c0] sm:$0xff]  ;;  %v503_v29 = vld [vmem:[%s2384_s26 + $0x1d0] sm:$0xff]  ;;  %500 = vst [vmem:[%s2389_s27 + $0xd8] sm:$0xff] %v499_v27 }
  0x20   : > { %502 = vst [vmem:[%s2389_s27 + $0xe0] sm:$0xff] %v501_v28  ;;  %504 = vst [vmem:[%s2389_s27 + $0xe8] sm:$0xff] %v503_v29  ;;  %v505_v30 = vld [vmem:[%s2384_s26 + $0x1e0] sm:$0xff]  ;;  %v507_v31 = vld [vmem:[%s2384_s26 + $0x1f0] sm:$0xff] }
  0x21   : > { %v509_v32 = vld [vmem:[%s2384_s26 + $0x200] sm:$0xff]  ;;  %506 = vst [vmem:[%s2389_s27 + $0xf0] sm:$0xff] %v505_v30  ;;  %508 = vst [vmem:[%s2389_s27 + $0xf8] sm:$0xff] %v507_v31  ;;  %v511_v33 = vld [vmem:[%s2384_s26 + $0x210] sm:$0xff] }
  0x22   : > { %510 = vst [vmem:[%s2389_s27 + $0x100] sm:$0xff] %v509_v32  ;;  %v513_v34 = vld [vmem:[%s2384_s26 + $0x220] sm:$0xff]  ;;  %v515_v35 = vld [vmem:[%s2384_s26 + $0x230] sm:$0xff]  ;;  %512 = vst [vmem:[%s2389_s27 + $0x108] sm:$0xff] %v511_v33 }
  0x23   : > { %514 = vst [vmem:[%s2389_s27 + $0x110] sm:$0xff] %v513_v34  ;;  %516 = vst [vmem:[%s2389_s27 + $0x118] sm:$0xff] %v515_v35  ;;  %v517_v36 = vld [vmem:[%s2384_s26 + $0x240] sm:$0xff]  ;;  %v519_v37 = vld [vmem:[%s2384_s26 + $0x250] sm:$0xff] }
  0x24   : > { %v521_v38 = vld [vmem:[%s2384_s26 + $0x260] sm:$0xff]  ;;  %518 = vst [vmem:[%s2389_s27 + $0x120] sm:$0xff] %v517_v36  ;;  %520 = vst [vmem:[%s2389_s27 + $0x128] sm:$0xff] %v519_v37  ;;  %v523_v39 = vld [vmem:[%s2384_s26 + $0x270] sm:$0xff] }
  0x25   : > { %522 = vst [vmem:[%s2389_s27 + $0x130] sm:$0xff] %v521_v38  ;;  %v525_v40 = vld [vmem:[%s2384_s26 + $0x280] sm:$0xff]  ;;  %v527_v41 = vld [vmem:[%s2384_s26 + $0x290] sm:$0xff]  ;;  %524 = vst [vmem:[%s2389_s27 + $0x138] sm:$0xff] %v523_v39 }
  0x26   : > { %526 = vst [vmem:[%s2389_s27 + $0x140] sm:$0xff] %v525_v40  ;;  %528 = vst [vmem:[%s2389_s27 + $0x148] sm:$0xff] %v527_v41  ;;  %v529_v42 = vld [vmem:[%s2384_s26 + $0x2a0] sm:$0xff]  ;;  %v531_v43 = vld [vmem:[%s2384_s26 + $0x2b0] sm:$0xff] }
  0x27   : > { %v533_v44 = vld [vmem:[%s2384_s26 + $0x2c0] sm:$0xff]  ;;  %530 = vst [vmem:[%s2389_s27 + $0x150] sm:$0xff] %v529_v42  ;;  %532 = vst [vmem:[%s2389_s27 + $0x158] sm:$0xff] %v531_v43  ;;  %v535_v45 = vld [vmem:[%s2384_s26 + $0x2d0] sm:$0xff] }
  0x28   : > { %534 = vst [vmem:[%s2389_s27 + $0x160] sm:$0xff] %v533_v44  ;;  %v537_v46 = vld [vmem:[%s2384_s26 + $0x2e0] sm:$0xff]  ;;  %v539_v47 = vld [vmem:[%s2384_s26 + $0x2f0] sm:$0xff]  ;;  %536 = vst [vmem:[%s2389_s27 + $0x168] sm:$0xff] %v535_v45 }
  0x29   : > { %538 = vst [vmem:[%s2389_s27 + $0x170] sm:$0xff] %v537_v46  ;;  %540 = vst [vmem:[%s2389_s27 + $0x178] sm:$0xff] %v539_v47  ;;  %v541_v48 = vld [vmem:[%s2384_s26 + $0x300] sm:$0xff]  ;;  %v543_v49 = vld [vmem:[%s2384_s26 + $0x310] sm:$0xff] }
  0x2a   : > { %v545_v50 = vld [vmem:[%s2384_s26 + $0x320] sm:$0xff]  ;;  %542 = vst [vmem:[%s2389_s27 + $0x180] sm:$0xff] %v541_v48  ;;  %544 = vst [vmem:[%s2389_s27 + $0x188] sm:$0xff] %v543_v49  ;;  %v547_v51 = vld [vmem:[%s2384_s26 + $0x330] sm:$0xff] }
  0x2b   : > { %546 = vst [vmem:[%s2389_s27 + $0x190] sm:$0xff] %v545_v50  ;;  %v549_v52 = vld [vmem:[%s2384_s26 + $0x340] sm:$0xff]  ;;  %v551_v53 = vld [vmem:[%s2384_s26 + $0x350] sm:$0xff]  ;;  %548 = vst [vmem:[%s2389_s27 + $0x198] sm:$0xff] %v547_v51 }
  0x2c   : > { %550 = vst [vmem:[%s2389_s27 + $0x1a0] sm:$0xff] %v549_v52  ;;  %552 = vst [vmem:[%s2389_s27 + $0x1a8] sm:$0xff] %v551_v53  ;;  %v553_v54 = vld [vmem:[%s2384_s26 + $0x360] sm:$0xff]  ;;  %v555_v55 = vld [vmem:[%s2384_s26 + $0x370] sm:$0xff] }
  0x2d   : > { %v557_v56 = vld [vmem:[%s2384_s26 + $0x380] sm:$0xff]  ;;  %554 = vst [vmem:[%s2389_s27 + $0x1b0] sm:$0xff] %v553_v54  ;;  %556 = vst [vmem:[%s2389_s27 + $0x1b8] sm:$0xff] %v555_v55  ;;  %v559_v57 = vld [vmem:[%s2384_s26 + $0x390] sm:$0xff] }
  0x2e   : > { %558 = vst [vmem:[%s2389_s27 + $0x1c0] sm:$0xff] %v557_v56  ;;  %v561_v58 = vld [vmem:[%s2384_s26 + $0x3a0] sm:$0xff]  ;;  %v563_v59 = vld [vmem:[%s2384_s26 + $0x3b0] sm:$0xff]  ;;  %560 = vst [vmem:[%s2389_s27 + $0x1c8] sm:$0xff] %v559_v57 }
  0x2f   : > { %562 = vst [vmem:[%s2389_s27 + $0x1d0] sm:$0xff] %v561_v58  ;;  %564 = vst [vmem:[%s2389_s27 + $0x1d8] sm:$0xff] %v563_v59  ;;  %v565_v60 = vld [vmem:[%s2384_s26 + $0x3c0] sm:$0xff]  ;;  %v567_v61 = vld [vmem:[%s2384_s26 + $0x3d0] sm:$0xff] }
  0x30   : > { %v569_v62 = vld [vmem:[%s2384_s26 + $0x3e0] sm:$0xff]  ;;  %566 = vst [vmem:[%s2389_s27 + $0x1e0] sm:$0xff] %v565_v60  ;;  %568 = vst [vmem:[%s2389_s27 + $0x1e8] sm:$0xff] %v567_v61  ;;  %v571_v63 = vld [vmem:[%s2384_s26 + $0x3f0] sm:$0xff] }
  0x31   : > { %570 = vst [vmem:[%s2389_s27 + $0x1f0] sm:$0xff] %v569_v62  ;;  %v573_v0 = vld [vmem:[%s2384_s26 + $0x400] sm:$0xff]  ;;  %v575_v1 = vld [vmem:[%s2384_s26 + $0x410] sm:$0xff]  ;;  %572 = vst [vmem:[%s2389_s27 + $0x1f8] sm:$0xff] %v571_v63 }
  0x32   : > { %574 = vst [vmem:[%s2389_s27 + $0x200] sm:$0xff] %v573_v0  ;;  %576 = vst [vmem:[%s2389_s27 + $0x208] sm:$0xff] %v575_v1  ;;  %v577_v2 = vld [vmem:[%s2384_s26 + $0x420] sm:$0xff]  ;;  %v579_v3 = vld [vmem:[%s2384_s26 + $0x430] sm:$0xff] }
  0x33   : > { %v581_v4 = vld [vmem:[%s2384_s26 + $0x440] sm:$0xff]  ;;  %578 = vst [vmem:[%s2389_s27 + $0x210] sm:$0xff] %v577_v2  ;;  %580 = vst [vmem:[%s2389_s27 + $0x218] sm:$0xff] %v579_v3  ;;  %v583_v5 = vld [vmem:[%s2384_s26 + $0x450] sm:$0xff] }
  0x34   : > { %582 = vst [vmem:[%s2389_s27 + $0x220] sm:$0xff] %v581_v4  ;;  %v585_v6 = vld [vmem:[%s2384_s26 + $0x460] sm:$0xff]  ;;  %v587_v7 = vld [vmem:[%s2384_s26 + $0x470] sm:$0xff]  ;;  %584 = vst [vmem:[%s2389_s27 + $0x228] sm:$0xff] %v583_v5 }
  0x35   : > { %586 = vst [vmem:[%s2389_s27 + $0x230] sm:$0xff] %v585_v6  ;;  %588 = vst [vmem:[%s2389_s27 + $0x238] sm:$0xff] %v587_v7  ;;  %v589_v8 = vld [vmem:[%s2384_s26 + $0x480] sm:$0xff]  ;;  %v591_v9 = vld [vmem:[%s2384_s26 + $0x490] sm:$0xff] }
  0x36   : > { %v593_v10 = vld [vmem:[%s2384_s26 + $0x4a0] sm:$0xff]  ;;  %590 = vst [vmem:[%s2389_s27 + $0x240] sm:$0xff] %v589_v8  ;;  %592 = vst [vmem:[%s2389_s27 + $0x248] sm:$0xff] %v591_v9  ;;  %v595_v11 = vld [vmem:[%s2384_s26 + $0x4b0] sm:$0xff] }
  0x37   : > { %594 = vst [vmem:[%s2389_s27 + $0x250] sm:$0xff] %v593_v10  ;;  %v597_v12 = vld [vmem:[%s2384_s26 + $0x4c0] sm:$0xff]  ;;  %v599_v13 = vld [vmem:[%s2384_s26 + $0x4d0] sm:$0xff]  ;;  %596 = vst [vmem:[%s2389_s27 + $0x258] sm:$0xff] %v595_v11 }
  0x38   : > { %598 = vst [vmem:[%s2389_s27 + $0x260] sm:$0xff] %v597_v12  ;;  %600 = vst [vmem:[%s2389_s27 + $0x268] sm:$0xff] %v599_v13  ;;  %v601_v14 = vld [vmem:[%s2384_s26 + $0x4e0] sm:$0xff]  ;;  %v603_v15 = vld [vmem:[%s2384_s26 + $0x4f0] sm:$0xff] }
  0x39   : > { %v605_v16 = vld [vmem:[%s2384_s26 + $0x500] sm:$0xff]  ;;  %602 = vst [vmem:[%s2389_s27 + $0x270] sm:$0xff] %v601_v14  ;;  %604 = vst [vmem:[%s2389_s27 + $0x278] sm:$0xff] %v603_v15  ;;  %v607_v17 = vld [vmem:[%s2384_s26 + $0x510] sm:$0xff] }
  0x3a   : > { %606 = vst [vmem:[%s2389_s27 + $0x280] sm:$0xff] %v605_v16  ;;  %v609_v18 = vld [vmem:[%s2384_s26 + $0x520] sm:$0xff]  ;;  %v611_v19 = vld [vmem:[%s2384_s26 + $0x530] sm:$0xff]  ;;  %608 = vst [vmem:[%s2389_s27 + $0x288] sm:$0xff] %v607_v17 }
  0x3b   : > { %610 = vst [vmem:[%s2389_s27 + $0x290] sm:$0xff] %v609_v18  ;;  %612 = vst [vmem:[%s2389_s27 + $0x298] sm:$0xff] %v611_v19  ;;  %v613_v20 = vld [vmem:[%s2384_s26 + $0x540] sm:$0xff]  ;;  %v615_v21 = vld [vmem:[%s2384_s26 + $0x550] sm:$0xff] }
  0x3c   : > { %v617_v22 = vld [vmem:[%s2384_s26 + $0x560] sm:$0xff]  ;;  %614 = vst [vmem:[%s2389_s27 + $0x2a0] sm:$0xff] %v613_v20  ;;  %616 = vst [vmem:[%s2389_s27 + $0x2a8] sm:$0xff] %v615_v21  ;;  %v619_v23 = vld [vmem:[%s2384_s26 + $0x570] sm:$0xff] }
  0x3d   : > { %618 = vst [vmem:[%s2389_s27 + $0x2b0] sm:$0xff] %v617_v22  ;;  %v621_v24 = vld [vmem:[%s2384_s26 + $0x580] sm:$0xff]  ;;  %v623_v25 = vld [vmem:[%s2384_s26 + $0x590] sm:$0xff]  ;;  %620 = vst [vmem:[%s2389_s27 + $0x2b8] sm:$0xff] %v619_v23 }
  0x3e   : > { %622 = vst [vmem:[%s2389_s27 + $0x2c0] sm:$0xff] %v621_v24  ;;  %624 = vst [vmem:[%s2389_s27 + $0x2c8] sm:$0xff] %v623_v25  ;;  %v625_v26 = vld [vmem:[%s2384_s26 + $0x5a0] sm:$0xff]  ;;  %v627_v27 = vld [vmem:[%s2384_s26 + $0x5b0] sm:$0xff] }
  0x3f   : > { %v629_v28 = vld [vmem:[%s2384_s26 + $0x5c0] sm:$0xff]  ;;  %626 = vst [vmem:[%s2389_s27 + $0x2d0] sm:$0xff] %v625_v26  ;;  %628 = vst [vmem:[%s2389_s27 + $0x2d8] sm:$0xff] %v627_v27  ;;  %v631_v29 = vld [vmem:[%s2384_s26 + $0x5d0] sm:$0xff] }
  0x40   : > { %630 = vst [vmem:[%s2389_s27 + $0x2e0] sm:$0xff] %v629_v28  ;;  %v633_v30 = vld [vmem:[%s2384_s26 + $0x5e0] sm:$0xff]  ;;  %v635_v31 = vld [vmem:[%s2384_s26 + $0x5f0] sm:$0xff]  ;;  %632 = vst [vmem:[%s2389_s27 + $0x2e8] sm:$0xff] %v631_v29 }
  0x41   : > { %634 = vst [vmem:[%s2389_s27 + $0x2f0] sm:$0xff] %v633_v30  ;;  %636 = vst [vmem:[%s2389_s27 + $0x2f8] sm:$0xff] %v635_v31  ;;  %v637_v32 = vld [vmem:[%s2384_s26 + $0x600] sm:$0xff]  ;;  %v639_v33 = vld [vmem:[%s2384_s26 + $0x610] sm:$0xff] }
  0x42   : > { %v641_v34 = vld [vmem:[%s2384_s26 + $0x620] sm:$0xff]  ;;  %638 = vst [vmem:[%s2389_s27 + $0x300] sm:$0xff] %v637_v32  ;;  %640 = vst [vmem:[%s2389_s27 + $0x308] sm:$0xff] %v639_v33  ;;  %v643_v35 = vld [vmem:[%s2384_s26 + $0x630] sm:$0xff] }
  0x43   : > { %642 = vst [vmem:[%s2389_s27 + $0x310] sm:$0xff] %v641_v34  ;;  %v645_v36 = vld [vmem:[%s2384_s26 + $0x640] sm:$0xff]  ;;  %v647_v37 = vld [vmem:[%s2384_s26 + $0x650] sm:$0xff]  ;;  %644 = vst [vmem:[%s2389_s27 + $0x318] sm:$0xff] %v643_v35 }
  0x44   : > { %646 = vst [vmem:[%s2389_s27 + $0x320] sm:$0xff] %v645_v36  ;;  %648 = vst [vmem:[%s2389_s27 + $0x328] sm:$0xff] %v647_v37  ;;  %v649_v38 = vld [vmem:[%s2384_s26 + $0x660] sm:$0xff]  ;;  %v651_v39 = vld [vmem:[%s2384_s26 + $0x670] sm:$0xff] }
  0x45   : > { %v653_v40 = vld [vmem:[%s2384_s26 + $0x680] sm:$0xff]  ;;  %650 = vst [vmem:[%s2389_s27 + $0x330] sm:$0xff] %v649_v38  ;;  %652 = vst [vmem:[%s2389_s27 + $0x338] sm:$0xff] %v651_v39  ;;  %v655_v41 = vld [vmem:[%s2384_s26 + $0x690] sm:$0xff] }
  0x46   : > { %654 = vst [vmem:[%s2389_s27 + $0x340] sm:$0xff] %v653_v40  ;;  %v657_v42 = vld [vmem:[%s2384_s26 + $0x6a0] sm:$0xff]  ;;  %v659_v43 = vld [vmem:[%s2384_s26 + $0x6b0] sm:$0xff]  ;;  %656 = vst [vmem:[%s2389_s27 + $0x348] sm:$0xff] %v655_v41 }
  0x47   : > { %658 = vst [vmem:[%s2389_s27 + $0x350] sm:$0xff] %v657_v42  ;;  %660 = vst [vmem:[%s2389_s27 + $0x358] sm:$0xff] %v659_v43  ;;  %v661_v44 = vld [vmem:[%s2384_s26 + $0x6c0] sm:$0xff]  ;;  %v663_v45 = vld [vmem:[%s2384_s26 + $0x6d0] sm:$0xff] }
  0x48   : > { %v665_v46 = vld [vmem:[%s2384_s26 + $0x6e0] sm:$0xff]  ;;  %662 = vst [vmem:[%s2389_s27 + $0x360] sm:$0xff] %v661_v44  ;;  %664 = vst [vmem:[%s2389_s27 + $0x368] sm:$0xff] %v663_v45  ;;  %v667_v47 = vld [vmem:[%s2384_s26 + $0x6f0] sm:$0xff] }
  0x49   : > { %666 = vst [vmem:[%s2389_s27 + $0x370] sm:$0xff] %v665_v46  ;;  %v669_v48 = vld [vmem:[%s2384_s26 + $0x700] sm:$0xff]  ;;  %v671_v49 = vld [vmem:[%s2384_s26 + $0x710] sm:$0xff]  ;;  %668 = vst [vmem:[%s2389_s27 + $0x378] sm:$0xff] %v667_v47 }
  0x4a   : > { %670 = vst [vmem:[%s2389_s27 + $0x380] sm:$0xff] %v669_v48  ;;  %672 = vst [vmem:[%s2389_s27 + $0x388] sm:$0xff] %v671_v49  ;;  %v673_v50 = vld [vmem:[%s2384_s26 + $0x720] sm:$0xff]  ;;  %v675_v51 = vld [vmem:[%s2384_s26 + $0x730] sm:$0xff] }
  0x4b   : > { %v677_v52 = vld [vmem:[%s2384_s26 + $0x740] sm:$0xff]  ;;  %674 = vst [vmem:[%s2389_s27 + $0x390] sm:$0xff] %v673_v50  ;;  %676 = vst [vmem:[%s2389_s27 + $0x398] sm:$0xff] %v675_v51  ;;  %v679_v53 = vld [vmem:[%s2384_s26 + $0x750] sm:$0xff] }
  0x4c   : > { %678 = vst [vmem:[%s2389_s27 + $0x3a0] sm:$0xff] %v677_v52  ;;  %v681_v54 = vld [vmem:[%s2384_s26 + $0x760] sm:$0xff]  ;;  %v683_v55 = vld [vmem:[%s2384_s26 + $0x770] sm:$0xff]  ;;  %680 = vst [vmem:[%s2389_s27 + $0x3a8] sm:$0xff] %v679_v53 }
  0x4d   : > { %682 = vst [vmem:[%s2389_s27 + $0x3b0] sm:$0xff] %v681_v54  ;;  %684 = vst [vmem:[%s2389_s27 + $0x3b8] sm:$0xff] %v683_v55  ;;  %v685_v56 = vld [vmem:[%s2384_s26 + $0x780] sm:$0xff]  ;;  %v687_v57 = vld [vmem:[%s2384_s26 + $0x790] sm:$0xff] }
  0x4e   : > { %v689_v58 = vld [vmem:[%s2384_s26 + $0x7a0] sm:$0xff]  ;;  %686 = vst [vmem:[%s2389_s27 + $0x3c0] sm:$0xff] %v685_v56  ;;  %688 = vst [vmem:[%s2389_s27 + $0x3c8] sm:$0xff] %v687_v57  ;;  %v691_v59 = vld [vmem:[%s2384_s26 + $0x7b0] sm:$0xff] }
  0x4f   : > { %690 = vst [vmem:[%s2389_s27 + $0x3d0] sm:$0xff] %v689_v58  ;;  %v693_v60 = vld [vmem:[%s2384_s26 + $0x7c0] sm:$0xff]  ;;  %v695_v61 = vld [vmem:[%s2384_s26 + $0x7d0] sm:$0xff]  ;;  %692 = vst [vmem:[%s2389_s27 + $0x3d8] sm:$0xff] %v691_v59 }
  0x50   : > { %694 = vst [vmem:[%s2389_s27 + $0x3e0] sm:$0xff] %v693_v60  ;;  %696 = vst [vmem:[%s2389_s27 + $0x3e8] sm:$0xff] %v695_v61  ;;  %v697_v62 = vld [vmem:[%s2384_s26 + $0x7e0] sm:$0xff]  ;;  %v699_v63 = vld [vmem:[%s2384_s26 + $0x7f0] sm:$0xff] }
  0x51   : > { %698 = vst [vmem:[%s2389_s27 + $0x3f0] sm:$0xff] %v697_v62  ;;  %700 = vst [vmem:[%s2389_s27 + $0x3f8] sm:$0xff] %v699_v63 }
  0x52 PF: > { %p1883_p6 = scmp.ge.s32.totalorder %s2319_s16, 1  ;;  %p713_p7 = scmp.lt.s32.totalorder %s2319_s16, 3 }
  0x54   : > { %p714_p8 = pnand %p1883_p6, %p713_p7 }
  0x55   : > { %s720_s28 = sand.u32 (!%p714_p8), 1, %s2303_s12   ;;  %v2650_v0 = vld [vmem:[%s2835_s0] sm:$0xff] (!%p714_p8)  ;;  %v2655_v1 = vld [vmem:[%s2835_s0 + $0x10] sm:$0xff] (!%p714_p8)  ;;  %s1885_s12 = sshll.u32 (!%p714_p8), %s2311_s14, 1 }
  0x56   : > { %717 = sbr.rel (%p714_p8) target bundleno = 439 (0x1b7), region = 66  ;;  %s1884_s6 = sshll.u32 (!%p714_p8), %s720_s28, 10  ;;  %v1889_v2 = vcombine.high (!%p714_p8), %v2650_v0, %v2650_v0  ;;  %v1893_v3 = vcombine.high (!%p714_p8), %v2655_v1, %v2655_v1 }
  0x57   : > { %s2661_s7 = scalar_lea.vmem (!%p714_p8), [#allocation2], %s1884_s6  ;;  %p763_p9 = scmp.lt.s32.totalorder (!%p714_p8), %s1885_s12, 3 }
  0x58   : > { %v2081_v4 = vld [vmem:[%s2661_s7 + $0x4] ss:$8 sps:$4 sm:$0xff] (!%p714_p8)   ;;  %1621 = vmatprep.mubr.bf16.mxu1 (!%p714_p8), %v1889_v2  ;;  %1703 = vmatprep.mubr.bf16.mxu0 (!%p714_p8), %v1893_v3  ;;  %v2085_v6 = vld [vmem:[%s2661_s7] ss:$8 sps:$4 sm:$0xff] (!%p714_p8)   ;;  %v2087_v8 = vld [vmem:[%s2661_s7 + $0x14] ss:$8 sps:$4 sm:$0xff] (!%p714_p8)  }
  0x59   : > { %v2083_v5 = vld [vmem:[%s2661_s7 + $0x204] ss:$8 sps:$4 sm:$0xff] (!%p714_p8)   ;;  %1589 = vmatprep.subr.bf16.mxu1 (!%p714_p8), %v2081_v4  ;;  %v2086_v7 = vld [vmem:[%s2661_s7 + $0x200] ss:$8 sps:$4 sm:$0xff] (!%p714_p8)   ;;  %v2089_v9 = vld [vmem:[%s2661_s7 + $0x214] ss:$8 sps:$4 sm:$0xff] (!%p714_p8)  }
  0x5a   : > { %1671 = vmatprep.subr.bf16.mxu0 (!%p714_p8), %v2083_v5  ;;  %1590 = vmatpush1.bf16.msra.mxu1 (!%p714_p8), %v2085_v6  ;;  %v2091_v10 = vld [vmem:[%s2661_s7 + $0x10] ss:$8 sps:$4 sm:$0xff] (!%p714_p8)   ;;  %v2093_v12 = vld [vmem:[%s2661_s7 + $0x24] ss:$8 sps:$4 sm:$0xff] (!%p714_p8)   ;;  %v2097_v14 = vld [vmem:[%s2661_s7 + $0x20] ss:$8 sps:$4 sm:$0xff] (!%p714_p8)  }
  0x5b   : > { %1672 = vmatpush1.bf16.msra.mxu0 (!%p714_p8), %v2086_v7  ;;  %1591 = vmatprep.subr.bf16.mxu1 (!%p714_p8), %v2087_v8  ;;  %v2092_v11 = vld [vmem:[%s2661_s7 + $0x210] ss:$8 sps:$4 sm:$0xff] (!%p714_p8)   ;;  %v2095_v13 = vld [vmem:[%s2661_s7 + $0x224] ss:$8 sps:$4 sm:$0xff] (!%p714_p8)   ;;  %v2098_v15 = vld [vmem:[%s2661_s7 + $0x220] ss:$8 sps:$4 sm:$0xff] (!%p714_p8)  }
  0x5c   : > { %1673 = vmatprep.subr.bf16.mxu0 (!%p714_p8), %v2089_v9  ;;  %v2099_v16 = vld [vmem:[%s2661_s7 + $0x34] ss:$8 sps:$4 sm:$0xff] (!%p714_p8)   ;;  %v2103_v18 = vld [vmem:[%s2661_s7 + $0x30] ss:$8 sps:$4 sm:$0xff] (!%p714_p8)   ;;  %v2105_v20 = vld [vmem:[%s2661_s7 + $0x44] ss:$8 sps:$4 sm:$0xff] (!%p714_p8)  }
  0x5d   : > { %v2101_v17 = vld [vmem:[%s2661_s7 + $0x234] ss:$8 sps:$4 sm:$0xff]   ;;  %v2104_v19 = vld [vmem:[%s2661_s7 + $0x230] ss:$8 sps:$4 sm:$0xff]   ;;  %v2107_v21 = vld [vmem:[%s2661_s7 + $0x244] ss:$8 sps:$4 sm:$0xff]  }
  0x5e   : > { %1592 = vmatpush1.bf16.msra.mxu1 %v2091_v10  ;;  %v2109_v22 = vld [vmem:[%s2661_s7 + $0x40] ss:$8 sps:$4 sm:$0xff]   ;;  %v2111_v24 = vld [vmem:[%s2661_s7 + $0x54] ss:$8 sps:$4 sm:$0xff]   ;;  %v2115_v26 = vld [vmem:[%s2661_s7 + $0x50] ss:$8 sps:$4 sm:$0xff]   ;;  %v1888_v10 = vcombine.low %v2650_v0, %v2650_v0 }
  0x5f   : > { %1674 = vmatpush1.bf16.msra.mxu0 %v2092_v11  ;;  %1593 = vmatprep.subr.bf16.mxu1 %v2093_v12  ;;  %v2110_v23 = vld [vmem:[%s2661_s7 + $0x240] ss:$8 sps:$4 sm:$0xff]   ;;  %v2113_v25 = vld [vmem:[%s2661_s7 + $0x254] ss:$8 sps:$4 sm:$0xff]   ;;  %v2116_v27 = vld [vmem:[%s2661_s7 + $0x250] ss:$8 sps:$4 sm:$0xff]   ;;  %v1892_v12 = vcombine.low %v2655_v1, %v2655_v1 }
  0x60   : > { %1675 = vmatprep.subr.bf16.mxu0 %v2095_v13  ;;  %v2117_v28 = vld [vmem:[%s2661_s7 + $0x64] ss:$8 sps:$4 sm:$0xff]   ;;  %v2121_v30 = vld [vmem:[%s2661_s7 + $0x60] ss:$8 sps:$4 sm:$0xff]   ;;  %v2123_v32 = vld [vmem:[%s2661_s7 + $0x74] ss:$8 sps:$4 sm:$0xff]  }
  0x61   : > { %v2119_v29 = vld [vmem:[%s2661_s7 + $0x264] ss:$8 sps:$4 sm:$0xff]   ;;  %v2122_v31 = vld [vmem:[%s2661_s7 + $0x260] ss:$8 sps:$4 sm:$0xff]   ;;  %v2125_v33 = vld [vmem:[%s2661_s7 + $0x274] ss:$8 sps:$4 sm:$0xff]  }
  0x62   : > { %1594 = vmatpush1.bf16.msra.mxu1 %v2097_v14  ;;  %v2127_v34 = vld [vmem:[%s2661_s7 + $0x70] ss:$8 sps:$4 sm:$0xff]   ;;  %v2129_v36 = vld [vmem:[%s2661_s7 + $0x84] ss:$8 sps:$4 sm:$0xff]   ;;  %v2133_v38 = vld [vmem:[%s2661_s7 + $0x80] ss:$8 sps:$4 sm:$0xff]  }
  0x63   : > { %1676 = vmatpush1.bf16.msra.mxu0 %v2098_v15  ;;  %1595 = vmatprep.subr.bf16.mxu1 %v2099_v16  ;;  %v2128_v35 = vld [vmem:[%s2661_s7 + $0x270] ss:$8 sps:$4 sm:$0xff]   ;;  %v2131_v37 = vld [vmem:[%s2661_s7 + $0x284] ss:$8 sps:$4 sm:$0xff]   ;;  %v2134_v39 = vld [vmem:[%s2661_s7 + $0x280] ss:$8 sps:$4 sm:$0xff]  }
  0x64   : > { %1677 = vmatprep.subr.bf16.mxu0 %v2101_v17  ;;  %v2135_v40 = vld [vmem:[%s2661_s7 + $0x94] ss:$8 sps:$4 sm:$0xff]   ;;  %v2139_v42 = vld [vmem:[%s2661_s7 + $0x90] ss:$8 sps:$4 sm:$0xff]   ;;  %v2141_v44 = vld [vmem:[%s2661_s7 + $0xa4] ss:$8 sps:$4 sm:$0xff]  }
  0x65   : > { %v2137_v41 = vld [vmem:[%s2661_s7 + $0x294] ss:$8 sps:$4 sm:$0xff]   ;;  %v2140_v43 = vld [vmem:[%s2661_s7 + $0x290] ss:$8 sps:$4 sm:$0xff]   ;;  %v2143_v45 = vld [vmem:[%s2661_s7 + $0x2a4] ss:$8 sps:$4 sm:$0xff]  }
  0x66   : > { %1596 = vmatpush1.bf16.msra.mxu1 %v2103_v18  ;;  %v2145_v46 = vld [vmem:[%s2661_s7 + $0xa0] ss:$8 sps:$4 sm:$0xff]   ;;  %v2147_v48 = vld [vmem:[%s2661_s7 + $0xb4] ss:$8 sps:$4 sm:$0xff]   ;;  %v2151_v50 = vld [vmem:[%s2661_s7 + $0xb0] ss:$8 sps:$4 sm:$0xff]  }
  0x67   : > { %1678 = vmatpush1.bf16.msra.mxu0 %v2104_v19  ;;  %1597 = vmatprep.subr.bf16.mxu1 %v2105_v20  ;;  %v2146_v47 = vld [vmem:[%s2661_s7 + $0x2a0] ss:$8 sps:$4 sm:$0xff]   ;;  %v2149_v49 = vld [vmem:[%s2661_s7 + $0x2b4] ss:$8 sps:$4 sm:$0xff]   ;;  %v2152_v51 = vld [vmem:[%s2661_s7 + $0x2b0] ss:$8 sps:$4 sm:$0xff]  }
  0x68   : > { %1679 = vmatprep.subr.bf16.mxu0 %v2107_v21  ;;  %v2153_v52 = vld [vmem:[%s2661_s7 + $0xc4] ss:$8 sps:$4 sm:$0xff]   ;;  %v2157_v54 = vld [vmem:[%s2661_s7 + $0xc0] ss:$8 sps:$4 sm:$0xff]   ;;  %v2159_v56 = vld [vmem:[%s2661_s7 + $0xd4] ss:$8 sps:$4 sm:$0xff]  }
  0x69   : > { %v2155_v53 = vld [vmem:[%s2661_s7 + $0x2c4] ss:$8 sps:$4 sm:$0xff]   ;;  %v2158_v55 = vld [vmem:[%s2661_s7 + $0x2c0] ss:$8 sps:$4 sm:$0xff]   ;;  %v2161_v57 = vld [vmem:[%s2661_s7 + $0x2d4] ss:$8 sps:$4 sm:$0xff]  }
  0x6a   : > { %1598 = vmatpush1.bf16.msra.mxu1 %v2109_v22  ;;  %v2163_v58 = vld [vmem:[%s2661_s7 + $0xd0] ss:$8 sps:$4 sm:$0xff]   ;;  %v2165_v60 = vld [vmem:[%s2661_s7 + $0xe4] ss:$8 sps:$4 sm:$0xff]   ;;  %v2169_v62 = vld [vmem:[%s2661_s7 + $0xe0] ss:$8 sps:$4 sm:$0xff]  }
  0x6b   : > { %1680 = vmatpush1.bf16.msra.mxu0 %v2110_v23  ;;  %1599 = vmatprep.subr.bf16.mxu1 %v2111_v24  ;;  %v2164_v59 = vld [vmem:[%s2661_s7 + $0x2d0] ss:$8 sps:$4 sm:$0xff]   ;;  %v2167_v61 = vld [vmem:[%s2661_s7 + $0x2e4] ss:$8 sps:$4 sm:$0xff]   ;;  %v2170_v63 = vld [vmem:[%s2661_s7 + $0x2e0] ss:$8 sps:$4 sm:$0xff]  }
  0x6c   : > { %1681 = vmatprep.subr.bf16.mxu0 %v2113_v25  ;;  %v2171_v2 = vld [vmem:[%s2661_s7 + $0xf4] ss:$8 sps:$4 sm:$0xff]   ;;  %v2175_v4 = vld [vmem:[%s2661_s7 + $0xf0] ss:$8 sps:$4 sm:$0xff]   ;;  %v2181_v6 = vld [vmem:[%s2661_s7 + $0x104] ss:$8 sps:$4 sm:$0xff]  }
  0x6d   : > { %v2173_v3 = vld [vmem:[%s2661_s7 + $0x2f4] ss:$8 sps:$4 sm:$0xff]   ;;  %v2176_v5 = vld [vmem:[%s2661_s7 + $0x2f0] ss:$8 sps:$4 sm:$0xff]   ;;  %v2186_v7 = vld [vmem:[%s2661_s7 + $0x304] ss:$8 sps:$4 sm:$0xff]  }
  0x6e   : > { %1600 = vmatpush1.bf16.msra.mxu1 %v2115_v26  ;;  %v2732_v8 = vld [vmem:[%s2835_s0 + $0x8] sm:$0xff]  ;;  %v2737_v9 = vld [vmem:[%s2835_s0 + $0x18] sm:$0xff]  ;;  %s2846_s12 = smov (!%p763_p9, %s1885_s12), 3 }
  0x6f   : > { %1682 = vmatpush1.bf16.msra.mxu0 %v2116_v27  ;;  %1601 = vmatprep.subr.bf16.mxu1 %v2117_v28  ;;  %v2179_v11 = vld [vmem:[%s2661_s7 + $0x100] ss:$8 sps:$4 sm:$0xff]   ;;  %v2189_v14 = vld [vmem:[%s2661_s7 + $0x114] ss:$8 sps:$4 sm:$0xff]   ;;  %v1891_v16 = vcombine.high %v2732_v8, %v2732_v8  ;;  %v1895_v0 = vcombine.high %v2737_v9, %v2737_v9  ;;  %v2187_v1 = vld [vmem:[%s2661_s7 + $0x110] ss:$8 sps:$4 sm:$0xff]   ;;  %s765_s21 = scalar_lea.vmem %s2837_s2, %s2846_s12 }
  0x70   : > { %1683 = vmatprep.subr.bf16.mxu0 %v2119_v29  ;;  %v2184_v13 = vld [vmem:[%s2661_s7 + $0x300] ss:$8 sps:$4 sm:$0xff]   ;;  %v2192_v15 = vld [vmem:[%s2661_s7 + $0x314] ss:$8 sps:$4 sm:$0xff]   ;;  %v2190_v17 = vld [vmem:[%s2661_s7 + $0x310] ss:$8 sps:$4 sm:$0xff]  }
  0x71   : > { %v2195_v18 = vld [vmem:[%s2661_s7 + $0x124] ss:$8 sps:$4 sm:$0xff]   ;;  %v2193_v20 = vld [vmem:[%s2661_s7 + $0x120] ss:$8 sps:$4 sm:$0xff]   ;;  %v2201_v22 = vld [vmem:[%s2661_s7 + $0x134] ss:$8 sps:$4 sm:$0xff]  }
  0x72   : > { %1602 = vmatpush1.bf16.msra.mxu1 %v2121_v30  ;;  %v2198_v19 = vld [vmem:[%s2661_s7 + $0x324] ss:$8 sps:$4 sm:$0xff]   ;;  %v2196_v21 = vld [vmem:[%s2661_s7 + $0x320] ss:$8 sps:$4 sm:$0xff]   ;;  %v2204_v23 = vld [vmem:[%s2661_s7 + $0x334] ss:$8 sps:$4 sm:$0xff]  }
  0x73   : > { %1684 = vmatpush1.bf16.msra.mxu0 %v2122_v31  ;;  %1603 = vmatprep.subr.bf16.mxu1 %v2123_v32  ;;  %v2199_v24 = vld [vmem:[%s2661_s7 + $0x130] ss:$8 sps:$4 sm:$0xff]   ;;  %v2207_v26 = vld [vmem:[%s2661_s7 + $0x144] ss:$8 sps:$4 sm:$0xff]   ;;  %v2205_v28 = vld [vmem:[%s2661_s7 + $0x140] ss:$8 sps:$4 sm:$0xff]  }
  0x74   : > { %1685 = vmatprep.subr.bf16.mxu0 %v2125_v33  ;;  %v2202_v25 = vld [vmem:[%s2661_s7 + $0x330] ss:$8 sps:$4 sm:$0xff]   ;;  %v2210_v27 = vld [vmem:[%s2661_s7 + $0x344] ss:$8 sps:$4 sm:$0xff]   ;;  %v2208_v29 = vld [vmem:[%s2661_s7 + $0x340] ss:$8 sps:$4 sm:$0xff]  }
  0x75   : > { %v2213_v30 = vld [vmem:[%s2661_s7 + $0x154] ss:$8 sps:$4 sm:$0xff]   ;;  %v2211_v32 = vld [vmem:[%s2661_s7 + $0x150] ss:$8 sps:$4 sm:$0xff]   ;;  %s1887_s14 = sshll.u32 %s2846_s12, 2 }
  0x76   : > { %1604 = vmatpush1.bf16.msra.mxu1 %v2127_v34  ;;  %v2216_v31 = vld [vmem:[%s2661_s7 + $0x354] ss:$8 sps:$4 sm:$0xff]   ;;  %v2214_v33 = vld [vmem:[%s2661_s7 + $0x350] ss:$8 sps:$4 sm:$0xff]   ;;  %v2219_v34 = vld [vmem:[%s2661_s7 + $0x164] ss:$8 sps:$4 sm:$0xff]   ;;  %s775_s24 = scalar_lea.vmem %s2838_s3, %s1887_s14 }
  0x77   : > { %1686 = vmatpush1.bf16.msra.mxu0 %v2128_v35  ;;  %1605 = vmatprep.subr.bf16.mxu1 %v2129_v36  ;;  %v2222_v35 = vld [vmem:[%s2661_s7 + $0x364] ss:$8 sps:$4 sm:$0xff]   ;;  %v2217_v36 = vld [vmem:[%s2661_s7 + $0x160] ss:$8 sps:$4 sm:$0xff]  }
  0x78   : > { %1687 = vmatprep.subr.bf16.mxu0 %v2131_v37  ;;  %v2220_v37 = vld [vmem:[%s2661_s7 + $0x360] ss:$8 sps:$4 sm:$0xff]  }
  0x7a   : > { %1606 = vmatpush1.bf16.msra.mxu1 %v2133_v38  ;;  %v2225_v38 = vld [vmem:[%s2661_s7 + $0x174] ss:$8 sps:$4 sm:$0xff]  }
  0x7b   : > { %1688 = vmatpush1.bf16.msra.mxu0 %v2134_v39  ;;  %1607 = vmatprep.subr.bf16.mxu1 %v2135_v40  ;;  %v2228_v39 = vld [vmem:[%s2661_s7 + $0x374] ss:$8 sps:$4 sm:$0xff]   ;;  %v2223_v40 = vld [vmem:[%s2661_s7 + $0x170] ss:$8 sps:$4 sm:$0xff]  }
  0x7c   : > { %1689 = vmatprep.subr.bf16.mxu0 %v2137_v41  ;;  %v2226_v41 = vld [vmem:[%s2661_s7 + $0x370] ss:$8 sps:$4 sm:$0xff]  }
  0x7e   : > { %1608 = vmatpush1.bf16.msra.mxu1 %v2139_v42  ;;  %v2231_v42 = vld [vmem:[%s2661_s7 + $0x184] ss:$8 sps:$4 sm:$0xff]  }
  0x7f   : > { %1690 = vmatpush1.bf16.msra.mxu0 %v2140_v43  ;;  %1609 = vmatprep.subr.bf16.mxu1 %v2141_v44  ;;  %v2234_v43 = vld [vmem:[%s2661_s7 + $0x384] ss:$8 sps:$4 sm:$0xff]   ;;  %v2229_v44 = vld [vmem:[%s2661_s7 + $0x180] ss:$8 sps:$4 sm:$0xff]  }
  0x80   : > { %1691 = vmatprep.subr.bf16.mxu0 %v2143_v45  ;;  %v2232_v45 = vld [vmem:[%s2661_s7 + $0x380] ss:$8 sps:$4 sm:$0xff]  }
  0x82   : > { %1610 = vmatpush1.bf16.msra.mxu1 %v2145_v46  ;;  %v2237_v46 = vld [vmem:[%s2661_s7 + $0x194] ss:$8 sps:$4 sm:$0xff]  }
  0x83   : > { %1692 = vmatpush1.bf16.msra.mxu0 %v2146_v47  ;;  %1611 = vmatprep.subr.bf16.mxu1 %v2147_v48  ;;  %v2240_v47 = vld [vmem:[%s2661_s7 + $0x394] ss:$8 sps:$4 sm:$0xff]   ;;  %v2235_v48 = vld [vmem:[%s2661_s7 + $0x190] ss:$8 sps:$4 sm:$0xff]  }
  0x84   : > { %1693 = vmatprep.subr.bf16.mxu0 %v2149_v49  ;;  %v2238_v49 = vld [vmem:[%s2661_s7 + $0x390] ss:$8 sps:$4 sm:$0xff]  }
  0x86   : > { %1612 = vmatpush1.bf16.msra.mxu1 %v2151_v50  ;;  %v2243_v50 = vld [vmem:[%s2661_s7 + $0x1a4] ss:$8 sps:$4 sm:$0xff]  }
  0x87   : > { %1694 = vmatpush1.bf16.msra.mxu0 %v2152_v51  ;;  %1613 = vmatprep.subr.bf16.mxu1 %v2153_v52  ;;  %v2246_v51 = vld [vmem:[%s2661_s7 + $0x3a4] ss:$8 sps:$4 sm:$0xff]   ;;  %v2241_v52 = vld [vmem:[%s2661_s7 + $0x1a0] ss:$8 sps:$4 sm:$0xff]  }
  0x88   : > { %1695 = vmatprep.subr.bf16.mxu0 %v2155_v53  ;;  %v2244_v53 = vld [vmem:[%s2661_s7 + $0x3a0] ss:$8 sps:$4 sm:$0xff]  }
  0x8a   : > { %1614 = vmatpush1.bf16.msra.mxu1 %v2157_v54  ;;  %v2249_v54 = vld [vmem:[%s2661_s7 + $0x1b4] ss:$8 sps:$4 sm:$0xff]  }
  0x8b   : > { %1696 = vmatpush1.bf16.msra.mxu0 %v2158_v55  ;;  %1615 = vmatprep.subr.bf16.mxu1 %v2159_v56  ;;  %v2252_v55 = vld [vmem:[%s2661_s7 + $0x3b4] ss:$8 sps:$4 sm:$0xff]   ;;  %v2247_v56 = vld [vmem:[%s2661_s7 + $0x1b0] ss:$8 sps:$4 sm:$0xff]  }
  0x8c   : > { %1697 = vmatprep.subr.bf16.mxu0 %v2161_v57  ;;  %v2250_v57 = vld [vmem:[%s2661_s7 + $0x3b0] ss:$8 sps:$4 sm:$0xff]  }
  0x8e   : > { %1616 = vmatpush1.bf16.msra.mxu1 %v2163_v58  ;;  %v2255_v58 = vld [vmem:[%s2661_s7 + $0x1c4] ss:$8 sps:$4 sm:$0xff]  }
  0x8f   : > { %1698 = vmatpush1.bf16.msra.mxu0 %v2164_v59  ;;  %1617 = vmatprep.subr.bf16.mxu1 %v2165_v60  ;;  %v2258_v59 = vld [vmem:[%s2661_s7 + $0x3c4] ss:$8 sps:$4 sm:$0xff]   ;;  %v2253_v60 = vld [vmem:[%s2661_s7 + $0x1c0] ss:$8 sps:$4 sm:$0xff]  }
  0x90   : > { %1699 = vmatprep.subr.bf16.mxu0 %v2167_v61  ;;  %v2256_v61 = vld [vmem:[%s2661_s7 + $0x3c0] ss:$8 sps:$4 sm:$0xff]  }
  0x92   : > { %1618 = vmatpush1.bf16.msra.mxu1 %v2169_v62  ;;  %v2261_v62 = vld [vmem:[%s2661_s7 + $0x1d4] ss:$8 sps:$4 sm:$0xff]  }
  0x93   : > { %1700 = vmatpush1.bf16.msra.mxu0 %v2170_v63  ;;  %1619 = vmatprep.subr.bf16.mxu1 %v2171_v2  ;;  %v2264_v63 = vld [vmem:[%s2661_s7 + $0x3d4] ss:$8 sps:$4 sm:$0xff]   ;;  %v2259_v2 = vld [vmem:[%s2661_s7 + $0x1d0] ss:$8 sps:$4 sm:$0xff]  }
  0x94   : > { %1701 = vmatprep.subr.bf16.mxu0 %v2173_v3  ;;  %v2262_v3 = vld [vmem:[%s2661_s7 + $0x3d0] ss:$8 sps:$4 sm:$0xff]  }
  0x96   : > { %1620 = vmatpush1.bf16.msra.mxu1 %v2175_v4  ;;  %v2267_v4 = vld [vmem:[%s2661_s7 + $0x1e4] ss:$8 sps:$4 sm:$0xff]  }
  0x97   : > { %1702 = vmatpush1.bf16.msra.mxu0 %v2176_v5  ;;  %1630 = vmatprep.subr.bf16.mxu1 %v2181_v6  ;;  %v2270_v5 = vld [vmem:[%s2661_s7 + $0x3e4] ss:$8 sps:$4 sm:$0xff]   ;;  %v2265_v6 = vld [vmem:[%s2661_s7 + $0x1e0] ss:$8 sps:$4 sm:$0xff]  }
  0x98   : > { %1712 = vmatprep.subr.bf16.mxu0 %v2186_v7  ;;  %v2268_v7 = vld [vmem:[%s2661_s7 + $0x3e0] ss:$8 sps:$4 sm:$0xff]  }
  0x99   : > { %1622 = vmatmul.mubr.bf16.vlgmr.msra.gmra.mrb[0].mxu1 %v1888_v10  ;;  %v2273_v10 = vld [vmem:[%s2661_s7 + $0x1f4] ss:$8 sps:$4 sm:$0xff]  }
  0x9a   : > { %1704 = vmatmul.mubr.bf16.vlgmr.msra.gmra.mrb[0].mxu0 %v1892_v12  ;;  %1631 = vmatpush1.bf16.msra.mxu1 %v2179_v11  ;;  %v2276_v11 = vld [vmem:[%s2661_s7 + $0x3f4] ss:$8 sps:$4 sm:$0xff]   ;;  %v2271_v12 = vld [vmem:[%s2661_s7 + $0x1f0] ss:$8 sps:$4 sm:$0xff]  }
  0x9b   : > { %1713 = vmatpush1.bf16.msra.mxu0 %v2184_v13  ;;  %1632 = vmatprep.subr.bf16.mxu1 %v2189_v14  ;;  %v2274_v13 = vld [vmem:[%s2661_s7 + $0x3f0] ss:$8 sps:$4 sm:$0xff]   ;;  %v1890_v14 = vcombine.low %v2732_v8, %v2732_v8 }
  0x9c   : > { %1714 = vmatprep.subr.bf16.mxu0 %v2192_v15  ;;  %1662 = vmatprep.mubr.bf16.mxu1 %v1891_v16  ;;  %v1894_v15 = vcombine.low %v2737_v9, %v2737_v9  ;;  %v911_v16 = vlaneseq }
  0x9d   : > { %1744 = vmatprep.mubr.bf16.mxu0 %v1895_v0 }
  0x9e   : > { %1633 = vmatpush1.bf16.msra.mxu1 %v2187_v1  ;;  %v912_v0 = vshrl.u32 %v911_v16, 7 }
  0x9f   : > { %1715 = vmatpush1.bf16.msra.mxu0 %v2190_v17  ;;  %1634 = vmatprep.subr.bf16.mxu1 %v2195_v18  ;;  %v909_v17 = vld [vmem:[%s765_s21] sm:$0x3] }
  0xa0   : > { %1716 = vmatprep.subr.bf16.mxu0 %v2198_v19  ;;  %v913_v1 = vsub.s32 0, %v912_v0  ;;  %v917_v18 = vsub.s32 1, %v912_v0 }
  0xa2   : > { %1635 = vmatpush1.bf16.msra.mxu1 %v2193_v20  ;;  %v914_v8 = vrot.slane %v909_v17, %v913_v1  ;;  %v918_v19 = vrot.slane %v909_v17, %v917_v18 }
  0xa3   : > { %1717 = vmatpush1.bf16.msra.mxu0 %v2196_v21  ;;  %1636 = vmatprep.subr.bf16.mxu1 %v2201_v22 }
  0xa4   : > { %1718 = vmatprep.subr.bf16.mxu0 %v2204_v23 }
  0xa6   : > { %1637 = vmatpush1.bf16.msra.mxu1 %v2199_v24 }
  0xa7   : > { %1719 = vmatpush1.bf16.msra.mxu0 %v2202_v25  ;;  %1638 = vmatprep.subr.bf16.mxu1 %v2207_v26 }
  0xa8   : > { %1720 = vmatprep.subr.bf16.mxu0 %v2210_v27 }
  0xaa   : > { %1639 = vmatpush1.bf16.msra.mxu1 %v2205_v28 }
  0xab   : > { %1721 = vmatpush1.bf16.msra.mxu0 %v2208_v29  ;;  %1640 = vmatprep.subr.bf16.mxu1 %v2213_v30 }
  0xac   : > { %1722 = vmatprep.subr.bf16.mxu0 %v2216_v31 }
  0xae   : > { %1641 = vmatpush1.bf16.msra.mxu1 %v2211_v32 }
  0xaf   : > { %1723 = vmatpush1.bf16.msra.mxu0 %v2214_v33  ;;  %1642 = vmatprep.subr.bf16.mxu1 %v2219_v34 }
  0xb0   : > { %1724 = vmatprep.subr.bf16.mxu0 %v2222_v35 }
  0xb2   : > { %1643 = vmatpush1.bf16.msra.mxu1 %v2217_v36 }
  0xb3   : > { %1725 = vmatpush1.bf16.msra.mxu0 %v2220_v37  ;;  %1644 = vmatprep.subr.bf16.mxu1 %v2225_v38 }
  0xb4   : > { %1726 = vmatprep.subr.bf16.mxu0 %v2228_v39 }
  0xb6   : > { %1645 = vmatpush1.bf16.msra.mxu1 %v2223_v40 }
  0xb7   : > { %1727 = vmatpush1.bf16.msra.mxu0 %v2226_v41  ;;  %1646 = vmatprep.subr.bf16.mxu1 %v2231_v42 }
  0xb8   : > { %1728 = vmatprep.subr.bf16.mxu0 %v2234_v43 }
  0xba   : > { %1647 = vmatpush1.bf16.msra.mxu1 %v2229_v44 }
  0xbb   : > { %1729 = vmatpush1.bf16.msra.mxu0 %v2232_v45  ;;  %1648 = vmatprep.subr.bf16.mxu1 %v2237_v46 }
  0xbc   : > { %1730 = vmatprep.subr.bf16.mxu0 %v2240_v47 }
  0xbe   : > { %1649 = vmatpush1.bf16.msra.mxu1 %v2235_v48 }
  0xbf   : > { %1731 = vmatpush1.bf16.msra.mxu0 %v2238_v49  ;;  %1650 = vmatprep.subr.bf16.mxu1 %v2243_v50 }
  0xc0   : > { %1732 = vmatprep.subr.bf16.mxu0 %v2246_v51 }
  0xc2   : > { %1651 = vmatpush1.bf16.msra.mxu1 %v2241_v52 }
  0xc3   : > { %1733 = vmatpush1.bf16.msra.mxu0 %v2244_v53  ;;  %1652 = vmatprep.subr.bf16.mxu1 %v2249_v54 }
  0xc4   : > { %1734 = vmatprep.subr.bf16.mxu0 %v2252_v55 }
  0xc6   : > { %1653 = vmatpush1.bf16.msra.mxu1 %v2247_v56 }
  0xc7   : > { %1735 = vmatpush1.bf16.msra.mxu0 %v2250_v57  ;;  %1654 = vmatprep.subr.bf16.mxu1 %v2255_v58 }
  0xc8   : > { %1736 = vmatprep.subr.bf16.mxu0 %v2258_v59 }
  0xca   : > { %1655 = vmatpush1.bf16.msra.mxu1 %v2253_v60 }
  0xcb   : > { %1737 = vmatpush1.bf16.msra.mxu0 %v2256_v61  ;;  %1656 = vmatprep.subr.bf16.mxu1 %v2261_v62 }
  0xcc   : > { %1738 = vmatprep.subr.bf16.mxu0 %v2264_v63 }
  0xce   : > { %1657 = vmatpush1.bf16.msra.mxu1 %v2259_v2 }
  0xcf   : > { %1739 = vmatpush1.bf16.msra.mxu0 %v2262_v3  ;;  %1658 = vmatprep.subr.bf16.mxu1 %v2267_v4 }
  0xd0   : > { %1740 = vmatprep.subr.bf16.mxu0 %v2270_v5 }
  0xd2   : > { %1659 = vmatpush1.bf16.msra.mxu1 %v2265_v6 }
  0xd3   : > { %1741 = vmatpush1.bf16.msra.mxu0 %v2268_v7  ;;  %1660 = vmatprep.subr.bf16.mxu1 %v2273_v10 }
  0xd4   : > { %1742 = vmatprep.subr.bf16.mxu0 %v2276_v11 }
  0xd6   : > { %1661 = vmatpush1.bf16.msra.mxu1 %v2271_v12 }
  0xd7   : > { %1743 = vmatpush1.bf16.msra.mxu0 %v2274_v13 }
  0xd9   : > { %1663 = vmatmul.mubr.bf16.vlgmr.msra.gmra.mrb[0].mxu1 %v1890_v14 }
  0xda   : > { %1745 = vmatmul.mubr.bf16.vlgmr.msra.gmra.mrb[0].mxu0 %v1894_v15 }
 0x1ac   : > { %v1664_v20 = vpop.f32.mrb[0].mxu1 }
 0x1ad   : > { %v1746_v9 = vpop.f32.mrb[0].mxu0  ;;  %v2029_v21 = vadd.f32 %v1664_v20, %v914_v8  ;;  %v1666_v22 = vpop.f32.mrb[1].mxu1 }
 0x1ae   : > { %v1748_v23 = vpop.f32.mrb[1].mxu0  ;;  %v2031_v24 = vadd.f32 %v1666_v22, %v918_v19  ;;  %v1668_v25 = vpop.f32.mrb[2].mxu1 }
 0x1af   : > { %v1750_v26 = vpop.f32.mrb[2].mxu0  ;;  %v2030_v27 = vadd.f32 %v2029_v21, %v1746_v9  ;;  %v1669_v28 = vpop.f32.mrb[3].mxu1 }
 0x1b0   : > { %v1751_v29 = vpop.f32.mrb[3].mxu0  ;;  %v2032_v30 = vadd.f32 %v2031_v24, %v1748_v23 }
 0x1b1   : > { %v1753_v31 = vmax.f32 %v2030_v27, 0.0 }
 0x1b2   : > { %v1754_v32 = vmax.f32 %v2032_v30, 0.0 }
 0x1b4   : > { %v2028_v33 = vpack.c.bf16 %v1754_v32, %v1753_v31 }
 0x1b6   : > { %1763 = vst [vmem:[%s775_s24] sm:$0xff] %v2028_v33 }
 0x1b7 PF: > { %s13_s16 = sadd.s32 1, %s2319_s16   ;;  %s2839_s12 = smov %s2307_s13 }
 0x1b8   : > { %p10_p10 = scmp.ge.s32.totalorder %s13_s16, 4   ;;  %s2840_s13 = smov %s2376_s20 }
 0x1b9   : > { %s2841_s14 = smov %s2315_s15  ;;  %s2842_s15 = smov %s2844_s17 }
 0x1ba   :  { %12 = sbr.rel (!%p10_p10) target bundleno = 3 (0x3), region = 111 }

// kernel: anomaly_autoencoder_forward.11
= control target key start
LH: loop header
LB: loop body
LE: loop exit
PB: predicated region body
PF: predicated region fallthrough
CT: control target
= control target key end

     0   :  { %s2166_s12 = smov 0   ;;  %s2168_s13 = smov 0   ;;  %s2644_s0 = inlined_call_operand.vmem [shape: bf16[8,1152], index: 0, kind: input, shape index: {}]   ;;  %s2645_s1 = inlined_call_operand.vmem [shape: bf16[1152,256], index: 1, kind: input, shape index: {}]   ;;  %s2646_s2 = inlined_call_operand.vmem [shape: f32[1,256], index: 2, kind: input, shape index: {}]   ;;  %s2647_s3 = inlined_call_operand.vmem [shape: bf16[8,256], index: 3, kind: output, shape index: {}]  }
   0x1   :  { %s2170_s14 = smov 0   ;;  %s2172_s15 = smov 0  }
   0x2   :  { %s2174_s16 = smov 0  }
   0x3 LB: > { %s22_s17 = sadd.s32 1, %s2138_s15  ;;  %p65_p1 = scmp.ne.s32.totalorder %s2130_s13, %s2126_s12  ;;  %s2142_s16 = sphi %s2174_s16, %s13_s16   ;;  %s2138_s15 = sphi %s2172_s15, %s2651_s15   ;;  %s2134_s14 = sphi %s2170_s14, %s2650_s14   ;;  %s2130_s13 = sphi %s2168_s13, %s2649_s13   ;;  %s2126_s12 = sphi %s2166_s12, %s2648_s12  }
   0x4   : > { %p23_p0 = scmp.ge.s32.totalorder %s22_s17, 2  ;;  %p66_p2 = scmp.eq.s32.totalorder %s2142_s16, 0 }
   0x5   : > { %s58_s19 = sadd.s32 1, %s2130_s13  ;;  %p1774_p5 = scmp.ge.s32.totalorder %s2142_s16, 2 }
   0x6   : > { %s2653_s17 = smov (%p23_p0, %s22_s17), 0  ;;  %p67_p3 = por %p66_p2, %p65_p1 }
   0x7   : > { %s55_s18 = ssub.s32 %s2138_s15, %s2653_s17  ;;  %153 = sbr.rel (%p1774_p5) target bundleno = 114 (0x72), region = 20 }
   0x8   : > { %p56_p4 = scmp.eq.s32.totalorder %s55_s18, 0 }
   0xa   : > { %s2201_s20 = scalar_select %p56_p4, %s2130_s13, %s58_s19  }
   0xe   : > { %156 = sbr.rel (!%p67_p3) target bundleno = 114 (0x72), region = 24  ;;  %s158_s21 = sand.u32 (%p67_p3), 1, %s2130_s13  }
   0xf   : > { %s1775_s22 = sshll.u32 (%p67_p3), %s2138_s15, 2  ;;  %s1979_s23 = smul.u32 (%p67_p3), 576, %s158_s21 }
  0x10   : > { %s2209_s26 = scalar_lea.vmem (%p67_p3), %s2645_s1, %s1775_s22 }
  0x11   : > { %v178_v0 = vld [vmem:[%s2209_s26] sm:$0xf] (%p67_p3)  ;;  %v180_v1 = vld [vmem:[%s2209_s26 + $0x8] sm:$0xf] (%p67_p3)  ;;  %v182_v2 = vld [vmem:[%s2209_s26 + $0x10] sm:$0xf] (%p67_p3) }
  0x12   : > { %v184_v3 = vld [vmem:[%s2209_s26 + $0x18] sm:$0xf] (%p67_p3)  ;;  %v186_v4 = vld [vmem:[%s2209_s26 + $0x20] sm:$0xf] (%p67_p3)  ;;  %s2216_s27 = scalar_lea.vmem (%p67_p3), [#allocation2], %s1979_s23 }
  0x13   : > { %179 = vst [vmem:[%s2216_s27] sm:$0xf] (%p67_p3), %v178_v0  ;;  %181 = vst [vmem:[%s2216_s27 + $0x4] sm:$0xf] (%p67_p3), %v180_v1  ;;  %v188_v5 = vld [vmem:[%s2209_s26 + $0x28] sm:$0xf] (%p67_p3) }
  0x14   : > { %183 = vst [vmem:[%s2216_s27 + $0x8] sm:$0xf] (%p67_p3), %v182_v2  ;;  %185 = vst [vmem:[%s2216_s27 + $0xc] sm:$0xf] (%p67_p3), %v184_v3  ;;  %v190_v6 = vld [vmem:[%s2209_s26 + $0x30] sm:$0xf] (%p67_p3) }
  0x15   : > { %187 = vst [vmem:[%s2216_s27 + $0x10] sm:$0xf] %v186_v4  ;;  %v192_v7 = vld [vmem:[%s2209_s26 + $0x38] sm:$0xf]  ;;  %189 = vst [vmem:[%s2216_s27 + $0x14] sm:$0xf] %v188_v5 }
  0x16   : > { %191 = vst [vmem:[%s2216_s27 + $0x18] sm:$0xf] %v190_v6  ;;  %193 = vst [vmem:[%s2216_s27 + $0x1c] sm:$0xf] %v192_v7  ;;  %v194_v8 = vld [vmem:[%s2209_s26 + $0x40] sm:$0xf] }
  0x17   : > { %v196_v9 = vld [vmem:[%s2209_s26 + $0x48] sm:$0xf]  ;;  %v198_v10 = vld [vmem:[%s2209_s26 + $0x50] sm:$0xf]  ;;  %195 = vst [vmem:[%s2216_s27 + $0x20] sm:$0xf] %v194_v8 }
  0x18   : > { %197 = vst [vmem:[%s2216_s27 + $0x24] sm:$0xf] %v196_v9  ;;  %199 = vst [vmem:[%s2216_s27 + $0x28] sm:$0xf] %v198_v10  ;;  %v200_v11 = vld [vmem:[%s2209_s26 + $0x58] sm:$0xf] }
  0x19   : > { %v202_v12 = vld [vmem:[%s2209_s26 + $0x60] sm:$0xf]  ;;  %v204_v13 = vld [vmem:[%s2209_s26 + $0x68] sm:$0xf]  ;;  %201 = vst [vmem:[%s2216_s27 + $0x2c] sm:$0xf] %v200_v11 }
  0x1a   : > { %203 = vst [vmem:[%s2216_s27 + $0x30] sm:$0xf] %v202_v12  ;;  %205 = vst [vmem:[%s2216_s27 + $0x34] sm:$0xf] %v204_v13  ;;  %v206_v14 = vld [vmem:[%s2209_s26 + $0x70] sm:$0xf] }
  0x1b   : > { %v208_v15 = vld [vmem:[%s2209_s26 + $0x78] sm:$0xf]  ;;  %v210_v16 = vld [vmem:[%s2209_s26 + $0x80] sm:$0xf]  ;;  %207 = vst [vmem:[%s2216_s27 + $0x38] sm:$0xf] %v206_v14 }
  0x1c   : > { %209 = vst [vmem:[%s2216_s27 + $0x3c] sm:$0xf] %v208_v15  ;;  %211 = vst [vmem:[%s2216_s27 + $0x40] sm:$0xf] %v210_v16  ;;  %v212_v17 = vld [vmem:[%s2209_s26 + $0x88] sm:$0xf] }
  0x1d   : > { %v214_v18 = vld [vmem:[%s2209_s26 + $0x90] sm:$0xf]  ;;  %v216_v19 = vld [vmem:[%s2209_s26 + $0x98] sm:$0xf]  ;;  %213 = vst [vmem:[%s2216_s27 + $0x44] sm:$0xf] %v212_v17 }
  0x1e   : > { %215 = vst [vmem:[%s2216_s27 + $0x48] sm:$0xf] %v214_v18  ;;  %217 = vst [vmem:[%s2216_s27 + $0x4c] sm:$0xf] %v216_v19  ;;  %v218_v20 = vld [vmem:[%s2209_s26 + $0xa0] sm:$0xf] }
  0x1f   : > { %v220_v21 = vld [vmem:[%s2209_s26 + $0xa8] sm:$0xf]  ;;  %v222_v22 = vld [vmem:[%s2209_s26 + $0xb0] sm:$0xf]  ;;  %219 = vst [vmem:[%s2216_s27 + $0x50] sm:$0xf] %v218_v20 }
  0x20   : > { %221 = vst [vmem:[%s2216_s27 + $0x54] sm:$0xf] %v220_v21  ;;  %223 = vst [vmem:[%s2216_s27 + $0x58] sm:$0xf] %v222_v22  ;;  %v224_v23 = vld [vmem:[%s2209_s26 + $0xb8] sm:$0xf] }
  0x21   : > { %v226_v24 = vld [vmem:[%s2209_s26 + $0xc0] sm:$0xf]  ;;  %v228_v25 = vld [vmem:[%s2209_s26 + $0xc8] sm:$0xf]  ;;  %225 = vst [vmem:[%s2216_s27 + $0x5c] sm:$0xf] %v224_v23 }
  0x22   : > { %227 = vst [vmem:[%s2216_s27 + $0x60] sm:$0xf] %v226_v24  ;;  %229 = vst [vmem:[%s2216_s27 + $0x64] sm:$0xf] %v228_v25  ;;  %v230_v26 = vld [vmem:[%s2209_s26 + $0xd0] sm:$0xf] }
  0x23   : > { %v232_v27 = vld [vmem:[%s2209_s26 + $0xd8] sm:$0xf]  ;;  %v234_v28 = vld [vmem:[%s2209_s26 + $0xe0] sm:$0xf]  ;;  %231 = vst [vmem:[%s2216_s27 + $0x68] sm:$0xf] %v230_v26 }
  0x24   : > { %233 = vst [vmem:[%s2216_s27 + $0x6c] sm:$0xf] %v232_v27  ;;  %235 = vst [vmem:[%s2216_s27 + $0x70] sm:$0xf] %v234_v28  ;;  %v236_v29 = vld [vmem:[%s2209_s26 + $0xe8] sm:$0xf] }
  0x25   : > { %v238_v30 = vld [vmem:[%s2209_s26 + $0xf0] sm:$0xf]  ;;  %v240_v31 = vld [vmem:[%s2209_s26 + $0xf8] sm:$0xf]  ;;  %237 = vst [vmem:[%s2216_s27 + $0x74] sm:$0xf] %v236_v29 }
  0x26   : > { %239 = vst [vmem:[%s2216_s27 + $0x78] sm:$0xf] %v238_v30  ;;  %241 = vst [vmem:[%s2216_s27 + $0x7c] sm:$0xf] %v240_v31  ;;  %v242_v32 = vld [vmem:[%s2209_s26 + $0x100] sm:$0xf] }
  0x27   : > { %v244_v33 = vld [vmem:[%s2209_s26 + $0x108] sm:$0xf]  ;;  %v246_v34 = vld [vmem:[%s2209_s26 + $0x110] sm:$0xf]  ;;  %243 = vst [vmem:[%s2216_s27 + $0x80] sm:$0xf] %v242_v32 }
  0x28   : > { %245 = vst [vmem:[%s2216_s27 + $0x84] sm:$0xf] %v244_v33  ;;  %247 = vst [vmem:[%s2216_s27 + $0x88] sm:$0xf] %v246_v34  ;;  %v248_v35 = vld [vmem:[%s2209_s26 + $0x118] sm:$0xf] }
  0x29   : > { %v250_v36 = vld [vmem:[%s2209_s26 + $0x120] sm:$0xf]  ;;  %v252_v37 = vld [vmem:[%s2209_s26 + $0x128] sm:$0xf]  ;;  %249 = vst [vmem:[%s2216_s27 + $0x8c] sm:$0xf] %v248_v35 }
  0x2a   : > { %251 = vst [vmem:[%s2216_s27 + $0x90] sm:$0xf] %v250_v36  ;;  %253 = vst [vmem:[%s2216_s27 + $0x94] sm:$0xf] %v252_v37  ;;  %v254_v38 = vld [vmem:[%s2209_s26 + $0x130] sm:$0xf] }
  0x2b   : > { %v256_v39 = vld [vmem:[%s2209_s26 + $0x138] sm:$0xf]  ;;  %v258_v40 = vld [vmem:[%s2209_s26 + $0x140] sm:$0xf]  ;;  %255 = vst [vmem:[%s2216_s27 + $0x98] sm:$0xf] %v254_v38 }
  0x2c   : > { %257 = vst [vmem:[%s2216_s27 + $0x9c] sm:$0xf] %v256_v39  ;;  %259 = vst [vmem:[%s2216_s27 + $0xa0] sm:$0xf] %v258_v40  ;;  %v260_v41 = vld [vmem:[%s2209_s26 + $0x148] sm:$0xf] }
  0x2d   : > { %v262_v42 = vld [vmem:[%s2209_s26 + $0x150] sm:$0xf]  ;;  %v264_v43 = vld [vmem:[%s2209_s26 + $0x158] sm:$0xf]  ;;  %261 = vst [vmem:[%s2216_s27 + $0xa4] sm:$0xf] %v260_v41 }
  0x2e   : > { %263 = vst [vmem:[%s2216_s27 + $0xa8] sm:$0xf] %v262_v42  ;;  %265 = vst [vmem:[%s2216_s27 + $0xac] sm:$0xf] %v264_v43  ;;  %v266_v44 = vld [vmem:[%s2209_s26 + $0x160] sm:$0xf] }
  0x2f   : > { %v268_v45 = vld [vmem:[%s2209_s26 + $0x168] sm:$0xf]  ;;  %v270_v46 = vld [vmem:[%s2209_s26 + $0x170] sm:$0xf]  ;;  %267 = vst [vmem:[%s2216_s27 + $0xb0] sm:$0xf] %v266_v44 }
  0x30   : > { %269 = vst [vmem:[%s2216_s27 + $0xb4] sm:$0xf] %v268_v45  ;;  %271 = vst [vmem:[%s2216_s27 + $0xb8] sm:$0xf] %v270_v46  ;;  %v272_v47 = vld [vmem:[%s2209_s26 + $0x178] sm:$0xf] }
  0x31   : > { %v274_v48 = vld [vmem:[%s2209_s26 + $0x180] sm:$0xf]  ;;  %v276_v49 = vld [vmem:[%s2209_s26 + $0x188] sm:$0xf]  ;;  %273 = vst [vmem:[%s2216_s27 + $0xbc] sm:$0xf] %v272_v47 }
  0x32   : > { %275 = vst [vmem:[%s2216_s27 + $0xc0] sm:$0xf] %v274_v48  ;;  %277 = vst [vmem:[%s2216_s27 + $0xc4] sm:$0xf] %v276_v49  ;;  %v278_v50 = vld [vmem:[%s2209_s26 + $0x190] sm:$0xf] }
  0x33   : > { %v280_v51 = vld [vmem:[%s2209_s26 + $0x198] sm:$0xf]  ;;  %v282_v52 = vld [vmem:[%s2209_s26 + $0x1a0] sm:$0xf]  ;;  %279 = vst [vmem:[%s2216_s27 + $0xc8] sm:$0xf] %v278_v50 }
  0x34   : > { %281 = vst [vmem:[%s2216_s27 + $0xcc] sm:$0xf] %v280_v51  ;;  %283 = vst [vmem:[%s2216_s27 + $0xd0] sm:$0xf] %v282_v52  ;;  %v284_v53 = vld [vmem:[%s2209_s26 + $0x1a8] sm:$0xf] }
  0x35   : > { %v286_v54 = vld [vmem:[%s2209_s26 + $0x1b0] sm:$0xf]  ;;  %v288_v55 = vld [vmem:[%s2209_s26 + $0x1b8] sm:$0xf]  ;;  %285 = vst [vmem:[%s2216_s27 + $0xd4] sm:$0xf] %v284_v53 }
  0x36   : > { %287 = vst [vmem:[%s2216_s27 + $0xd8] sm:$0xf] %v286_v54  ;;  %289 = vst [vmem:[%s2216_s27 + $0xdc] sm:$0xf] %v288_v55  ;;  %v290_v56 = vld [vmem:[%s2209_s26 + $0x1c0] sm:$0xf] }
  0x37   : > { %v292_v57 = vld [vmem:[%s2209_s26 + $0x1c8] sm:$0xf]  ;;  %v294_v58 = vld [vmem:[%s2209_s26 + $0x1d0] sm:$0xf]  ;;  %291 = vst [vmem:[%s2216_s27 + $0xe0] sm:$0xf] %v290_v56 }
  0x38   : > { %293 = vst [vmem:[%s2216_s27 + $0xe4] sm:$0xf] %v292_v57  ;;  %295 = vst [vmem:[%s2216_s27 + $0xe8] sm:$0xf] %v294_v58  ;;  %v296_v59 = vld [vmem:[%s2209_s26 + $0x1d8] sm:$0xf] }
  0x39   : > { %v298_v60 = vld [vmem:[%s2209_s26 + $0x1e0] sm:$0xf]  ;;  %v300_v61 = vld [vmem:[%s2209_s26 + $0x1e8] sm:$0xf]  ;;  %297 = vst [vmem:[%s2216_s27 + $0xec] sm:$0xf] %v296_v59 }
  0x3a   : > { %299 = vst [vmem:[%s2216_s27 + $0xf0] sm:$0xf] %v298_v60  ;;  %301 = vst [vmem:[%s2216_s27 + $0xf4] sm:$0xf] %v300_v61  ;;  %v302_v62 = vld [vmem:[%s2209_s26 + $0x1f0] sm:$0xf] }
  0x3b   : > { %v304_v63 = vld [vmem:[%s2209_s26 + $0x1f8] sm:$0xf]  ;;  %v306_v0 = vld [vmem:[%s2209_s26 + $0x200] sm:$0xf]  ;;  %303 = vst [vmem:[%s2216_s27 + $0xf8] sm:$0xf] %v302_v62 }
  0x3c   : > { %305 = vst [vmem:[%s2216_s27 + $0xfc] sm:$0xf] %v304_v63  ;;  %307 = vst [vmem:[%s2216_s27 + $0x100] sm:$0xf] %v306_v0  ;;  %v308_v1 = vld [vmem:[%s2209_s26 + $0x208] sm:$0xf] }
  0x3d   : > { %v310_v2 = vld [vmem:[%s2209_s26 + $0x210] sm:$0xf]  ;;  %v312_v3 = vld [vmem:[%s2209_s26 + $0x218] sm:$0xf]  ;;  %309 = vst [vmem:[%s2216_s27 + $0x104] sm:$0xf] %v308_v1 }
  0x3e   : > { %311 = vst [vmem:[%s2216_s27 + $0x108] sm:$0xf] %v310_v2  ;;  %313 = vst [vmem:[%s2216_s27 + $0x10c] sm:$0xf] %v312_v3  ;;  %v314_v4 = vld [vmem:[%s2209_s26 + $0x220] sm:$0xf] }
  0x3f   : > { %v316_v5 = vld [vmem:[%s2209_s26 + $0x228] sm:$0xf]  ;;  %v318_v6 = vld [vmem:[%s2209_s26 + $0x230] sm:$0xf]  ;;  %315 = vst [vmem:[%s2216_s27 + $0x110] sm:$0xf] %v314_v4 }
  0x40   : > { %317 = vst [vmem:[%s2216_s27 + $0x114] sm:$0xf] %v316_v5  ;;  %319 = vst [vmem:[%s2216_s27 + $0x118] sm:$0xf] %v318_v6  ;;  %v320_v7 = vld [vmem:[%s2209_s26 + $0x238] sm:$0xf] }
  0x41   : > { %v322_v8 = vld [vmem:[%s2209_s26 + $0x240] sm:$0xf]  ;;  %v324_v9 = vld [vmem:[%s2209_s26 + $0x248] sm:$0xf]  ;;  %321 = vst [vmem:[%s2216_s27 + $0x11c] sm:$0xf] %v320_v7 }
  0x42   : > { %323 = vst [vmem:[%s2216_s27 + $0x120] sm:$0xf] %v322_v8  ;;  %325 = vst [vmem:[%s2216_s27 + $0x124] sm:$0xf] %v324_v9  ;;  %v326_v10 = vld [vmem:[%s2209_s26 + $0x250] sm:$0xf] }
  0x43   : > { %v328_v11 = vld [vmem:[%s2209_s26 + $0x258] sm:$0xf]  ;;  %v330_v12 = vld [vmem:[%s2209_s26 + $0x260] sm:$0xf]  ;;  %327 = vst [vmem:[%s2216_s27 + $0x128] sm:$0xf] %v326_v10 }
  0x44   : > { %329 = vst [vmem:[%s2216_s27 + $0x12c] sm:$0xf] %v328_v11  ;;  %331 = vst [vmem:[%s2216_s27 + $0x130] sm:$0xf] %v330_v12  ;;  %v332_v13 = vld [vmem:[%s2209_s26 + $0x268] sm:$0xf] }
  0x45   : > { %v334_v14 = vld [vmem:[%s2209_s26 + $0x270] sm:$0xf]  ;;  %v336_v15 = vld [vmem:[%s2209_s26 + $0x278] sm:$0xf]  ;;  %333 = vst [vmem:[%s2216_s27 + $0x134] sm:$0xf] %v332_v13 }
  0x46   : > { %335 = vst [vmem:[%s2216_s27 + $0x138] sm:$0xf] %v334_v14  ;;  %337 = vst [vmem:[%s2216_s27 + $0x13c] sm:$0xf] %v336_v15  ;;  %v338_v16 = vld [vmem:[%s2209_s26 + $0x280] sm:$0xf] }
  0x47   : > { %v340_v17 = vld [vmem:[%s2209_s26 + $0x288] sm:$0xf]  ;;  %v342_v18 = vld [vmem:[%s2209_s26 + $0x290] sm:$0xf]  ;;  %339 = vst [vmem:[%s2216_s27 + $0x140] sm:$0xf] %v338_v16 }
  0x48   : > { %341 = vst [vmem:[%s2216_s27 + $0x144] sm:$0xf] %v340_v17  ;;  %343 = vst [vmem:[%s2216_s27 + $0x148] sm:$0xf] %v342_v18  ;;  %v344_v19 = vld [vmem:[%s2209_s26 + $0x298] sm:$0xf] }
  0x49   : > { %v346_v20 = vld [vmem:[%s2209_s26 + $0x2a0] sm:$0xf]  ;;  %v348_v21 = vld [vmem:[%s2209_s26 + $0x2a8] sm:$0xf]  ;;  %345 = vst [vmem:[%s2216_s27 + $0x14c] sm:$0xf] %v344_v19 }
  0x4a   : > { %347 = vst [vmem:[%s2216_s27 + $0x150] sm:$0xf] %v346_v20  ;;  %349 = vst [vmem:[%s2216_s27 + $0x154] sm:$0xf] %v348_v21  ;;  %v350_v22 = vld [vmem:[%s2209_s26 + $0x2b0] sm:$0xf] }
  0x4b   : > { %v352_v23 = vld [vmem:[%s2209_s26 + $0x2b8] sm:$0xf]  ;;  %v354_v24 = vld [vmem:[%s2209_s26 + $0x2c0] sm:$0xf]  ;;  %351 = vst [vmem:[%s2216_s27 + $0x158] sm:$0xf] %v350_v22 }
  0x4c   : > { %353 = vst [vmem:[%s2216_s27 + $0x15c] sm:$0xf] %v352_v23  ;;  %355 = vst [vmem:[%s2216_s27 + $0x160] sm:$0xf] %v354_v24  ;;  %v356_v25 = vld [vmem:[%s2209_s26 + $0x2c8] sm:$0xf] }
  0x4d   : > { %v358_v26 = vld [vmem:[%s2209_s26 + $0x2d0] sm:$0xf]  ;;  %v360_v27 = vld [vmem:[%s2209_s26 + $0x2d8] sm:$0xf]  ;;  %357 = vst [vmem:[%s2216_s27 + $0x164] sm:$0xf] %v356_v25 }
  0x4e   : > { %359 = vst [vmem:[%s2216_s27 + $0x168] sm:$0xf] %v358_v26  ;;  %361 = vst [vmem:[%s2216_s27 + $0x16c] sm:$0xf] %v360_v27  ;;  %v362_v28 = vld [vmem:[%s2209_s26 + $0x2e0] sm:$0xf] }
  0x4f   : > { %v364_v29 = vld [vmem:[%s2209_s26 + $0x2e8] sm:$0xf]  ;;  %v366_v30 = vld [vmem:[%s2209_s26 + $0x2f0] sm:$0xf]  ;;  %363 = vst [vmem:[%s2216_s27 + $0x170] sm:$0xf] %v362_v28 }
  0x50   : > { %365 = vst [vmem:[%s2216_s27 + $0x174] sm:$0xf] %v364_v29  ;;  %367 = vst [vmem:[%s2216_s27 + $0x178] sm:$0xf] %v366_v30  ;;  %v368_v31 = vld [vmem:[%s2209_s26 + $0x2f8] sm:$0xf] }
  0x51   : > { %v370_v32 = vld [vmem:[%s2209_s26 + $0x300] sm:$0xf]  ;;  %v372_v33 = vld [vmem:[%s2209_s26 + $0x308] sm:$0xf]  ;;  %369 = vst [vmem:[%s2216_s27 + $0x17c] sm:$0xf] %v368_v31 }
  0x52   : > { %371 = vst [vmem:[%s2216_s27 + $0x180] sm:$0xf] %v370_v32  ;;  %373 = vst [vmem:[%s2216_s27 + $0x184] sm:$0xf] %v372_v33  ;;  %v374_v34 = vld [vmem:[%s2209_s26 + $0x310] sm:$0xf] }
  0x53   : > { %v376_v35 = vld [vmem:[%s2209_s26 + $0x318] sm:$0xf]  ;;  %v378_v36 = vld [vmem:[%s2209_s26 + $0x320] sm:$0xf]  ;;  %375 = vst [vmem:[%s2216_s27 + $0x188] sm:$0xf] %v374_v34 }
  0x54   : > { %377 = vst [vmem:[%s2216_s27 + $0x18c] sm:$0xf] %v376_v35  ;;  %379 = vst [vmem:[%s2216_s27 + $0x190] sm:$0xf] %v378_v36  ;;  %v380_v37 = vld [vmem:[%s2209_s26 + $0x328] sm:$0xf] }
  0x55   : > { %v382_v38 = vld [vmem:[%s2209_s26 + $0x330] sm:$0xf]  ;;  %v384_v39 = vld [vmem:[%s2209_s26 + $0x338] sm:$0xf]  ;;  %381 = vst [vmem:[%s2216_s27 + $0x194] sm:$0xf] %v380_v37 }
  0x56   : > { %383 = vst [vmem:[%s2216_s27 + $0x198] sm:$0xf] %v382_v38  ;;  %385 = vst [vmem:[%s2216_s27 + $0x19c] sm:$0xf] %v384_v39  ;;  %v386_v40 = vld [vmem:[%s2209_s26 + $0x340] sm:$0xf] }
  0x57   : > { %v388_v41 = vld [vmem:[%s2209_s26 + $0x348] sm:$0xf]  ;;  %v390_v42 = vld [vmem:[%s2209_s26 + $0x350] sm:$0xf]  ;;  %387 = vst [vmem:[%s2216_s27 + $0x1a0] sm:$0xf] %v386_v40 }
  0x58   : > { %389 = vst [vmem:[%s2216_s27 + $0x1a4] sm:$0xf] %v388_v41  ;;  %391 = vst [vmem:[%s2216_s27 + $0x1a8] sm:$0xf] %v390_v42  ;;  %v392_v43 = vld [vmem:[%s2209_s26 + $0x358] sm:$0xf] }
  0x59   : > { %v394_v44 = vld [vmem:[%s2209_s26 + $0x360] sm:$0xf]  ;;  %v396_v45 = vld [vmem:[%s2209_s26 + $0x368] sm:$0xf]  ;;  %393 = vst [vmem:[%s2216_s27 + $0x1ac] sm:$0xf] %v392_v43 }
  0x5a   : > { %395 = vst [vmem:[%s2216_s27 + $0x1b0] sm:$0xf] %v394_v44  ;;  %397 = vst [vmem:[%s2216_s27 + $0x1b4] sm:$0xf] %v396_v45  ;;  %v398_v46 = vld [vmem:[%s2209_s26 + $0x370] sm:$0xf] }
  0x5b   : > { %v400_v47 = vld [vmem:[%s2209_s26 + $0x378] sm:$0xf]  ;;  %v402_v48 = vld [vmem:[%s2209_s26 + $0x380] sm:$0xf]  ;;  %399 = vst [vmem:[%s2216_s27 + $0x1b8] sm:$0xf] %v398_v46 }
  0x5c   : > { %401 = vst [vmem:[%s2216_s27 + $0x1bc] sm:$0xf] %v400_v47  ;;  %403 = vst [vmem:[%s2216_s27 + $0x1c0] sm:$0xf] %v402_v48  ;;  %v404_v49 = vld [vmem:[%s2209_s26 + $0x388] sm:$0xf] }
  0x5d   : > { %v406_v50 = vld [vmem:[%s2209_s26 + $0x390] sm:$0xf]  ;;  %v408_v51 = vld [vmem:[%s2209_s26 + $0x398] sm:$0xf]  ;;  %405 = vst [vmem:[%s2216_s27 + $0x1c4] sm:$0xf] %v404_v49 }
  0x5e   : > { %407 = vst [vmem:[%s2216_s27 + $0x1c8] sm:$0xf] %v406_v50  ;;  %409 = vst [vmem:[%s2216_s27 + $0x1cc] sm:$0xf] %v408_v51  ;;  %v410_v52 = vld [vmem:[%s2209_s26 + $0x3a0] sm:$0xf] }
  0x5f   : > { %v412_v53 = vld [vmem:[%s2209_s26 + $0x3a8] sm:$0xf]  ;;  %v414_v54 = vld [vmem:[%s2209_s26 + $0x3b0] sm:$0xf]  ;;  %411 = vst [vmem:[%s2216_s27 + $0x1d0] sm:$0xf] %v410_v52 }
  0x60   : > { %413 = vst [vmem:[%s2216_s27 + $0x1d4] sm:$0xf] %v412_v53  ;;  %415 = vst [vmem:[%s2216_s27 + $0x1d8] sm:$0xf] %v414_v54  ;;  %v416_v55 = vld [vmem:[%s2209_s26 + $0x3b8] sm:$0xf] }
  0x61   : > { %v418_v56 = vld [vmem:[%s2209_s26 + $0x3c0] sm:$0xf]  ;;  %v420_v57 = vld [vmem:[%s2209_s26 + $0x3c8] sm:$0xf]  ;;  %417 = vst [vmem:[%s2216_s27 + $0x1dc] sm:$0xf] %v416_v55 }
  0x62   : > { %419 = vst [vmem:[%s2216_s27 + $0x1e0] sm:$0xf] %v418_v56  ;;  %421 = vst [vmem:[%s2216_s27 + $0x1e4] sm:$0xf] %v420_v57  ;;  %v422_v58 = vld [vmem:[%s2209_s26 + $0x3d0] sm:$0xf] }
  0x63   : > { %v424_v59 = vld [vmem:[%s2209_s26 + $0x3d8] sm:$0xf]  ;;  %v426_v60 = vld [vmem:[%s2209_s26 + $0x3e0] sm:$0xf]  ;;  %423 = vst [vmem:[%s2216_s27 + $0x1e8] sm:$0xf] %v422_v58 }
  0x64   : > { %425 = vst [vmem:[%s2216_s27 + $0x1ec] sm:$0xf] %v424_v59  ;;  %427 = vst [vmem:[%s2216_s27 + $0x1f0] sm:$0xf] %v426_v60  ;;  %v428_v61 = vld [vmem:[%s2209_s26 + $0x3e8] sm:$0xf] }
  0x65   : > { %v430_v62 = vld [vmem:[%s2209_s26 + $0x3f0] sm:$0xf]  ;;  %v432_v63 = vld [vmem:[%s2209_s26 + $0x3f8] sm:$0xf]  ;;  %429 = vst [vmem:[%s2216_s27 + $0x1f4] sm:$0xf] %v428_v61 }
  0x66   : > { %431 = vst [vmem:[%s2216_s27 + $0x1f8] sm:$0xf] %v430_v62  ;;  %433 = vst [vmem:[%s2216_s27 + $0x1fc] sm:$0xf] %v432_v63  ;;  %v434_v0 = vld [vmem:[%s2209_s26 + $0x400] sm:$0xf] }
  0x67   : > { %v436_v1 = vld [vmem:[%s2209_s26 + $0x408] sm:$0xf]  ;;  %v438_v2 = vld [vmem:[%s2209_s26 + $0x410] sm:$0xf]  ;;  %435 = vst [vmem:[%s2216_s27 + $0x200] sm:$0xf] %v434_v0 }
  0x68   : > { %437 = vst [vmem:[%s2216_s27 + $0x204] sm:$0xf] %v436_v1  ;;  %439 = vst [vmem:[%s2216_s27 + $0x208] sm:$0xf] %v438_v2  ;;  %v440_v3 = vld [vmem:[%s2209_s26 + $0x418] sm:$0xf] }
  0x69   : > { %v442_v4 = vld [vmem:[%s2209_s26 + $0x420] sm:$0xf]  ;;  %v444_v5 = vld [vmem:[%s2209_s26 + $0x428] sm:$0xf]  ;;  %441 = vst [vmem:[%s2216_s27 + $0x20c] sm:$0xf] %v440_v3 }
  0x6a   : > { %443 = vst [vmem:[%s2216_s27 + $0x210] sm:$0xf] %v442_v4  ;;  %445 = vst [vmem:[%s2216_s27 + $0x214] sm:$0xf] %v444_v5  ;;  %v446_v6 = vld [vmem:[%s2209_s26 + $0x430] sm:$0xf] }
  0x6b   : > { %v448_v7 = vld [vmem:[%s2209_s26 + $0x438] sm:$0xf]  ;;  %v450_v8 = vld [vmem:[%s2209_s26 + $0x440] sm:$0xf]  ;;  %447 = vst [vmem:[%s2216_s27 + $0x218] sm:$0xf] %v446_v6 }
  0x6c   : > { %449 = vst [vmem:[%s2216_s27 + $0x21c] sm:$0xf] %v448_v7  ;;  %451 = vst [vmem:[%s2216_s27 + $0x220] sm:$0xf] %v450_v8  ;;  %v452_v9 = vld [vmem:[%s2209_s26 + $0x448] sm:$0xf] }
  0x6d   : > { %v454_v10 = vld [vmem:[%s2209_s26 + $0x450] sm:$0xf]  ;;  %v456_v11 = vld [vmem:[%s2209_s26 + $0x458] sm:$0xf]  ;;  %453 = vst [vmem:[%s2216_s27 + $0x224] sm:$0xf] %v452_v9 }
  0x6e   : > { %455 = vst [vmem:[%s2216_s27 + $0x228] sm:$0xf] %v454_v10  ;;  %457 = vst [vmem:[%s2216_s27 + $0x22c] sm:$0xf] %v456_v11  ;;  %v458_v12 = vld [vmem:[%s2209_s26 + $0x460] sm:$0xf] }
  0x6f   : > { %v460_v13 = vld [vmem:[%s2209_s26 + $0x468] sm:$0xf]  ;;  %v462_v14 = vld [vmem:[%s2209_s26 + $0x470] sm:$0xf]  ;;  %459 = vst [vmem:[%s2216_s27 + $0x230] sm:$0xf] %v458_v12 }
  0x70   : > { %461 = vst [vmem:[%s2216_s27 + $0x234] sm:$0xf] %v460_v13  ;;  %463 = vst [vmem:[%s2216_s27 + $0x238] sm:$0xf] %v462_v14  ;;  %v464_v15 = vld [vmem:[%s2209_s26 + $0x478] sm:$0xf] }
  0x71   : > { %465 = vst [vmem:[%s2216_s27 + $0x23c] sm:$0xf] %v464_v15 }
  0x72 PF: > { %p1776_p6 = scmp.ge.s32.totalorder %s2142_s16, 1  ;;  %p781_p7 = scmp.lt.s32.totalorder %s2142_s16, 3 }
  0x74   : > { %p782_p8 = pnand %p1776_p6, %p781_p7 }
  0x75   : > { %s788_s28 = sand.u32 (!%p782_p8), 1, %s2126_s12   ;;  %v2507_v16 = vld [vmem:[%s2644_s0] sm:$0xff] (!%p782_p8)  ;;  %v2512_v17 = vld [vmem:[%s2644_s0 + $0x8] sm:$0xff] (!%p782_p8)  ;;  %v2550_v47 = vld [vmem:[%s2644_s0 + $0x10] sm:$0xff] (!%p782_p8)  ;;  %vm2145_vm0 = vmmov (!%p782_p8), 0   ;;  %p827_p9 = scmp.lt.s32.totalorder (!%p782_p8), %s2134_s14, 1 }
  0x76   : > { %785 = sbr.rel (%p782_p8) target bundleno = 438 (0x1b6), region = 69  ;;  %v1780_v18 = vcombine.high (!%p782_p8), %v2507_v16, %v2507_v16  ;;  %v1782_v19 = vcombine.high (!%p782_p8), %v2512_v17, %v2512_v17  ;;  %v2557_v50 = vld [vmem:[%s2644_s0 + $0x18] sm:$0xff] (!%p782_p8)  ;;  %v1779_v53 = vcombine.low (!%p782_p8), %v2507_v16, %v2507_v16  ;;  %v1784_v55 = vcombine.high (!%p782_p8), %v2550_v47, %v2550_v47 }
  0x77   : > { %s1980_s6 = smul.u32 (!%p782_p8), 576, %s788_s28  ;;  %v1781_v57 = vcombine.low (!%p782_p8), %v2512_v17, %v2512_v17  ;;  %v1786_v59 = vcombine.high (!%p782_p8), %v2557_v50, %v2557_v50 }
  0x78   : > { %1491 = vmatprep.mubr.bf16.mxu0 (!%p782_p8), %v1780_v18  ;;  %1531 = vmatprep.mubr.bf16.mxu1 (!%p782_p8), %v1782_v19 }
  0x79   : > { %s2518_s7 = scalar_lea.vmem (!%p782_p8), [#allocation2], %s1980_s6 }
  0x7a   : > { %v2023_v20 = vld [vmem:[%s2518_s7 + $0x40] sm:$0xff] (!%p782_p8)   ;;  %v2027_v24 = vld [vmem:[%s2518_s7 + $0x48] sm:$0xff] (!%p782_p8)   ;;  %v2031_v28 = vld [vmem:[%s2518_s7 + $0x50] sm:$0xff] (!%p782_p8)  }
  0x7b   : > { %v2024_v21 = vld [vmem:[%s2518_s7] sm:$0xff] (!%p782_p8)   ;;  %1862 = vmatprep.subr.bf16.mxu0 (!%p782_p8), %v2023_v20  ;;  %v2028_v25 = vld [vmem:[%s2518_s7 + $0x8] sm:$0xff] (!%p782_p8)   ;;  %v2032_v29 = vld [vmem:[%s2518_s7 + $0x10] sm:$0xff] (!%p782_p8)  }
  0x7c   : > { %v2025_v22 = vld [vmem:[%s2518_s7 + $0xc0] sm:$0xff] (!%p782_p8)   ;;  %1863 = vmatpush3.bf16.msra.mxu0 (!%p782_p8), %v2024_v21  ;;  %v2029_v26 = vld [vmem:[%s2518_s7 + $0xc8] sm:$0xff] (!%p782_p8)   ;;  %v2033_v30 = vld [vmem:[%s2518_s7 + $0xd0] sm:$0xff] (!%p782_p8)  }
  0x7d   : > { %v2026_v23 = vld [vmem:[%s2518_s7 + $0x80] sm:$0xff]   ;;  %1884 = vmatprep.subr.bf16.mxu1 %v2025_v22  ;;  %1864 = vmatprep.subr.bf16.mxu0 %v2027_v24  ;;  %v2030_v27 = vld [vmem:[%s2518_s7 + $0x88] sm:$0xff]   ;;  %v2034_v31 = vld [vmem:[%s2518_s7 + $0x90] sm:$0xff]   ;;  %s2655_s14 = smov (!%p827_p9, %s2134_s14), 1 }
  0x7e   : > { %1885 = vmatpush3.bf16.msra.mxu1 %v2026_v23  ;;  %v2035_v32 = vld [vmem:[%s2518_s7 + $0x58] sm:$0xff]   ;;  %v2039_v36 = vld [vmem:[%s2518_s7 + $0x60] sm:$0xff]   ;;  %v2043_v40 = vld [vmem:[%s2518_s7 + $0x68] sm:$0xff]   ;;  %s829_s22 = scalar_lea.vmem %s2646_s2, %s2655_s14  ;;  %s1777_s23 = sshll.u32 %s2655_s14, 2 }
  0x7f   : > { %1886 = vmatprep.subr.bf16.mxu1 %v2029_v26  ;;  %v2036_v33 = vld [vmem:[%s2518_s7 + $0x18] sm:$0xff]   ;;  %v2040_v37 = vld [vmem:[%s2518_s7 + $0x20] sm:$0xff]   ;;  %v2044_v41 = vld [vmem:[%s2518_s7 + $0x28] sm:$0xff]   ;;  %s837_s26 = scalar_lea.vmem %s2647_s3, %s1777_s23 }
  0x80   : > { %1865 = vmatpush3.bf16.msra.mxu0 %v2028_v25  ;;  %v2037_v34 = vld [vmem:[%s2518_s7 + $0xd8] sm:$0xff]   ;;  %v2041_v38 = vld [vmem:[%s2518_s7 + $0xe0] sm:$0xff]   ;;  %v2045_v42 = vld [vmem:[%s2518_s7 + $0xe8] sm:$0xff]   ;;  %v1783_v25 = vcombine.low %v2550_v47, %v2550_v47 }
  0x81   : > { %1866 = vmatprep.subr.bf16.mxu0 %v2031_v28  ;;  %v2038_v35 = vld [vmem:[%s2518_s7 + $0x98] sm:$0xff]   ;;  %v2042_v39 = vld [vmem:[%s2518_s7 + $0xa0] sm:$0xff]   ;;  %v2046_v43 = vld [vmem:[%s2518_s7 + $0xa8] sm:$0xff]   ;;  %v1785_v28 = vcombine.low %v2557_v50, %v2557_v50 }
  0x82   : > { %1887 = vmatpush3.bf16.msra.mxu1 %v2030_v27  ;;  %v2047_v44 = vld [vmem:[%s2518_s7 + $0x70] sm:$0xff]   ;;  %v2051_v49 = vld [vmem:[%s2518_s7 + $0x78] sm:$0xff]   ;;  %v2057_v56 = vld [vmem:[%s2518_s7 + $0x140] sm:$0xff]   ;;  %v2144_v27 = vmov 0.0  }
  0x83   : > { %1888 = vmatprep.subr.bf16.mxu1 %v2033_v30  ;;  %v2048_v45 = vld [vmem:[%s2518_s7 + $0x30] sm:$0xff]   ;;  %v2052_v51 = vld [vmem:[%s2518_s7 + $0x38] sm:$0xff]   ;;  %v2060_v58 = vld [vmem:[%s2518_s7 + $0x100] sm:$0xff]  }
  0x84   : > { %1867 = vmatpush3.bf16.msra.mxu0 %v2032_v29  ;;  %v2049_v46 = vld [vmem:[%s2518_s7 + $0xf0] sm:$0xff]   ;;  %v2053_v52 = vld [vmem:[%s2518_s7 + $0xf8] sm:$0xff]   ;;  %v2061_v60 = vld [vmem:[%s2518_s7 + $0x1c0] sm:$0xff]  }
  0x85   : > { %1868 = vmatprep.subr.bf16.mxu0 %v2035_v32  ;;  %v2050_v48 = vld [vmem:[%s2518_s7 + $0xb0] sm:$0xff]   ;;  %v2056_v54 = vld [vmem:[%s2518_s7 + $0xb8] sm:$0xff]   ;;  %v2062_v61 = vld [vmem:[%s2518_s7 + $0x180] sm:$0xff]  }
  0x86   : > { %1889 = vmatpush3.bf16.msra.mxu1 %v2034_v31  ;;  %v2063_v62 = vld [vmem:[%s2518_s7 + $0x148] sm:$0xff]   ;;  %v2067_v2 = vld [vmem:[%s2518_s7 + $0x150] sm:$0xff]   ;;  %v2071_v6 = vld [vmem:[%s2518_s7 + $0x158] sm:$0xff]  }
  0x87   : > { %1890 = vmatprep.subr.bf16.mxu1 %v2037_v34  ;;  %v2064_v63 = vld [vmem:[%s2518_s7 + $0x108] sm:$0xff]   ;;  %v2068_v3 = vld [vmem:[%s2518_s7 + $0x110] sm:$0xff]   ;;  %v2072_v7 = vld [vmem:[%s2518_s7 + $0x118] sm:$0xff]  }
  0x88   : > { %1869 = vmatpush3.bf16.msra.mxu0 %v2036_v33  ;;  %v2065_v0 = vld [vmem:[%s2518_s7 + $0x1c8] sm:$0xff]   ;;  %v2069_v4 = vld [vmem:[%s2518_s7 + $0x1d0] sm:$0xff]   ;;  %v2073_v8 = vld [vmem:[%s2518_s7 + $0x1d8] sm:$0xff]  }
  0x89   : > { %1870 = vmatprep.subr.bf16.mxu0 %v2039_v36  ;;  %v2066_v1 = vld [vmem:[%s2518_s7 + $0x188] sm:$0xff]   ;;  %v2070_v5 = vld [vmem:[%s2518_s7 + $0x190] sm:$0xff]   ;;  %v2074_v9 = vld [vmem:[%s2518_s7 + $0x198] sm:$0xff]  }
  0x8a   : > { %1891 = vmatpush3.bf16.msra.mxu1 %v2038_v35  ;;  %v2075_v10 = vld [vmem:[%s2518_s7 + $0x160] sm:$0xff]   ;;  %v2079_v14 = vld [vmem:[%s2518_s7 + $0x168] sm:$0xff]   ;;  %v2083_v18 = vld [vmem:[%s2518_s7 + $0x170] sm:$0xff]  }
  0x8b   : > { %1892 = vmatprep.subr.bf16.mxu1 %v2041_v38  ;;  %v2076_v11 = vld [vmem:[%s2518_s7 + $0x120] sm:$0xff]   ;;  %v2080_v15 = vld [vmem:[%s2518_s7 + $0x128] sm:$0xff]   ;;  %v2084_v19 = vld [vmem:[%s2518_s7 + $0x130] sm:$0xff]  }
  0x8c   : > { %1871 = vmatpush3.bf16.msra.mxu0 %v2040_v37  ;;  %v2077_v12 = vld [vmem:[%s2518_s7 + $0x1e0] sm:$0xff]   ;;  %v2081_v16 = vld [vmem:[%s2518_s7 + $0x1e8] sm:$0xff]   ;;  %v2085_v20 = vld [vmem:[%s2518_s7 + $0x1f0] sm:$0xff]  }
  0x8d   : > { %1872 = vmatprep.subr.bf16.mxu0 %v2043_v40  ;;  %v2078_v13 = vld [vmem:[%s2518_s7 + $0x1a0] sm:$0xff]   ;;  %v2082_v17 = vld [vmem:[%s2518_s7 + $0x1a8] sm:$0xff]   ;;  %v2086_v21 = vld [vmem:[%s2518_s7 + $0x1b0] sm:$0xff]  }
  0x8e   : > { %1893 = vmatpush3.bf16.msra.mxu1 %v2042_v39  ;;  %v2087_v22 = vld [vmem:[%s2518_s7 + $0x178] sm:$0xff]   ;;  %v2095_v29 = vld [vmem:[%s2518_s7 + $0x200] sm:$0xff]   ;;  %v2096_v30 = vld [vmem:[%s2518_s7 + $0x208] sm:$0xff]  }
  0x8f   : > { %1894 = vmatprep.subr.bf16.mxu1 %v2045_v42  ;;  %v2088_v23 = vld [vmem:[%s2518_s7 + $0x138] sm:$0xff]   ;;  %v2097_v31 = vld [vmem:[%s2518_s7 + $0x210] sm:$0xff]   ;;  %v2099_v33 = vld [vmem:[%s2518_s7 + $0x220] sm:$0xff]  }
  0x90   : > { %1873 = vmatpush3.bf16.msra.mxu0 %v2044_v41  ;;  %v2089_v24 = vld [vmem:[%s2518_s7 + $0x1f8] sm:$0xff]   ;;  %v2100_v34 = vld [vmem:[%s2518_s7 + $0x228] sm:$0xff]   ;;  %v2101_v35 = vld [vmem:[%s2518_s7 + $0x230] sm:$0xff]  }
  0x91   : > { %1874 = vmatprep.subr.bf16.mxu0 %v2047_v44  ;;  %v2092_v26 = vld [vmem:[%s2518_s7 + $0x1b8] sm:$0xff]   ;;  %v2103_v37 = vld [vmem:[%s2644_s0 + $0x20] ss:$0 sps:$4 sm:$0xff]  }
  0x92   : > { %1895 = vmatpush3.bf16.msra.mxu1 %v2046_v43  ;;  %v2098_v32 = vld [vmem:[%s2518_s7 + $0x218] sm:$0xff]   ;;  %v1778_v39 = vld [vmem:[%s829_s22] ss:$0 sm:$0xff] }
  0x93   : > { %1896 = vmatprep.subr.bf16.mxu1 %v2049_v46  ;;  %v2102_v36 = vld [vmem:[%s2518_s7 + $0x238] sm:$0xff]  }
  0x94   : > { %1875 = vmatpush3.bf16.msra.mxu0 %v2048_v45 }
  0x95   : > { %1876 = vmatprep.subr.bf16.mxu0 %v2051_v49 }
  0x96   : > { %1897 = vmatpush3.bf16.msra.mxu1 %v2050_v48 }
  0x97   : > { %1898 = vmatprep.subr.bf16.mxu1 %v2053_v52 }
  0x98   : > { %1877 = vmatpush3.bf16.msra.mxu0 %v2052_v51 }
  0x99   : > { %1906 = vmatprep.subr.bf16.mxu0 %v2057_v56 }
  0x9a   : > { %1899 = vmatpush3.bf16.msra.mxu1 %v2056_v54 }
  0x9b   : > { %1492 = vmatmul.mubr.bf16.vlgmr.msra.gmra.mrb[0].mxu0 %v1779_v53  ;;  %1928 = vmatprep.subr.bf16.mxu1 %v2061_v60 }
  0x9c   : > { %1907 = vmatpush3.bf16.msra.mxu0 %v2060_v58  ;;  %1571 = vmatprep.mubr.bf16.mxu0 %v1784_v55 }
  0x9d   : > { %1532 = vmatmul.mubr.bf16.vlgmr.msra.gmra.mrb[0].mxu1 %v1781_v57  ;;  %1908 = vmatprep.subr.bf16.mxu0 %v2063_v62 }
  0x9e   : > { %1929 = vmatpush3.bf16.msra.mxu1 %v2062_v61  ;;  %1611 = vmatprep.mubr.bf16.mxu1 %v1786_v59 }
  0x9f   : > { %1930 = vmatprep.subr.bf16.mxu1 %v2065_v0 }
  0xa0   : > { %1909 = vmatpush3.bf16.msra.mxu0 %v2064_v63 }
  0xa1   : > { %1910 = vmatprep.subr.bf16.mxu0 %v2067_v2 }
  0xa2   : > { %1931 = vmatpush3.bf16.msra.mxu1 %v2066_v1 }
  0xa3   : > { %1932 = vmatprep.subr.bf16.mxu1 %v2069_v4 }
  0xa4   : > { %1911 = vmatpush3.bf16.msra.mxu0 %v2068_v3 }
  0xa5   : > { %1912 = vmatprep.subr.bf16.mxu0 %v2071_v6 }
  0xa6   : > { %1933 = vmatpush3.bf16.msra.mxu1 %v2070_v5 }
  0xa7   : > { %1934 = vmatprep.subr.bf16.mxu1 %v2073_v8 }
  0xa8   : > { %1913 = vmatpush3.bf16.msra.mxu0 %v2072_v7 }
  0xa9   : > { %1914 = vmatprep.subr.bf16.mxu0 %v2075_v10 }
  0xaa   : > { %1935 = vmatpush3.bf16.msra.mxu1 %v2074_v9 }
  0xab   : > { %1936 = vmatprep.subr.bf16.mxu1 %v2077_v12 }
  0xac   : > { %1915 = vmatpush3.bf16.msra.mxu0 %v2076_v11 }
  0xad   : > { %1916 = vmatprep.subr.bf16.mxu0 %v2079_v14 }
  0xae   : > { %1937 = vmatpush3.bf16.msra.mxu1 %v2078_v13 }
  0xaf   : > { %1938 = vmatprep.subr.bf16.mxu1 %v2081_v16 }
  0xb0   : > { %1917 = vmatpush3.bf16.msra.mxu0 %v2080_v15 }
  0xb1   : > { %1918 = vmatprep.subr.bf16.mxu0 %v2083_v18 }
  0xb2   : > { %1939 = vmatpush3.bf16.msra.mxu1 %v2082_v17 }
  0xb3   : > { %1940 = vmatprep.subr.bf16.mxu1 %v2085_v20 }
  0xb4   : > { %1919 = vmatpush3.bf16.msra.mxu0 %v2084_v19 }
  0xb5   : > { %1920 = vmatprep.subr.bf16.mxu0 %v2087_v22 }
  0xb6   : > { %1941 = vmatpush3.bf16.msra.mxu1 %v2086_v21 }
  0xb7   : > { %1942 = vmatprep.subr.bf16.mxu1 %v2089_v24 }
  0xb8   : > { %1921 = vmatpush3.bf16.msra.mxu0 %v2088_v23 }
  0xb9   : > { %1959 = vmatprep.subr.bf16.mxu0 %v2144_v27 }
  0xba   : > { %1943 = vmatpush3.bf16.msra.mxu1 %v2092_v26 }
  0xbb   : > { %1572 = vmatmul.mubr.bf16.vlgmr.msra.gmra.mrb[4].mxu0 %v1783_v25 }
  0xbc   : > { %1960 = vmatpush3.bf16.msra.mxu0 %v2095_v29  ;;  %1975 = vmatprep.mubr.msk.bf16.mxu0 %vm2145_vm0, %v2144_v27 }
  0xbd   : > { %1612 = vmatmul.mubr.bf16.vlgmr.msra.gmra.mrb[4].mxu1 %v1785_v28  ;;  %1961 = vmatprep.subr.bf16.mxu0 %v2144_v27 }
  0xc0   : > { %1962 = vmatpush3.bf16.msra.mxu0 %v2096_v30 }
  0xc1   : > { %1963 = vmatprep.subr.bf16.mxu0 %v2144_v27 }
  0xc4   : > { %1964 = vmatpush3.bf16.msra.mxu0 %v2097_v31 }
  0xc5   : > { %1965 = vmatprep.subr.bf16.mxu0 %v2144_v27 }
  0xc8   : > { %1966 = vmatpush3.bf16.msra.mxu0 %v2098_v32 }
  0xc9   : > { %1967 = vmatprep.subr.bf16.mxu0 %v2144_v27 }
  0xcc   : > { %1968 = vmatpush3.bf16.msra.mxu0 %v2099_v33 }
  0xcd   : > { %1969 = vmatprep.subr.bf16.mxu0 %v2144_v27 }
  0xd0   : > { %1970 = vmatpush3.bf16.msra.mxu0 %v2100_v34 }
  0xd1   : > { %1971 = vmatprep.subr.bf16.mxu0 %v2144_v27 }
  0xd4   : > { %1972 = vmatpush3.bf16.msra.mxu0 %v2101_v35 }
  0xd5   : > { %1973 = vmatprep.subr.bf16.mxu0 %v2144_v27 }
  0xd8   : > { %1974 = vmatpush3.bf16.msra.mxu0 %v2102_v36 }
  0xdb   : > { %1976 = vmatmul.mubr.bf16.vlgmr.msra.gmra.mrb[8].mxu0 %v2103_v37 }
 0x16e   : > { %v1878_v38 = vpop.f32.mrb[0].mxu0 }
 0x16f   : > { %v1879_v40 = vpop.f32.mrb[1].mxu0 }
 0x170   : > { %v1880_v41 = vadd.f32 %v1879_v40, %v1878_v38  ;;  %v1881_v42 = vpop.f32.mrb[2].mxu0  ;;  %v1900_v43 = vpop.f32.mrb[0].mxu1 }
 0x171   : > { %v1882_v44 = vpop.f32.mrb[3].mxu0  ;;  %v1901_v45 = vpop.f32.mrb[1].mxu1 }
 0x172   : > { %v1494_v46 = vadd.f32 %v1880_v41, %v1778_v39  ;;  %v1902_v47 = vadd.f32 %v1901_v45, %v1900_v43  ;;  %v1903_v48 = vpop.f32.mrb[2].mxu1 }
 0x173   : > { %v1904_v49 = vpop.f32.mrb[3].mxu1 }
 0x174   : > { %v1534_v50 = vadd.f32 %v1902_v47, %v1494_v46 }
 0x18e   : > { %v1922_v51 = vpop.f32.mrb[4].mxu0 }
 0x18f   : > { %v1923_v52 = vpop.f32.mrb[5].mxu0 }
 0x190   : > { %v1924_v53 = vadd.f32 %v1923_v52, %v1922_v51  ;;  %v1925_v54 = vpop.f32.mrb[6].mxu0  ;;  %v1944_v55 = vpop.f32.mrb[4].mxu1 }
 0x191   : > { %v1926_v56 = vpop.f32.mrb[7].mxu0  ;;  %v1945_v57 = vpop.f32.mrb[5].mxu1 }
 0x192   : > { %v1574_v58 = vadd.f32 %v1924_v53, %v1534_v50  ;;  %v1946_v59 = vadd.f32 %v1945_v57, %v1944_v55  ;;  %v1947_v60 = vpop.f32.mrb[6].mxu1 }
 0x193   : > { %v1948_v61 = vpop.f32.mrb[7].mxu1 }
 0x194   : > { %v1614_v62 = vadd.f32 %v1946_v59, %v1574_v58 }
 0x1ae   : > { %v1653_v63 = vpop.f32.mrb[8].mxu0 }
 0x1af   : > { %v1654_v0 = vadd.f32 %v1653_v63, %v1614_v62  ;;  %v1977_v1 = vpop.f32.mrb[9].mxu0 }
 0x1b0   : > { %v1656_v2 = vpop.f32.mrb[10].mxu0 }
 0x1b1   : > { %v1659_v3 = vmax.f32 %v1654_v0, 0.0  ;;  %v1978_v4 = vpop.f32.mrb[11].mxu0 }
 0x1b3   : > { %v1660_v5 = vpack.c.bf16 %v1659_v3, %v1659_v3 }
 0x1b5   : > { %1661 = vst [vmem:[%s837_s26] sm:$0xf] %v1660_v5 }
 0x1b6 PF: > { %s13_s16 = sadd.s32 1, %s2142_s16   ;;  %s2648_s12 = smov %s2130_s13 }
 0x1b7   : > { %p10_p10 = scmp.ge.s32.totalorder %s13_s16, 4   ;;  %s2649_s13 = smov %s2201_s20 }
 0x1b8   : > { %s2650_s14 = smov %s2138_s15  ;;  %s2651_s15 = smov %s2653_s17 }
 0x1b9   :  { %12 = sbr.rel (!%p10_p10) target bundleno = 3 (0x3), region = 114 }

// kernel: anomaly_autoencoder_forward.13
= control target key start
LH: loop header
LB: loop body
LE: loop exit
PB: predicated region body
PF: predicated region fallthrough
CT: control target
= control target key end

     0   :  { %s1218_s12 = smov 0   ;;  %s1220_s13 = smov 0   ;;  %s1471_s0 = inlined_call_operand.vmem [shape: bf16[8,512], index: 0, kind: input, shape index: {}]   ;;  %s1472_s1 = inlined_call_operand.vmem [shape: bf16[512,256], index: 1, kind: input, shape index: {}]   ;;  %s1473_s2 = inlined_call_operand.vmem [shape: f32[1,256], index: 2, kind: input, shape index: {}]   ;;  %s1474_s3 = inlined_call_operand.vmem [shape: bf16[8,256], index: 3, kind: output, shape index: {}]  }
   0x1   :  { %s1222_s14 = smov 0   ;;  %s1224_s15 = smov 0  }
   0x2   :  { %s1226_s16 = smov 0  }
   0x3 LB: > { %s22_s17 = sadd.s32 1, %s1192_s15  ;;  %p65_p1 = scmp.ne.s32.totalorder %s1184_s13, %s1180_s12  ;;  %s1196_s16 = sphi %s1226_s16, %s13_s16   ;;  %s1192_s15 = sphi %s1224_s15, %s1478_s15   ;;  %s1188_s14 = sphi %s1222_s14, %s1477_s14   ;;  %s1184_s13 = sphi %s1220_s13, %s1476_s13   ;;  %s1180_s12 = sphi %s1218_s12, %s1475_s12  }
   0x4   : > { %p23_p0 = scmp.ge.s32.totalorder %s22_s17, 2  ;;  %p66_p2 = scmp.eq.s32.totalorder %s1196_s16, 0 }
   0x5   : > { %s58_s19 = sadd.s32 1, %s1184_s13  ;;  %p993_p5 = scmp.ge.s32.totalorder %s1196_s16, 2 }
   0x6   : > { %s1480_s17 = smov (%p23_p0, %s22_s17), 0  ;;  %p67_p3 = por %p66_p2, %p65_p1 }
   0x7   : > { %s55_s18 = ssub.s32 %s1192_s15, %s1480_s17  ;;  %153 = sbr.rel (%p993_p5) target bundleno = 60 (0x3c), region = 20 }
   0x8   : > { %p56_p4 = scmp.eq.s32.totalorder %s55_s18, 0 }
   0xa   : > { %s1253_s20 = scalar_select %p56_p4, %s1184_s13, %s58_s19  }
   0xe   : > { %156 = sbr.rel (!%p67_p3) target bundleno = 60 (0x3c), region = 24  ;;  %s158_s21 = sand.u32 (%p67_p3), 1, %s1184_s13  }
   0xf   : > { %s995_s22 = sshll.u32 (%p67_p3), %s1192_s15, 2  ;;  %s994_s23 = sshll.u32 (%p67_p3), %s158_s21, 8 }
  0x10   : > { %s1261_s26 = scalar_lea.vmem (%p67_p3), %s1472_s1, %s995_s22  ;;  %s1265_s27 = scalar_lea.vmem (%p67_p3), [#allocation2], %s994_s23 }
  0x11   : > { %v178_v0 = vld [vmem:[%s1261_s26] sm:$0xf] (%p67_p3)  ;;  %v180_v1 = vld [vmem:[%s1261_s26 + $0x8] sm:$0xf] (%p67_p3)  ;;  %v182_v2 = vld [vmem:[%s1261_s26 + $0x10] sm:$0xf] (%p67_p3) }
  0x12   : > { %179 = vst [vmem:[%s1265_s27] sm:$0xf] (%p67_p3), %v178_v0  ;;  %181 = vst [vmem:[%s1265_s27 + $0x4] sm:$0xf] (%p67_p3), %v180_v1  ;;  %v184_v3 = vld [vmem:[%s1261_s26 + $0x18] sm:$0xf] (%p67_p3) }
  0x13   : > { %v186_v4 = vld [vmem:[%s1261_s26 + $0x20] sm:$0xf] (%p67_p3)  ;;  %183 = vst [vmem:[%s1265_s27 + $0x8] sm:$0xf] (%p67_p3), %v182_v2  ;;  %185 = vst [vmem:[%s1265_s27 + $0xc] sm:$0xf] (%p67_p3), %v184_v3 }
  0x14   : > { %187 = vst [vmem:[%s1265_s27 + $0x10] sm:$0xf] (%p67_p3), %v186_v4  ;;  %v188_v5 = vld [vmem:[%s1261_s26 + $0x28] sm:$0xf] (%p67_p3)  ;;  %v190_v6 = vld [vmem:[%s1261_s26 + $0x30] sm:$0xf] (%p67_p3) }
  0x15   : > { %v192_v7 = vld [vmem:[%s1261_s26 + $0x38] sm:$0xf]  ;;  %189 = vst [vmem:[%s1265_s27 + $0x14] sm:$0xf] %v188_v5  ;;  %191 = vst [vmem:[%s1265_s27 + $0x18] sm:$0xf] %v190_v6 }
  0x16   : > { %193 = vst [vmem:[%s1265_s27 + $0x1c] sm:$0xf] %v192_v7  ;;  %v194_v8 = vld [vmem:[%s1261_s26 + $0x40] sm:$0xf]  ;;  %v196_v9 = vld [vmem:[%s1261_s26 + $0x48] sm:$0xf] }
  0x17   : > { %v198_v10 = vld [vmem:[%s1261_s26 + $0x50] sm:$0xf]  ;;  %195 = vst [vmem:[%s1265_s27 + $0x20] sm:$0xf] %v194_v8  ;;  %197 = vst [vmem:[%s1265_s27 + $0x24] sm:$0xf] %v196_v9 }
  0x18   : > { %199 = vst [vmem:[%s1265_s27 + $0x28] sm:$0xf] %v198_v10  ;;  %v200_v11 = vld [vmem:[%s1261_s26 + $0x58] sm:$0xf]  ;;  %v202_v12 = vld [vmem:[%s1261_s26 + $0x60] sm:$0xf] }
  0x19   : > { %v204_v13 = vld [vmem:[%s1261_s26 + $0x68] sm:$0xf]  ;;  %201 = vst [vmem:[%s1265_s27 + $0x2c] sm:$0xf] %v200_v11  ;;  %203 = vst [vmem:[%s1265_s27 + $0x30] sm:$0xf] %v202_v12 }
  0x1a   : > { %205 = vst [vmem:[%s1265_s27 + $0x34] sm:$0xf] %v204_v13  ;;  %v206_v14 = vld [vmem:[%s1261_s26 + $0x70] sm:$0xf]  ;;  %v208_v15 = vld [vmem:[%s1261_s26 + $0x78] sm:$0xf] }
  0x1b   : > { %v210_v16 = vld [vmem:[%s1261_s26 + $0x80] sm:$0xf]  ;;  %207 = vst [vmem:[%s1265_s27 + $0x38] sm:$0xf] %v206_v14  ;;  %209 = vst [vmem:[%s1265_s27 + $0x3c] sm:$0xf] %v208_v15 }
  0x1c   : > { %211 = vst [vmem:[%s1265_s27 + $0x40] sm:$0xf] %v210_v16  ;;  %v212_v17 = vld [vmem:[%s1261_s26 + $0x88] sm:$0xf]  ;;  %v214_v18 = vld [vmem:[%s1261_s26 + $0x90] sm:$0xf] }
  0x1d   : > { %v216_v19 = vld [vmem:[%s1261_s26 + $0x98] sm:$0xf]  ;;  %213 = vst [vmem:[%s1265_s27 + $0x44] sm:$0xf] %v212_v17  ;;  %215 = vst [vmem:[%s1265_s27 + $0x48] sm:$0xf] %v214_v18 }
  0x1e   : > { %217 = vst [vmem:[%s1265_s27 + $0x4c] sm:$0xf] %v216_v19  ;;  %v218_v20 = vld [vmem:[%s1261_s26 + $0xa0] sm:$0xf]  ;;  %v220_v21 = vld [vmem:[%s1261_s26 + $0xa8] sm:$0xf] }
  0x1f   : > { %v222_v22 = vld [vmem:[%s1261_s26 + $0xb0] sm:$0xf]  ;;  %219 = vst [vmem:[%s1265_s27 + $0x50] sm:$0xf] %v218_v20  ;;  %221 = vst [vmem:[%s1265_s27 + $0x54] sm:$0xf] %v220_v21 }
  0x20   : > { %223 = vst [vmem:[%s1265_s27 + $0x58] sm:$0xf] %v222_v22  ;;  %v224_v23 = vld [vmem:[%s1261_s26 + $0xb8] sm:$0xf]  ;;  %v226_v24 = vld [vmem:[%s1261_s26 + $0xc0] sm:$0xf] }
  0x21   : > { %v228_v25 = vld [vmem:[%s1261_s26 + $0xc8] sm:$0xf]  ;;  %225 = vst [vmem:[%s1265_s27 + $0x5c] sm:$0xf] %v224_v23  ;;  %227 = vst [vmem:[%s1265_s27 + $0x60] sm:$0xf] %v226_v24 }
  0x22   : > { %229 = vst [vmem:[%s1265_s27 + $0x64] sm:$0xf] %v228_v25  ;;  %v230_v26 = vld [vmem:[%s1261_s26 + $0xd0] sm:$0xf]  ;;  %v232_v27 = vld [vmem:[%s1261_s26 + $0xd8] sm:$0xf] }
  0x23   : > { %v234_v28 = vld [vmem:[%s1261_s26 + $0xe0] sm:$0xf]  ;;  %231 = vst [vmem:[%s1265_s27 + $0x68] sm:$0xf] %v230_v26  ;;  %233 = vst [vmem:[%s1265_s27 + $0x6c] sm:$0xf] %v232_v27 }
  0x24   : > { %235 = vst [vmem:[%s1265_s27 + $0x70] sm:$0xf] %v234_v28  ;;  %v236_v29 = vld [vmem:[%s1261_s26 + $0xe8] sm:$0xf]  ;;  %v238_v30 = vld [vmem:[%s1261_s26 + $0xf0] sm:$0xf] }
  0x25   : > { %v240_v31 = vld [vmem:[%s1261_s26 + $0xf8] sm:$0xf]  ;;  %237 = vst [vmem:[%s1265_s27 + $0x74] sm:$0xf] %v236_v29  ;;  %239 = vst [vmem:[%s1265_s27 + $0x78] sm:$0xf] %v238_v30 }
  0x26   : > { %241 = vst [vmem:[%s1265_s27 + $0x7c] sm:$0xf] %v240_v31  ;;  %v242_v32 = vld [vmem:[%s1261_s26 + $0x100] sm:$0xf]  ;;  %v244_v33 = vld [vmem:[%s1261_s26 + $0x108] sm:$0xf] }
  0x27   : > { %v246_v34 = vld [vmem:[%s1261_s26 + $0x110] sm:$0xf]  ;;  %243 = vst [vmem:[%s1265_s27 + $0x80] sm:$0xf] %v242_v32  ;;  %245 = vst [vmem:[%s1265_s27 + $0x84] sm:$0xf] %v244_v33 }
  0x28   : > { %247 = vst [vmem:[%s1265_s27 + $0x88] sm:$0xf] %v246_v34  ;;  %v248_v35 = vld [vmem:[%s1261_s26 + $0x118] sm:$0xf]  ;;  %v250_v36 = vld [vmem:[%s1261_s26 + $0x120] sm:$0xf] }
  0x29   : > { %v252_v37 = vld [vmem:[%s1261_s26 + $0x128] sm:$0xf]  ;;  %249 = vst [vmem:[%s1265_s27 + $0x8c] sm:$0xf] %v248_v35  ;;  %251 = vst [vmem:[%s1265_s27 + $0x90] sm:$0xf] %v250_v36 }
  0x2a   : > { %253 = vst [vmem:[%s1265_s27 + $0x94] sm:$0xf] %v252_v37  ;;  %v254_v38 = vld [vmem:[%s1261_s26 + $0x130] sm:$0xf]  ;;  %v256_v39 = vld [vmem:[%s1261_s26 + $0x138] sm:$0xf] }
  0x2b   : > { %v258_v40 = vld [vmem:[%s1261_s26 + $0x140] sm:$0xf]  ;;  %255 = vst [vmem:[%s1265_s27 + $0x98] sm:$0xf] %v254_v38  ;;  %257 = vst [vmem:[%s1265_s27 + $0x9c] sm:$0xf] %v256_v39 }
  0x2c   : > { %259 = vst [vmem:[%s1265_s27 + $0xa0] sm:$0xf] %v258_v40  ;;  %v260_v41 = vld [vmem:[%s1261_s26 + $0x148] sm:$0xf]  ;;  %v262_v42 = vld [vmem:[%s1261_s26 + $0x150] sm:$0xf] }
  0x2d   : > { %v264_v43 = vld [vmem:[%s1261_s26 + $0x158] sm:$0xf]  ;;  %261 = vst [vmem:[%s1265_s27 + $0xa4] sm:$0xf] %v260_v41  ;;  %263 = vst [vmem:[%s1265_s27 + $0xa8] sm:$0xf] %v262_v42 }
  0x2e   : > { %265 = vst [vmem:[%s1265_s27 + $0xac] sm:$0xf] %v264_v43  ;;  %v266_v44 = vld [vmem:[%s1261_s26 + $0x160] sm:$0xf]  ;;  %v268_v45 = vld [vmem:[%s1261_s26 + $0x168] sm:$0xf] }
  0x2f   : > { %v270_v46 = vld [vmem:[%s1261_s26 + $0x170] sm:$0xf]  ;;  %267 = vst [vmem:[%s1265_s27 + $0xb0] sm:$0xf] %v266_v44  ;;  %269 = vst [vmem:[%s1265_s27 + $0xb4] sm:$0xf] %v268_v45 }
  0x30   : > { %271 = vst [vmem:[%s1265_s27 + $0xb8] sm:$0xf] %v270_v46  ;;  %v272_v47 = vld [vmem:[%s1261_s26 + $0x178] sm:$0xf]  ;;  %v274_v48 = vld [vmem:[%s1261_s26 + $0x180] sm:$0xf] }
  0x31   : > { %v276_v49 = vld [vmem:[%s1261_s26 + $0x188] sm:$0xf]  ;;  %273 = vst [vmem:[%s1265_s27 + $0xbc] sm:$0xf] %v272_v47  ;;  %275 = vst [vmem:[%s1265_s27 + $0xc0] sm:$0xf] %v274_v48 }
  0x32   : > { %277 = vst [vmem:[%s1265_s27 + $0xc4] sm:$0xf] %v276_v49  ;;  %v278_v50 = vld [vmem:[%s1261_s26 + $0x190] sm:$0xf]  ;;  %v280_v51 = vld [vmem:[%s1261_s26 + $0x198] sm:$0xf] }
  0x33   : > { %v282_v52 = vld [vmem:[%s1261_s26 + $0x1a0] sm:$0xf]  ;;  %279 = vst [vmem:[%s1265_s27 + $0xc8] sm:$0xf] %v278_v50  ;;  %281 = vst [vmem:[%s1265_s27 + $0xcc] sm:$0xf] %v280_v51 }
  0x34   : > { %283 = vst [vmem:[%s1265_s27 + $0xd0] sm:$0xf] %v282_v52  ;;  %v284_v53 = vld [vmem:[%s1261_s26 + $0x1a8] sm:$0xf]  ;;  %v286_v54 = vld [vmem:[%s1261_s26 + $0x1b0] sm:$0xf] }
  0x35   : > { %v288_v55 = vld [vmem:[%s1261_s26 + $0x1b8] sm:$0xf]  ;;  %285 = vst [vmem:[%s1265_s27 + $0xd4] sm:$0xf] %v284_v53  ;;  %287 = vst [vmem:[%s1265_s27 + $0xd8] sm:$0xf] %v286_v54 }
  0x36   : > { %289 = vst [vmem:[%s1265_s27 + $0xdc] sm:$0xf] %v288_v55  ;;  %v290_v56 = vld [vmem:[%s1261_s26 + $0x1c0] sm:$0xf]  ;;  %v292_v57 = vld [vmem:[%s1261_s26 + $0x1c8] sm:$0xf] }
  0x37   : > { %v294_v58 = vld [vmem:[%s1261_s26 + $0x1d0] sm:$0xf]  ;;  %291 = vst [vmem:[%s1265_s27 + $0xe0] sm:$0xf] %v290_v56  ;;  %293 = vst [vmem:[%s1265_s27 + $0xe4] sm:$0xf] %v292_v57 }
  0x38   : > { %295 = vst [vmem:[%s1265_s27 + $0xe8] sm:$0xf] %v294_v58  ;;  %v296_v59 = vld [vmem:[%s1261_s26 + $0x1d8] sm:$0xf]  ;;  %v298_v60 = vld [vmem:[%s1261_s26 + $0x1e0] sm:$0xf] }
  0x39   : > { %v300_v61 = vld [vmem:[%s1261_s26 + $0x1e8] sm:$0xf]  ;;  %297 = vst [vmem:[%s1265_s27 + $0xec] sm:$0xf] %v296_v59  ;;  %299 = vst [vmem:[%s1265_s27 + $0xf0] sm:$0xf] %v298_v60 }
  0x3a   : > { %301 = vst [vmem:[%s1265_s27 + $0xf4] sm:$0xf] %v300_v61  ;;  %v302_v62 = vld [vmem:[%s1261_s26 + $0x1f0] sm:$0xf]  ;;  %v304_v63 = vld [vmem:[%s1261_s26 + $0x1f8] sm:$0xf] }
  0x3b   : > { %303 = vst [vmem:[%s1265_s27 + $0xf8] sm:$0xf] %v302_v62  ;;  %305 = vst [vmem:[%s1265_s27 + $0xfc] sm:$0xf] %v304_v63 }
  0x3c PF: > { %p996_p6 = scmp.ge.s32.totalorder %s1196_s16, 1  ;;  %p461_p7 = scmp.lt.s32.totalorder %s1196_s16, 3 }
  0x3e   : > { %p462_p8 = pnand %p996_p6, %p461_p7 }
  0x3f   : > { %s468_s28 = sand.u32 (!%p462_p8), 1, %s1180_s12   ;;  %v1399_v0 = vld [vmem:[%s1471_s0] sm:$0xff] (!%p462_p8)  ;;  %v1404_v1 = vld [vmem:[%s1471_s0 + $0x8] sm:$0xff] (!%p462_p8)  ;;  %p507_p9 = scmp.lt.s32.totalorder (!%p462_p8), %s1188_s14, 1 }
  0x40   : > { %465 = sbr.rel (%p462_p8) target bundleno = 324 (0x144), region = 69  ;;  %s997_s6 = sshll.u32 (!%p462_p8), %s468_s28, 8  ;;  %v1001_v2 = vcombine.high (!%p462_p8), %v1399_v0, %v1399_v0  ;;  %v1003_v3 = vcombine.high (!%p462_p8), %v1404_v1, %v1404_v1  ;;  %v1000_v36 = vcombine.low (!%p462_p8), %v1399_v0, %v1399_v0  ;;  %v1002_v37 = vcombine.low (!%p462_p8), %v1404_v1, %v1404_v1 }
  0x41   : > { %s1410_s7 = scalar_lea.vmem (!%p462_p8), [#allocation2], %s997_s6 }
  0x42   : > { %v1122_v4 = vld [vmem:[%s1410_s7 + $0x40] sm:$0xff] (!%p462_p8)   ;;  %830 = vmatprep.mubr.bf16.mxu0 (!%p462_p8), %v1001_v2  ;;  %870 = vmatprep.mubr.bf16.mxu1 (!%p462_p8), %v1003_v3  ;;  %v1126_v8 = vld [vmem:[%s1410_s7 + $0x48] sm:$0xff] (!%p462_p8)   ;;  %v1130_v12 = vld [vmem:[%s1410_s7 + $0x50] sm:$0xff] (!%p462_p8)  }
  0x43   : > { %v1123_v5 = vld [vmem:[%s1410_s7 + $0xc0] sm:$0xff] (!%p462_p8)   ;;  %1038 = vmatprep.subr.bf16.mxu0 (!%p462_p8), %v1122_v4  ;;  %v1127_v9 = vld [vmem:[%s1410_s7 + $0xc8] sm:$0xff] (!%p462_p8)   ;;  %v1131_v13 = vld [vmem:[%s1410_s7 + $0xd0] sm:$0xff] (!%p462_p8)  }
  0x44   : > { %v1124_v6 = vld [vmem:[%s1410_s7] sm:$0xff] (!%p462_p8)   ;;  %1060 = vmatprep.subr.bf16.mxu1 (!%p462_p8), %v1123_v5  ;;  %v1128_v10 = vld [vmem:[%s1410_s7 + $0x8] sm:$0xff] (!%p462_p8)   ;;  %v1132_v14 = vld [vmem:[%s1410_s7 + $0x10] sm:$0xff] (!%p462_p8)  }
  0x45   : > { %v1125_v7 = vld [vmem:[%s1410_s7 + $0x80] sm:$0xff] (!%p462_p8)   ;;  %1039 = vmatpush3.bf16.msra.mxu0 (!%p462_p8), %v1124_v6  ;;  %v1129_v11 = vld [vmem:[%s1410_s7 + $0x88] sm:$0xff] (!%p462_p8)   ;;  %v1133_v15 = vld [vmem:[%s1410_s7 + $0x90] sm:$0xff] (!%p462_p8)  }
  0x46   : > { %1061 = vmatpush3.bf16.msra.mxu1 (!%p462_p8), %v1125_v7  ;;  %1040 = vmatprep.subr.bf16.mxu0 (!%p462_p8), %v1126_v8  ;;  %v1134_v16 = vld [vmem:[%s1410_s7 + $0x58] sm:$0xff] (!%p462_p8)   ;;  %v1138_v20 = vld [vmem:[%s1410_s7 + $0x60] sm:$0xff] (!%p462_p8)   ;;  %v1142_v24 = vld [vmem:[%s1410_s7 + $0x68] sm:$0xff] (!%p462_p8)  }
  0x47   : > { %1062 = vmatprep.subr.bf16.mxu1 %v1127_v9  ;;  %v1135_v17 = vld [vmem:[%s1410_s7 + $0xd8] sm:$0xff]   ;;  %v1139_v21 = vld [vmem:[%s1410_s7 + $0xe0] sm:$0xff]   ;;  %v1143_v25 = vld [vmem:[%s1410_s7 + $0xe8] sm:$0xff]   ;;  %s1482_s14 = smov (!%p507_p9, %s1188_s14), 1 }
  0x48   : > { %v1136_v18 = vld [vmem:[%s1410_s7 + $0x18] sm:$0xff]   ;;  %v1140_v22 = vld [vmem:[%s1410_s7 + $0x20] sm:$0xff]   ;;  %v1144_v26 = vld [vmem:[%s1410_s7 + $0x28] sm:$0xff]   ;;  %s509_s10 = scalar_lea.vmem %s1473_s2, %s1482_s14  ;;  %s998_s11 = sshll.u32 %s1482_s14, 2 }
  0x49   : > { %1041 = vmatpush3.bf16.msra.mxu0 %v1128_v10  ;;  %v1137_v19 = vld [vmem:[%s1410_s7 + $0x98] sm:$0xff]   ;;  %v1141_v23 = vld [vmem:[%s1410_s7 + $0xa0] sm:$0xff]   ;;  %v1145_v27 = vld [vmem:[%s1410_s7 + $0xa8] sm:$0xff]   ;;  %s517_s19 = scalar_lea.vmem %s1474_s3, %s998_s11 }
  0x4a   : > { %1063 = vmatpush3.bf16.msra.mxu1 %v1129_v11  ;;  %1042 = vmatprep.subr.bf16.mxu0 %v1130_v12  ;;  %v1146_v28 = vld [vmem:[%s1410_s7 + $0x70] sm:$0xff]   ;;  %v1150_v32 = vld [vmem:[%s1410_s7 + $0x78] sm:$0xff]   ;;  %v999_v40 = vld [vmem:[%s509_s10] ss:$0 sm:$0xff] }
  0x4b   : > { %1064 = vmatprep.subr.bf16.mxu1 %v1131_v13  ;;  %v1147_v29 = vld [vmem:[%s1410_s7 + $0xf0] sm:$0xff]   ;;  %v1151_v33 = vld [vmem:[%s1410_s7 + $0xf8] sm:$0xff]  }
  0x4c   : > { %v1148_v30 = vld [vmem:[%s1410_s7 + $0x30] sm:$0xff]   ;;  %v1152_v34 = vld [vmem:[%s1410_s7 + $0x38] sm:$0xff]  }
  0x4d   : > { %1043 = vmatpush3.bf16.msra.mxu0 %v1132_v14  ;;  %v1149_v31 = vld [vmem:[%s1410_s7 + $0xb0] sm:$0xff]   ;;  %v1153_v35 = vld [vmem:[%s1410_s7 + $0xb8] sm:$0xff]  }
  0x4e   : > { %1065 = vmatpush3.bf16.msra.mxu1 %v1133_v15  ;;  %1044 = vmatprep.subr.bf16.mxu0 %v1134_v16 }
  0x4f   : > { %1066 = vmatprep.subr.bf16.mxu1 %v1135_v17 }
  0x51   : > { %1045 = vmatpush3.bf16.msra.mxu0 %v1136_v18 }
  0x52   : > { %1067 = vmatpush3.bf16.msra.mxu1 %v1137_v19  ;;  %1046 = vmatprep.subr.bf16.mxu0 %v1138_v20 }
  0x53   : > { %1068 = vmatprep.subr.bf16.mxu1 %v1139_v21 }
  0x55   : > { %1047 = vmatpush3.bf16.msra.mxu0 %v1140_v22 }
  0x56   : > { %1069 = vmatpush3.bf16.msra.mxu1 %v1141_v23  ;;  %1048 = vmatprep.subr.bf16.mxu0 %v1142_v24 }
  0x57   : > { %1070 = vmatprep.subr.bf16.mxu1 %v1143_v25 }
  0x59   : > { %1049 = vmatpush3.bf16.msra.mxu0 %v1144_v26 }
  0x5a   : > { %1071 = vmatpush3.bf16.msra.mxu1 %v1145_v27  ;;  %1050 = vmatprep.subr.bf16.mxu0 %v1146_v28 }
  0x5b   : > { %1072 = vmatprep.subr.bf16.mxu1 %v1147_v29 }
  0x5d   : > { %1051 = vmatpush3.bf16.msra.mxu0 %v1148_v30 }
  0x5e   : > { %1073 = vmatpush3.bf16.msra.mxu1 %v1149_v31  ;;  %1052 = vmatprep.subr.bf16.mxu0 %v1150_v32 }
  0x5f   : > { %1074 = vmatprep.subr.bf16.mxu1 %v1151_v33 }
  0x61   : > { %1053 = vmatpush3.bf16.msra.mxu0 %v1152_v34 }
  0x62   : > { %1075 = vmatpush3.bf16.msra.mxu1 %v1153_v35 }
  0x64   : > { %831 = vmatmul.mubr.bf16.vlgmr.msra.gmra.mrb[0].mxu0 %v1000_v36 }
  0x65   : > { %871 = vmatmul.mubr.bf16.vlgmr.msra.gmra.mrb[0].mxu1 %v1002_v37 }
 0x137   : > { %v1054_v38 = vpop.f32.mrb[0].mxu0 }
 0x138   : > { %v1076_v39 = vpop.f32.mrb[0].mxu1  ;;  %v1055_v41 = vpop.f32.mrb[1].mxu0 }
 0x139   : > { %v1056_v42 = vadd.f32 %v1055_v41, %v1054_v38  ;;  %v1077_v43 = vpop.f32.mrb[1].mxu1  ;;  %v1057_v44 = vpop.f32.mrb[2].mxu0 }
 0x13a   : > { %v1078_v45 = vadd.f32 %v1077_v43, %v1076_v39  ;;  %v1079_v46 = vpop.f32.mrb[2].mxu1  ;;  %v1058_v47 = vpop.f32.mrb[3].mxu0 }
 0x13b   : > { %v833_v48 = vadd.f32 %v1056_v42, %v999_v40  ;;  %v1080_v49 = vpop.f32.mrb[3].mxu1 }
 0x13d   : > { %v873_v50 = vadd.f32 %v1078_v45, %v833_v48 }
 0x13f   : > { %v878_v51 = vmax.f32 %v873_v50, 0.0 }
 0x141   : > { %v879_v52 = vpack.c.bf16 %v878_v51, %v878_v51 }
 0x143   : > { %880 = vst [vmem:[%s517_s19] sm:$0xf] %v879_v52 }
 0x144 PF: > { %s13_s16 = sadd.s32 1, %s1196_s16   ;;  %s1475_s12 = smov %s1184_s13 }
 0x145   : > { %p10_p10 = scmp.ge.s32.totalorder %s13_s16, 4   ;;  %s1476_s13 = smov %s1253_s20 }
 0x146   : > { %s1477_s14 = smov %s1192_s15  ;;  %s1478_s15 = smov %s1480_s17 }
 0x147   :  { %12 = sbr.rel (!%p10_p10) target bundleno = 3 (0x3), region = 114 }

// kernel: anomaly_autoencoder_forward.14
= control target key start
LH: loop header
LB: loop body
LE: loop exit
PB: predicated region body
PF: predicated region fallthrough
CT: control target
= control target key end

     0   :  { %s683_s12 = smov 0   ;;  %s685_s13 = smov 0   ;;  %s771_s0 = inlined_call_operand.vmem [shape: bf16[32,256], index: 0, kind: input, shape index: {}]   ;;  %s772_s1 = inlined_call_operand.vmem [shape: bf16[256,128], index: 1, kind: input, shape index: {}]   ;;  %s773_s2 = inlined_call_operand.vmem [shape: f32[1,128], index: 2, kind: input, shape index: {}]   ;;  %s774_s3 = inlined_call_operand.vmem [shape: bf16[32,128], index: 3, kind: output, shape index: {}]  }
   0x1   :  { %s687_s14 = smov 0  }
   0x2 LB: > { %s25_s15 = sadd.s32 1, %s657_s13  ;;  %p537_p0 = scmp.ge.s32.totalorder %s661_s14, 1  ;;  %s661_s14 = sphi %s687_s14, %s13_s14   ;;  %s657_s13 = sphi %s685_s13, %s776_s13   ;;  %s653_s12 = sphi %s683_s12, %s775_s12  }
   0x3   : > { %p27_p1 = scmp.ge.s32.totalorder %s25_s15, 2  ;;  %p170_p2 = scmp.lt.s32.totalorder %s661_s14, 3 }
   0x5   : > { %s778_s15 = smov (%p27_p1, %s25_s15), 0  ;;  %p171_p3 = pnand %p537_p0, %p170_p2 }
   0x6   : > { %v620_v0 = vld [vmem:[%s772_s1 + $0x40] sm:$0xff] (!%p171_p3)   ;;  %s538_s18 = sshll.u32 (!%p171_p3), %s653_s12, 1  ;;  %v622_v2 = vld [vmem:[%s772_s1 + $0x48] sm:$0xff] (!%p171_p3)   ;;  %v624_v4 = vld [vmem:[%s772_s1 + $0x50] sm:$0xff] (!%p171_p3)  }
   0x7   : > { %174 = sbr.rel (%p171_p3) target bundleno = 263 (0x107), region = 32  ;;  %v621_v1 = vld [vmem:[%s772_s1] sm:$0xff] (!%p171_p3)   ;;  %574 = vmatprep.subr.bf16.mxu0 (!%p171_p3), %v620_v0  ;;  %v623_v3 = vld [vmem:[%s772_s1 + $0x8] sm:$0xff] (!%p171_p3)   ;;  %p206_p4 = scmp.lt.s32.totalorder (!%p171_p3), %s538_s18, 3  ;;  %v625_v5 = vld [vmem:[%s772_s1 + $0x10] sm:$0xff] (!%p171_p3)  }
   0x8   : > { %575 = vmatpush3.bf16.msra.mxu0 (!%p171_p3), %v621_v1  ;;  %v626_v6 = vld [vmem:[%s772_s1 + $0x58] sm:$0xff] (!%p171_p3)   ;;  %v628_v8 = vld [vmem:[%s772_s1 + $0x60] sm:$0xff] (!%p171_p3)   ;;  %v630_v10 = vld [vmem:[%s772_s1 + $0x68] sm:$0xff] (!%p171_p3)  }
   0x9   : > { %576 = vmatprep.subr.bf16.mxu0 (!%p171_p3), %v622_v2  ;;  %v627_v7 = vld [vmem:[%s772_s1 + $0x18] sm:$0xff] (!%p171_p3)   ;;  %v629_v9 = vld [vmem:[%s772_s1 + $0x20] sm:$0xff] (!%p171_p3)   ;;  %v631_v12 = vld [vmem:[%s772_s1 + $0x28] sm:$0xff] (!%p171_p3)  }
   0xa   : > { %v632_v13 = vld [vmem:[%s772_s1 + $0x70] sm:$0xff] (!%p171_p3)   ;;  %v634_v15 = vld [vmem:[%s772_s1 + $0x78] sm:$0xff] (!%p171_p3)   ;;  %v543_v19 = vld [vmem:[%s773_s2] ss:$0 sm:$0xff] (!%p171_p3) }
   0xb   : > { %v633_v14 = vld [vmem:[%s772_s1 + $0x30] sm:$0xff] (!%p171_p3)   ;;  %v635_v16 = vld [vmem:[%s772_s1 + $0x38] sm:$0xff] (!%p171_p3)  }
   0xc   : > { %577 = vmatpush3.bf16.msra.mxu0 (!%p171_p3), %v623_v3 }
   0xd   : > { %578 = vmatprep.subr.bf16.mxu0 (!%p171_p3), %v624_v4 }
   0xe   : > { %s780_s18 = smov (!%p206_p4, %s538_s18), 3 }
   0xf   : > { %s566_s6 = sshll.u32 %s780_s18, 3  ;;  %s542_s5 = sshll.u32 %s780_s18, 2 }
  0x10   : > { %579 = vmatpush3.bf16.msra.mxu0 %v625_v5  ;;  %s210_s11 = scalar_lea.vmem %s771_s0, %s566_s6  ;;  %s226_s8 = scalar_lea.vmem %s774_s3, %s542_s5 }
  0x11   : > { %580 = vmatprep.subr.bf16.mxu0 %v626_v6  ;;  %v638_v11 = vld [vmem:[%s210_s11 + $0x4] ss:$8 sps:$4 sm:$0xff]   ;;  %v636_v17 = vld [vmem:[%s210_s11] ss:$8 sps:$4 sm:$0xff]  }
  0x12   : > { %408 = vmatprep.mubr.bf16.mxu0 %v638_v11 }
  0x14   : > { %581 = vmatpush3.bf16.msra.mxu0 %v627_v7 }
  0x15   : > { %582 = vmatprep.subr.bf16.mxu0 %v628_v8 }
  0x18   : > { %583 = vmatpush3.bf16.msra.mxu0 %v629_v9 }
  0x19   : > { %584 = vmatprep.subr.bf16.mxu0 %v630_v10 }
  0x1c   : > { %585 = vmatpush3.bf16.msra.mxu0 %v631_v12 }
  0x1d   : > { %586 = vmatprep.subr.bf16.mxu0 %v632_v13 }
  0x20   : > { %587 = vmatpush3.bf16.msra.mxu0 %v633_v14 }
  0x21   : > { %588 = vmatprep.subr.bf16.mxu0 %v634_v15 }
  0x24   : > { %589 = vmatpush3.bf16.msra.mxu0 %v635_v16 }
  0x27   : > { %409 = vmatmul.mubr.bf16.vlgmr.msra.gmra.mrb[0].mxu0 %v636_v17 }
  0xfa   : > { %v590_v18 = vpop.f32.mrb[0].mxu0 }
  0xfb   : > { %v591_v20 = vpop.f32.mrb[1].mxu0 }
  0xfc   : > { %v592_v21 = vadd.f32 %v591_v20, %v590_v18  ;;  %v593_v22 = vpop.f32.mrb[2].mxu0 }
  0xfd   : > { %v594_v23 = vpop.f32.mrb[3].mxu0 }
  0xfe   : > { %v411_v24 = vadd.f32 %v592_v21, %v543_v19  ;;  %v595_v25 = vadd.f32 %v594_v23, %v593_v22 }
 0x100   : > { %v414_v26 = vadd.f32 %v595_v25, %v543_v19  ;;  %v417_v27 = vmax.f32 %v411_v24, 0.0 }
 0x102   : > { %v418_v28 = vmax.f32 %v414_v26, 0.0 }
 0x104   : > { %v572_v29 = vpack.c.bf16 %v418_v28, %v417_v27 }
 0x106   : > { %573 = vst [vmem:[%s226_s8] sm:$0xff] %v572_v29  }
 0x107 PF: > { %s13_s14 = sadd.s32 1, %s661_s14   ;;  %s775_s12 = smov %s657_s13 }
 0x108   : > { %p10_p5 = scmp.ge.s32.totalorder %s13_s14, 4   ;;  %s776_s13 = smov %s778_s15 }
 0x10a   :  { %12 = sbr.rel (!%p10_p5) target bundleno = 2 (0x2), region = 68 }

// kernel: anomaly_autoencoder_forward.15
= control target key start
LH: loop header
LB: loop body
LE: loop exit
PB: predicated region body
PF: predicated region fallthrough
CT: control target
= control target key end

     0   :  { %s750_s12 = smov 0   ;;  %s752_s13 = smov 0   ;;  %s820_s0 = inlined_call_operand.vmem [shape: bf16[128,128], index: 0, kind: input, shape index: {}]   ;;  %s821_s1 = inlined_call_operand.vmem [shape: bf16[128,128], index: 1, kind: input, shape index: {}]   ;;  %s822_s2 = inlined_call_operand.vmem [shape: f32[1,128], index: 2, kind: input, shape index: {}]   ;;  %s823_s3 = inlined_call_operand.vmem [shape: f32[128,128], index: 3, kind: output, shape index: {}]  }
   0x1   :  { %s754_s14 = smov 0  }
   0x2 LB: > { %s25_s15 = sadd.s32 1, %s724_s13  ;;  %p558_p0 = scmp.ge.s32.totalorder %s728_s14, 1  ;;  %s728_s14 = sphi %s754_s14, %s13_s14   ;;  %s724_s13 = sphi %s752_s13, %s825_s13   ;;  %s720_s12 = sphi %s750_s12, %s824_s12  }
   0x3   : > { %p27_p1 = scmp.ge.s32.totalorder %s25_s15, 2  ;;  %p169_p2 = scmp.lt.s32.totalorder %s728_s14, 3 }
   0x5   : > { %s827_s15 = smov (%p27_p1, %s25_s15), 0  ;;  %p170_p3 = pnand %p558_p0, %p169_p2 }
   0x6   : > { %v662_v0 = vld [vmem:[%s821_s1] sm:$0xff] (!%p170_p3)   ;;  %s559_s18 = sshll.u32 (!%p170_p3), %s720_s12, 3  ;;  %v663_v1 = vld [vmem:[%s821_s1 + $0x8] sm:$0xff] (!%p170_p3)   ;;  %v664_v2 = vld [vmem:[%s821_s1 + $0x10] sm:$0xff] (!%p170_p3)  }
   0x7   : > { %173 = sbr.rel (%p170_p3) target bundleno = 287 (0x11f), region = 32  ;;  %p204_p4 = scmp.lt.s32.totalorder (!%p170_p3), %s559_s18, 15  ;;  %598 = vmatprep.subr.bf16.mxu0 (!%p170_p3), %v662_v0  ;;  %622 = vmatprep.subr.bf16.mxu1 (!%p170_p3), %v662_v0  ;;  %v665_v3 = vld [vmem:[%s821_s1 + $0x18] sm:$0xff] (!%p170_p3)   ;;  %v666_v6 = vld [vmem:[%s821_s1 + $0x20] sm:$0xff] (!%p170_p3)   ;;  %v667_v7 = vld [vmem:[%s821_s1 + $0x28] sm:$0xff] (!%p170_p3)  }
   0x8   : > { %599 = vmatpush3.bf16.msra.mxu0 (!%p170_p3), %v662_v0  ;;  %630 = vmatpush3.bf16.msra.mxu1 (!%p170_p3), %v662_v0  ;;  %v668_v8 = vld [vmem:[%s821_s1 + $0x30] sm:$0xff] (!%p170_p3)   ;;  %v669_v9 = vld [vmem:[%s821_s1 + $0x38] sm:$0xff] (!%p170_p3)   ;;  %v563_v12 = vld [vmem:[%s822_s2] ss:$0 sm:$0xff] (!%p170_p3) }
   0x9   : > { %600 = vmatprep.subr.bf16.mxu0 (!%p170_p3), %v663_v1  ;;  %623 = vmatprep.subr.bf16.mxu1 (!%p170_p3), %v663_v1 }
   0xc   : > { %601 = vmatpush3.bf16.msra.mxu0 (!%p170_p3), %v663_v1  ;;  %631 = vmatpush3.bf16.msra.mxu1 (!%p170_p3), %v663_v1 }
   0xd   : > { %602 = vmatprep.subr.bf16.mxu0 (!%p170_p3), %v664_v2  ;;  %624 = vmatprep.subr.bf16.mxu1 (!%p170_p3), %v664_v2 }
   0xe   : > { %s829_s18 = smov (!%p204_p4, %s559_s18), 15 }
   0xf   : > { %s560_s23 = sshll.u32 %s829_s18, 2  ;;  %s562_s12 = sshll.u32 %s829_s18, 3 }
  0x10   : > { %s783_s26 = scalar_lea.vmem %s820_s0, %s560_s23  ;;  %603 = vmatpush3.bf16.msra.mxu0 %v664_v2  ;;  %632 = vmatpush3.bf16.msra.mxu1 %v664_v2  ;;  %s223_s19 = scalar_lea.vmem %s823_s3, %s562_s12 }
  0x11   : > { %v670_v4 = vld [vmem:[%s783_s26] sm:$0xff]   ;;  %v671_v5 = vld [vmem:[%s783_s26 + $0x10] sm:$0xff]   ;;  %604 = vmatprep.subr.bf16.mxu0 %v665_v3  ;;  %625 = vmatprep.subr.bf16.mxu1 %v665_v3  ;;  %v672_v10 = vld [vmem:[%s783_s26 + $0x8] sm:$0xff]  }
  0x12   : > { %614 = vmatprep.mubr.bf16.mxu0 %v670_v4  ;;  %618 = vmatprep.mubr.bf16.mxu1 %v671_v5  ;;  %v673_v11 = vld [vmem:[%s783_s26 + $0x18] sm:$0xff]  }
  0x14   : > { %605 = vmatpush3.bf16.msra.mxu0 %v665_v3  ;;  %633 = vmatpush3.bf16.msra.mxu1 %v665_v3 }
  0x15   : > { %606 = vmatprep.subr.bf16.mxu0 %v666_v6  ;;  %626 = vmatprep.subr.bf16.mxu1 %v666_v6 }
  0x18   : > { %607 = vmatpush3.bf16.msra.mxu0 %v666_v6  ;;  %634 = vmatpush3.bf16.msra.mxu1 %v666_v6 }
  0x19   : > { %608 = vmatprep.subr.bf16.mxu0 %v667_v7  ;;  %627 = vmatprep.subr.bf16.mxu1 %v667_v7 }
  0x1c   : > { %609 = vmatpush3.bf16.msra.mxu0 %v667_v7  ;;  %635 = vmatpush3.bf16.msra.mxu1 %v667_v7 }
  0x1d   : > { %610 = vmatprep.subr.bf16.mxu0 %v668_v8  ;;  %628 = vmatprep.subr.bf16.mxu1 %v668_v8 }
  0x20   : > { %611 = vmatpush3.bf16.msra.mxu0 %v668_v8  ;;  %636 = vmatpush3.bf16.msra.mxu1 %v668_v8 }
  0x21   : > { %612 = vmatprep.subr.bf16.mxu0 %v669_v9  ;;  %629 = vmatprep.subr.bf16.mxu1 %v669_v9 }
  0x24   : > { %613 = vmatpush3.bf16.msra.mxu0 %v669_v9  ;;  %637 = vmatpush3.bf16.msra.mxu1 %v669_v9 }
  0x27   : > { %615 = vmatmul.mubr.bf16.vlgmr.msra.gmra.mrb[0].mxu0 %v672_v10  ;;  %619 = vmatmul.mubr.bf16.vlgmr.msra.gmra.mrb[0].mxu1 %v673_v11 }
  0xfa   : > { %v616_v13 = vpop.f32.mrb[0].mxu0  ;;  %v620_v14 = vpop.f32.mrb[0].mxu1 }
  0xfb   : > { %v372_v15 = vadd.f32 %v616_v13, %v563_v12  ;;  %v388_v16 = vadd.f32 %v620_v14, %v563_v12  ;;  %v363_v17 = vpop.f32.mrb[1].mxu0  ;;  %v379_v18 = vpop.f32.mrb[1].mxu1 }
  0xfc   : > { %v364_v19 = vadd.f32 %v563_v12, %v363_v17  ;;  %v380_v20 = vadd.f32 %v563_v12, %v379_v18  ;;  %v617_v21 = vpop.f32.mrb[2].mxu0  ;;  %v621_v22 = vpop.f32.mrb[2].mxu1 }
  0xfd   : > { %v578_v23 = vmul.f32 -1.442695, %v372_v15  ;;  %v582_v24 = vmul.f32 -1.442695, %v388_v16  ;;  %v375_v25 = vadd.f32 %v617_v21, %v563_v12  ;;  %v391_v26 = vadd.f32 %v621_v22, %v563_v12  ;;  %v366_v27 = vpop.f32.mrb[3].mxu0  ;;  %v382_v28 = vpop.f32.mrb[3].mxu1 }
  0xfe   : > { %v576_v29 = vmul.f32 -1.442695, %v364_v19  ;;  %v580_v30 = vmul.f32 -1.442695, %v380_v20  ;;  %v367_v31 = vadd.f32 %v563_v12, %v366_v27  ;;  %v383_v32 = vadd.f32 %v563_v12, %v382_v28 }
  0xff   : > { %674 = vpow2.f32 %v578_v23  ;;  %v579_v33 = vmul.f32 -1.442695, %v375_v25  ;;  %v583_v34 = vmul.f32 -1.442695, %v391_v26 }
 0x100   : > { %676 = vpow2.f32 %v582_v24  ;;  %v577_v35 = vmul.f32 -1.442695, %v367_v31  ;;  %v581_v36 = vmul.f32 -1.442695, %v383_v32 }
 0x101   : > { %678 = vpow2.f32 %v576_v29 }
 0x102   : > { %680 = vpow2.f32 %v580_v30 }
 0x103   : > { %682 = vpow2.f32 %v579_v33 }
 0x104   : > { %684 = vpow2.f32 %v583_v34 }
 0x105   : > { %686 = vpow2.f32 %v577_v35 }
 0x106   : > { %688 = vpow2.f32 %v581_v36 }
 0x109   : > { %v675_v37 = vpop.eup %674 }
 0x10a   : > { %v677_v38 = vpop.eup %676  ;;  %v420_v39 = vadd.f32 1.0, %v675_v37 }
 0x10b   : > { %v679_v40 = vpop.eup %678  ;;  %v424_v41 = vadd.f32 1.0, %v677_v38 }
 0x10c   : > { %v681_v42 = vpop.eup %680  ;;  %690 = vrcp.f32 %v420_v39  ;;  %v418_v43 = vadd.f32 1.0, %v679_v40 }
 0x10d   : > { %v683_v44 = vpop.eup %682  ;;  %692 = vrcp.f32 %v424_v41  ;;  %v422_v45 = vadd.f32 1.0, %v681_v42 }
 0x10e   : > { %v685_v46 = vpop.eup %684  ;;  %694 = vrcp.f32 %v418_v43  ;;  %v421_v47 = vadd.f32 1.0, %v683_v44 }
 0x10f   : > { %v687_v48 = vpop.eup %686  ;;  %696 = vrcp.f32 %v422_v45  ;;  %v425_v49 = vadd.f32 1.0, %v685_v46 }
 0x110   : > { %v689_v50 = vpop.eup %688  ;;  %698 = vrcp.f32 %v421_v47  ;;  %v419_v51 = vadd.f32 1.0, %v687_v48 }
 0x111   : > { %700 = vrcp.f32 %v425_v49  ;;  %v423_v52 = vadd.f32 1.0, %v689_v50 }
 0x112   : > { %702 = vrcp.f32 %v419_v51 }
 0x113   : > { %704 = vrcp.f32 %v423_v52 }
 0x116   : > { %v691_v53 = vpop.eup %690 }
 0x117   : > { %v693_v54 = vpop.eup %692  ;;  %444 = vst [vmem:[%s223_s19 + $0x10] sm:$0xff] %v691_v53 }
 0x118   : > { %v695_v55 = vpop.eup %694  ;;  %448 = vst [vmem:[%s223_s19 + $0x30] sm:$0xff] %v693_v54 }
 0x119   : > { %v697_v56 = vpop.eup %696  ;;  %442 = vst [vmem:[%s223_s19] sm:$0xff] %v695_v55 }
 0x11a   : > { %v699_v57 = vpop.eup %698  ;;  %446 = vst [vmem:[%s223_s19 + $0x20] sm:$0xff] %v697_v56 }
 0x11b   : > { %v701_v58 = vpop.eup %700  ;;  %445 = vst [vmem:[%s223_s19 + $0x18] sm:$0xff] %v699_v57 }
 0x11c   : > { %v703_v59 = vpop.eup %702  ;;  %449 = vst [vmem:[%s223_s19 + $0x38] sm:$0xff] %v701_v58 }
 0x11d   : > { %v705_v60 = vpop.eup %704  ;;  %443 = vst [vmem:[%s223_s19 + $0x8] sm:$0xff] %v703_v59 }
 0x11e   : > { %447 = vst [vmem:[%s223_s19 + $0x28] sm:$0xff] %v705_v60 }
 0x11f PF: > { %s13_s14 = sadd.s32 1, %s728_s14   ;;  %s824_s12 = smov %s724_s13 }
 0x120   : > { %p10_p5 = scmp.ge.s32.totalorder %s13_s14, 4   ;;  %s825_s13 = smov %s827_s15 }
 0x122   :  { %12 = sbr.rel (!%p10_p5) target bundleno = 2 (0x2), region = 68 }

</bundles_post_ra>
